<compile_context>
chip_gen: v6e
topology: v6e:2x2x1
jax: 0.10.0
libtpu: 0.0.40
codegen_flags: <defaults>
</compile_context>

<pallas_src>
import jax
import jax.numpy as jnp
from jax.experimental import pallas as pl
from jax.experimental.pallas import tpu as pltpu


_VMEM_LIMIT = 32 * 1024 * 1024
_HEAD_G = 8          # graphs per head grid step
_K_SORT = 30         # SortAggregation k (num_nodes)
_FEAT = 97           # logical concat width (32+32+32+1)
_FEAT_PAD = 128      # lane-dense concat width


# ----------------------------- Pallas kernels ------------------------------

def _gcn_stack_kernel(a_ref, x_ref, w1_ref, ws_ref, bs_ref, o_ref):
    """Four fused GCN layers for ONE graph: o = concat(tanh(A(HW)+b) chain).

    a_ref : [n_pad, n_pad] f32 normalized adjacency (zero-padded rows/cols)
    x_ref : [n_pad, F]     node features
    w1_ref: [F, 32]        gcn1 weight
    ws_ref: [3, 32, 32]    gcn2 / gcn3 / gcn4(zero-padded to 32) weights
    bs_ref: [4, 1, 32]     biases (gcn4 bias zero-padded)
    o_ref : [n_pad, 128]   lane-dense concat (cols 97..127 stay exactly 0)
    """
    a = a_ref[...]
    x = x_ref[...]

    if x.shape[-1] < 32:
        # (A @ X) @ W1: cheaper A-side matmul when in_channels < 32.
        ax = jnp.dot(a, x, preferred_element_type=jnp.float32)
        h = jnp.tanh(jnp.dot(ax, w1_ref[...],
                             preferred_element_type=jnp.float32) + bs_ref[0])
    else:
        xw = jnp.dot(x, w1_ref[...], preferred_element_type=jnp.float32)
        h = jnp.tanh(jnp.dot(a, xw,
                             preferred_element_type=jnp.float32) + bs_ref[0])

    outs = [h]
    for l in range(3):
        xw = jnp.dot(h, ws_ref[l], preferred_element_type=jnp.float32)
        h = jnp.tanh(jnp.dot(a, xw,
                             preferred_element_type=jnp.float32) + bs_ref[l + 1])
        outs.append(h)

    o_ref[...] = jnp.concatenate(outs, axis=-1)          # [n_pad, 128]


def _head_kernel(pe_ref, po_ref, w1_ref, b1_ref, w2_ref, b2_ref,
                 w3_ref, b3_ref, w4_ref, b4_ref, o_ref):
    """Fused post-sort-pool head for G graphs per grid step (all 2-D matmuls).

    pe/po : [G, 15*128]  even/odd sort-pooled node rows (lane-dense).
    w1    : [15*128, 15*16] block-diagonal conv1 weight (kernel=97 -> per-node
            matmul; rows 97..127 of each block are zero).
    w2    : [15*16, 11*32]  banded conv2 (kernel=5) weight.
    w3    : [11*32, 128]    Linear(352,128) in (position, channel) order.
    w4    : [128, 128]      Linear(128,1) zero-padded (lane 0 = logit).
    o     : [G, 128]        sigmoid output slab (lane 0 meaningful).
    """
    w1 = w1_ref[...]
    b1 = b1_ref[...]
    # conv1 + ReLU + MaxPool1d(2,2): relu(max) == max(relu); even/odd chunks.
    ce = jnp.dot(pe_ref[...], w1, preferred_element_type=jnp.float32) + b1
    co = jnp.dot(po_ref[...], w1, preferred_element_type=jnp.float32) + b1
    q = jnp.maximum(jnp.maximum(ce, co), 0.0)                       # [G, 240]

    # conv2 (K=5, stride=1) + ReLU as one banded matmul.
    c2 = jnp.maximum(jnp.dot(q, w2_ref[...],
                             preferred_element_type=jnp.float32) + b2_ref[...],
                     0.0)                                            # [G, 352]

    # Linear(352 -> 128) + ReLU (PyTorch flatten order absorbed into w3).
    h = jnp.maximum(jnp.dot(c2, w3_ref[...],
                            preferred_element_type=jnp.float32) + b3_ref[...],
                    0.0)                                             # [G, 128]

    # TODO(synk): Dropout(0.5) is identity (eval-mode semantics).
    logits = jnp.dot(h, w4_ref[...],
                     preferred_element_type=jnp.float32) + b4_ref[...]
    o_ref[...] = jax.nn.sigmoid(logits)                              # [G, 128]


# ------------------------------ Kernel wrappers -----------------------------

def gcn_stack(a_blocks, x_blocks, w1, ws, bs):
    """Per-graph fused GCN stack.  a_blocks [B, n_pad, n_pad], x [B, n_pad, F]."""
    num_graphs, n_pad, _ = a_blocks.shape
    f_in = x_blocks.shape[-1]

    def full(shape):
        return pl.BlockSpec(shape, lambda g: (0,) * len(shape))

    return pl.pallas_call(
        _gcn_stack_kernel,
        grid=(num_graphs,),
        in_specs=[pl.BlockSpec((None, n_pad, n_pad), lambda g: (g, 0, 0)),
                  pl.BlockSpec((None, n_pad, f_in), lambda g: (g, 0, 0)),
                  full(w1.shape), full(ws.shape), full(bs.shape)],
        out_specs=pl.BlockSpec((None, n_pad, _FEAT_PAD), lambda g: (g, 0, 0)),
        out_shape=jax.ShapeDtypeStruct((num_graphs, n_pad, _FEAT_PAD),
                                       jnp.float32),
        compiler_params=pltpu.CompilerParams(
            dimension_semantics=("parallel",),
            vmem_limit_bytes=_VMEM_LIMIT),
    )(a_blocks, x_blocks, w1, ws, bs)


def dgcnn_head(pe_wide, po_wide, w1big, b1t, w2big, b2t, w3s, b3l, w4l, b4l):
    """Fused head, G graphs per grid step.  pe/po_wide: [B_pad, 15*128]."""
    b_pad, seq = pe_wide.shape
    g = _HEAD_G
    assert b_pad % g == 0

    def full(shape):
        return pl.BlockSpec(shape, lambda b: (0,) * len(shape))

    return pl.pallas_call(
        _head_kernel,
        grid=(b_pad // g,),
        in_specs=[pl.BlockSpec((g, seq), lambda b: (b, 0)),
                  pl.BlockSpec((g, seq), lambda b: (b, 0)),
                  full(w1big.shape), full(b1t.shape),
                  full(w2big.shape), full(b2t.shape),
                  full(w3s.shape), full(b3l.shape),
                  full(w4l.shape), full(b4l.shape)],
        out_specs=pl.BlockSpec((g, 128), lambda b: (b, 0)),
        out_shape=jax.ShapeDtypeStruct((b_pad, 128), jnp.float32),
        compiler_params=pltpu.CompilerParams(
            dimension_semantics=("parallel",),
            vmem_limit_bytes=_VMEM_LIMIT),
    )(pe_wide, po_wide, w1big, b1t, w2big, b2t, w3s, b3l, w4l, b4l)


# ------------------------------ Parameters ---------------------------------

def init_params(key, in_channels):
    ks = jax.random.split(key, 12)

    def u(k, shape, fan_in):
        bound = 1.0 / jnp.sqrt(jnp.float32(fan_in))
        return jax.random.uniform(k, shape, jnp.float32, -bound, bound)

    p = {}
    # GCNConv weights stored as [in, out]; bias as [1, out]
    p["gcn1_w"] = u(ks[0], (in_channels, 32), in_channels)
    p["gcn1_b"] = jnp.zeros((1, 32), jnp.float32)
    p["gcn2_w"] = u(ks[1], (32, 32), 32)
    p["gcn2_b"] = jnp.zeros((1, 32), jnp.float32)
    p["gcn3_w"] = u(ks[2], (32, 32), 32)
    p["gcn3_b"] = jnp.zeros((1, 32), jnp.float32)
    p["gcn4_w"] = u(ks[3], (32, 1), 32)
    p["gcn4_b"] = jnp.zeros((1, 1), jnp.float32)
    # Conv1d weights in PyTorch layout [Cout, Cin, K]
    p["conv1_w"] = u(ks[4], (16, 1, 97), 1 * 97)
    p["conv1_b"] = u(ks[5], (16,), 1 * 97)
    p["conv2_w"] = u(ks[6], (32, 16, 5), 16 * 5)
    p["conv2_b"] = u(ks[7], (32,), 16 * 5)
    # Linear weights stored as [in, out] (pre-transposed for x @ W)
    p["lin1_w"] = u(ks[8], (352, 128), 352)
    p["lin1_b"] = u(ks[9], (128,), 352)
    p["lin2_w"] = u(ks[10], (128, 1), 128)
    p["lin2_b"] = u(ks[11], (1,), 128)
    return p


# -------------------------------- Forward ----------------------------------

def dgcnn_forward(params, x, edge_index, batch, num_graphs,
                  max_nodes_per_graph, k=_K_SORT):
    """Assumes nodes are grouped contiguously per graph (sorted `batch`)."""
    n, f_in = x.shape
    # Pad the per-graph node dim to a multiple of 128 so A_hat is lane-dense.
    n_pad = ((max_nodes_per_graph + 127) // 128) * 128

    # --- per-graph dense blocks (block-diagonal A_hat, padded X) -------------
    counts = jnp.zeros((num_graphs,), jnp.int32).at[batch].add(1)
    starts = jnp.concatenate(
        [jnp.zeros((1,), jnp.int32), jnp.cumsum(counts)[:-1].astype(jnp.int32)])
    pos = jnp.arange(n, dtype=jnp.int32) - starts[batch]        # local node idx
    valid = jnp.arange(n_pad, dtype=jnp.int32)[None, :] < counts[:, None]

    x_dense = jnp.zeros((num_graphs, n_pad, f_in), jnp.float32).at[
        batch, pos].set(x)

    src, dst = edge_index[0], edge_index[1]
    a_dense = jnp.zeros((num_graphs, n_pad, n_pad), jnp.float32).at[
        batch[dst], pos[dst], pos[src]].add(1.0)
    # Self loops on valid nodes only; padded rows/cols stay exactly zero.
    a_dense = a_dense + (jnp.eye(n_pad, dtype=jnp.float32)[None]
                         * valid[:, :, None].astype(jnp.float32))
    deg = jnp.sum(a_dense, axis=2)
    d_inv_sqrt = jnp.where(deg > 0, 1.0 / jnp.sqrt(deg), 0.0)
    a_hat = d_inv_sqrt[:, :, None] * a_dense * d_inv_sqrt[:, None, :]

    # --- fused per-graph GCN stack (one Pallas kernel, parallel over graphs) --
    # gcn4 (32 -> 1) zero-padded to 32 output lanes; padded lanes stay exactly 0
    # and double as the 97 -> 128 lane padding of the concat.
    w4p = jnp.pad(params["gcn4_w"], ((0, 0), (0, 32 - params["gcn4_w"].shape[1])))
    b4p = jnp.pad(params["gcn4_b"], ((0, 0), (0, 32 - params["gcn4_b"].shape[1])))
    ws = jnp.stack([params["gcn2_w"], params["gcn3_w"], w4p])     # [3, 32, 32]
    bs = jnp.stack([params["gcn1_b"], params["gcn2_b"],
                    params["gcn3_b"], b4p])                        # [4, 1, 32]

    hcat = gcn_stack(a_hat, x_dense, params["gcn1_w"], ws, bs)    # [B,n_pad,128]

    # --- sort pooling (plain JAX: argsort, no Pallas sort primitive) ----------
    # Sort key = column 96 (the h4 channel); padded lanes 97..127 remain zero,
    # so the lane-dense 128-wide slab flows directly into the head.
    key_col = jnp.where(valid, hcat[:, :, _FEAT - 1], -jnp.inf)
    perm = jnp.argsort(-key_col, axis=1)
    sorted_h = jnp.take_along_axis(hcat, perm[:, :, None], axis=1)
    sorted_valid = jnp.take_along_axis(valid, perm, axis=1)
    sorted_h = jnp.where(sorted_valid[:, :, None], sorted_h, 0.0)
    if n_pad >= k:
        pooled = sorted_h[:, :k]                                   # [B, k, 128]
    else:
        pooled = jnp.pad(sorted_h, ((0, 0), (0, k - n_pad), (0, 0)))

    # --- head inputs: even/odd conv1 chunks, lane-dense, batch-padded to G ----
    half = k // 2                                                  # 15
    pe_wide = pooled[:, 0::2, :].reshape(num_graphs, half * _FEAT_PAD)
    po_wide = pooled[:, 1::2, :].reshape(num_graphs, half * _FEAT_PAD)
    b_pad = ((num_graphs + _HEAD_G - 1) // _HEAD_G) * _HEAD_G
    pe_wide = jnp.pad(pe_wide, ((0, b_pad - num_graphs), (0, 0)))
    po_wide = jnp.pad(po_wide, ((0, b_pad - num_graphs), (0, 0)))

    # conv1 (kernel=97, stride=97) == per-node matmul; zero-pad rows 97..127 and
    # expand to a block-diagonal [15*128, 15*16] weight so it is ONE matmul.
    w1c = jnp.pad(params["conv1_w"].reshape(16, _FEAT).T,
                  ((0, _FEAT_PAD - _FEAT), (0, 0)))                # [128, 16]
    w1big = jnp.kron(jnp.eye(half, dtype=jnp.float32), w1c)       # [1920, 240]
    b1t = jnp.tile(params["conv1_b"].reshape(1, 16), (1, half))   # [1, 240]

    # conv2 (kernel=5, stride=1) as a banded [240, 352] weight: ONE matmul.
    n_out2 = half - 5 + 1                                          # 11
    w2s = jnp.transpose(params["conv2_w"], (2, 1, 0))              # [5, 16, 32]
    w2big = jnp.zeros((half * 16, n_out2 * 32), jnp.float32)
    for t in range(n_out2):
        for kk in range(5):
            w2big = w2big.at[(t + kk) * 16:(t + kk + 1) * 16,
                             t * 32:(t + 1) * 32].set(w2s[kk])
    b2t = jnp.tile(params["conv2_b"].reshape(1, 32), (1, n_out2))  # [1, 352]

    # Linear(352,128): reorder PyTorch (channel, position) flatten into our
    # (position, channel) flatten so lin1 is a single [*,352]@[352,128] matmul.
    w3s = params["lin1_w"].reshape(32, n_out2, 128).transpose(1, 0, 2).reshape(
        n_out2 * 32, 128)
    b3l = params["lin1_b"].reshape(1, 128)
    # Linear(128,1) zero-padded to a 128-lane output slab (lane 0 = logit).
    w4l = jnp.pad(params["lin2_w"], ((0, 0), (0, 127)))
    b4l = jnp.pad(params["lin2_b"].reshape(1, 1), ((0, 0), (0, 127)))

    out = dgcnn_head(pe_wide, po_wide, w1big, b1t, w2big, b2t,
                     w3s, b3l, w4l, b4l)                           # [B_pad, 128]
    return out[:num_graphs, 0:1]                                   # [B, 1]


# ---------------------------------- Main ------------------------------------

if __name__ == "__main__":
    key = jax.random.PRNGKey(0)
    kx, kp = jax.random.split(key)

    in_channels = 8
    nodes_per_graph = 12
    num_graphs = 2
    N = nodes_per_graph * num_graphs

    x = jax.random.normal(kx, (N, in_channels), jnp.float32)

    # Bidirectional ring inside each graph (no cross-graph edges).
    src_list, dst_list = [], []
    for g in range(num_graphs):
        off = g * nodes_per_graph
        for i in range(nodes_per_graph):
            a = off + i
            b = off + (i + 1) % nodes_per_graph
            src_list += [a, b]
            dst_list += [b, a]
    edge_index = jnp.array([src_list, dst_list], dtype=jnp.int32)   # [2, 48]
    batch = jnp.repeat(jnp.arange(num_graphs, dtype=jnp.int32), nodes_per_graph)

    params = init_params(kp, in_channels)

    fwd = jax.jit(dgcnn_forward,
                  static_argnames=("num_graphs", "max_nodes_per_graph", "k"))
    out = fwd(params, x, edge_index, batch, num_graphs=num_graphs,
              max_nodes_per_graph=nodes_per_graph)
    out = jax.block_until_ready(out)

    assert out.shape == (num_graphs, 1)
    assert bool(jnp.all(jnp.isfinite(out)))
    assert bool(jnp.all((out >= 0.0) & (out <= 1.0)))
    print("KERNEL_OK")
</pallas_src>

<mosaic_0001>
module attributes {stable_mosaic.version = 11 : i64} {
  func.func private @main(%arg0: i32) attributes {dimension_semantics = [#tpu.dimension_semantics<core_parallel>], iteration_bounds = array<i64: 2>, tpu.core_type = #tpu.core_type<sc_scalar_subcore>, window_params = []} {
    return
  }
}

module attributes {stable_mosaic.version = 11 : i64} {
  func.func private @main(%arg0: i32) attributes {dimension_semantics = [#tpu.dimension_semantics<core_parallel>], iteration_bounds = array<i64: 2>, tpu.core_type = #tpu.core_type<sc_scalar_subcore>, window_params = []} {
    return
  }
}

module attributes {stable_mosaic.version = 11 : i64} {
  func.func @_gcn_stack_kernel(%arg0: i32, %arg1: memref<1x128x128xf32, #tpu.memory_space<vmem>>, %arg2: memref<1x128x8xf32, #tpu.memory_space<vmem>>, %arg3: memref<8x32xf32, #tpu.memory_space<vmem>>, %arg4: memref<3x32x32xf32, #tpu.memory_space<vmem>>, %arg5: memref<4x1x32xf32, #tpu.memory_space<vmem>>, %arg6: memref<1x128x128xf32, #tpu.memory_space<vmem>>) attributes {dimension_semantics = [#tpu.dimension_semantics<parallel>], iteration_bounds = array<i64: 2>, scalar_prefetch = 0 : i64, scratch_operands = 0 : i64, tpu.core_type = #tpu.core_type<tc>, window_params = [{transform_indices = @transform_0, window_bounds = array<i64: 1, 128, 128>}, {transform_indices = @transform_1, window_bounds = array<i64: 1, 128, 8>}, {pipeline_mode = #tpu.pipeline_mode<synchronous>, transform_indices = @transform_2, window_bounds = array<i64: 8, 32>}, {pipeline_mode = #tpu.pipeline_mode<synchronous>, transform_indices = @transform_3, window_bounds = array<i64: 3, 32, 32>}, {pipeline_mode = #tpu.pipeline_mode<synchronous>, transform_indices = @transform_4, window_bounds = array<i64: 4, 1, 32>}, {transform_indices = @transform_5, window_bounds = array<i64: 1, 128, 128>}]} {
    %c0 = arith.constant 0 : index
    %c0_0 = arith.constant 0 : index
    %c0_1 = arith.constant 0 : index
    %0 = vector.load %arg1[%c0, %c0_0, %c0_1] : memref<1x128x128xf32, #tpu.memory_space<vmem>>, vector<1x128x128xf32>
    %1 = vector.shape_cast %0 : vector<1x128x128xf32> to vector<128x128xf32>
    %c0_2 = arith.constant 0 : index
    %c0_3 = arith.constant 0 : index
    %c0_4 = arith.constant 0 : index
    %2 = vector.load %arg2[%c0_2, %c0_3, %c0_4] : memref<1x128x8xf32, #tpu.memory_space<vmem>>, vector<1x128x8xf32>
    %3 = vector.shape_cast %2 : vector<1x128x8xf32> to vector<128x8xf32>
    %cst = arith.constant dense<0.000000e+00> : vector<128x8xf32>
    %4 = tpu.matmul %1, %3, %cst {dimension_numbers = #tpu.dot_dimension_numbers<[1], [0], [0], [1], [0, 0, 1, 1], [], []>} : vector<128x128xf32>, vector<128x8xf32>, vector<128x8xf32> -> vector<128x8xf32>
    %c0_5 = arith.constant 0 : index
    %c0_6 = arith.constant 0 : index
    %5 = vector.load %arg3[%c0_5, %c0_6] : memref<8x32xf32, #tpu.memory_space<vmem>>, vector<8x32xf32>
    %cst_7 = arith.constant dense<0.000000e+00> : vector<128x32xf32>
    %6 = tpu.matmul %4, %5, %cst_7 {dimension_numbers = #tpu.dot_dimension_numbers<[1], [0], [0], [1], [0, 0, 1, 1], [], []>} : vector<128x8xf32>, vector<8x32xf32>, vector<128x32xf32> -> vector<128x32xf32>
    %c0_8 = arith.constant 0 : index
    %c0_9 = arith.constant 0 : index
    %c0_10 = arith.constant 0 : index
    %7 = vector.load %arg5[%c0_8, %c0_9, %c0_10] : memref<4x1x32xf32, #tpu.memory_space<vmem>>, vector<1x1x32xf32>
    %8 = vector.shape_cast %7 : vector<1x1x32xf32> to vector<1x32xf32>
    %9 = vector.broadcast %8 : vector<1x32xf32> to vector<128x32xf32>
    %10 = arith.addf %6, %9 : vector<128x32xf32>
    %11 = math.tanh %10 : vector<128x32xf32>
    %c0_11 = arith.constant 0 : index
    %c0_12 = arith.constant 0 : index
    %c0_13 = arith.constant 0 : index
    %12 = vector.load %arg4[%c0_11, %c0_12, %c0_13] : memref<3x32x32xf32, #tpu.memory_space<vmem>>, vector<1x32x32xf32>
    %13 = vector.shape_cast %12 : vector<1x32x32xf32> to vector<32x32xf32>
    %cst_14 = arith.constant dense<0.000000e+00> : vector<128x32xf32>
    %14 = tpu.matmul %11, %13, %cst_14 {dimension_numbers = #tpu.dot_dimension_numbers<[1], [0], [0], [1], [0, 0, 1, 1], [], []>} : vector<128x32xf32>, vector<32x32xf32>, vector<128x32xf32> -> vector<128x32xf32>
    %cst_15 = arith.constant dense<0.000000e+00> : vector<128x32xf32>
    %15 = tpu.matmul %1, %14, %cst_15 {dimension_numbers = #tpu.dot_dimension_numbers<[1], [0], [0], [1], [0, 0, 1, 1], [], []>} : vector<128x128xf32>, vector<128x32xf32>, vector<128x32xf32> -> vector<128x32xf32>
    %c1 = arith.constant 1 : index
    %c0_16 = arith.constant 0 : index
    %c0_17 = arith.constant 0 : index
    %16 = vector.load %arg5[%c1, %c0_16, %c0_17] : memref<4x1x32xf32, #tpu.memory_space<vmem>>, vector<1x1x32xf32>
    %17 = vector.shape_cast %16 : vector<1x1x32xf32> to vector<1x32xf32>
    %18 = vector.broadcast %17 : vector<1x32xf32> to vector<128x32xf32>
    %19 = arith.addf %15, %18 : vector<128x32xf32>
    %20 = math.tanh %19 : vector<128x32xf32>
    %c1_18 = arith.constant 1 : index
    %c0_19 = arith.constant 0 : index
    %c0_20 = arith.constant 0 : index
    %21 = vector.load %arg4[%c1_18, %c0_19, %c0_20] : memref<3x32x32xf32, #tpu.memory_space<vmem>>, vector<1x32x32xf32>
    %22 = vector.shape_cast %21 : vector<1x32x32xf32> to vector<32x32xf32>
    %cst_21 = arith.constant dense<0.000000e+00> : vector<128x32xf32>
    %23 = tpu.matmul %20, %22, %cst_21 {dimension_numbers = #tpu.dot_dimension_numbers<[1], [0], [0], [1], [0, 0, 1, 1], [], []>} : vector<128x32xf32>, vector<32x32xf32>, vector<128x32xf32> -> vector<128x32xf32>
    %cst_22 = arith.constant dense<0.000000e+00> : vector<128x32xf32>
    %24 = tpu.matmul %1, %23, %cst_22 {dimension_numbers = #tpu.dot_dimension_numbers<[1], [0], [0], [1], [0, 0, 1, 1], [], []>} : vector<128x128xf32>, vector<128x32xf32>, vector<128x32xf32> -> vector<128x32xf32>
    %c2 = arith.constant 2 : index
    %c0_23 = arith.constant 0 : index
    %c0_24 = arith.constant 0 : index
    %25 = vector.load %arg5[%c2, %c0_23, %c0_24] : memref<4x1x32xf32, #tpu.memory_space<vmem>>, vector<1x1x32xf32>
    %26 = vector.shape_cast %25 : vector<1x1x32xf32> to vector<1x32xf32>
    %27 = vector.broadcast %26 : vector<1x32xf32> to vector<128x32xf32>
    %28 = arith.addf %24, %27 : vector<128x32xf32>
    %29 = math.tanh %28 : vector<128x32xf32>
    %c2_25 = arith.constant 2 : index
    %c0_26 = arith.constant 0 : index
    %c0_27 = arith.constant 0 : index
    %30 = vector.load %arg4[%c2_25, %c0_26, %c0_27] : memref<3x32x32xf32, #tpu.memory_space<vmem>>, vector<1x32x32xf32>
    %31 = vector.shape_cast %30 : vector<1x32x32xf32> to vector<32x32xf32>
    %cst_28 = arith.constant dense<0.000000e+00> : vector<128x32xf32>
    %32 = tpu.matmul %29, %31, %cst_28 {dimension_numbers = #tpu.dot_dimension_numbers<[1], [0], [0], [1], [0, 0, 1, 1], [], []>} : vector<128x32xf32>, vector<32x32xf32>, vector<128x32xf32> -> vector<128x32xf32>
    %cst_29 = arith.constant dense<0.000000e+00> : vector<128x32xf32>
    %33 = tpu.matmul %1, %32, %cst_29 {dimension_numbers = #tpu.dot_dimension_numbers<[1], [0], [0], [1], [0, 0, 1, 1], [], []>} : vector<128x128xf32>, vector<128x32xf32>, vector<128x32xf32> -> vector<128x32xf32>
    %c3 = arith.constant 3 : index
    %c0_30 = arith.constant 0 : index
    %c0_31 = arith.constant 0 : index
    %34 = vector.load %arg5[%c3, %c0_30, %c0_31] : memref<4x1x32xf32, #tpu.memory_space<vmem>>, vector<1x1x32xf32>
    %35 = vector.shape_cast %34 : vector<1x1x32xf32> to vector<1x32xf32>
    %36 = vector.broadcast %35 : vector<1x32xf32> to vector<128x32xf32>
    %37 = arith.addf %33, %36 : vector<128x32xf32>
    %38 = math.tanh %37 : vector<128x32xf32>
    %39 = tpu.concatenate %11, %20, %29, %38 in 1 : vector<128x32xf32>, vector<128x32xf32>, vector<128x32xf32>, vector<128x32xf32> -> vector<128x128xf32>
    %c0_32 = arith.constant 0 : index
    %c0_33 = arith.constant 0 : index
    %c0_34 = arith.constant 0 : index
    %40 = vector.load %arg6[%c0_32, %c0_33, %c0_34] : memref<1x128x128xf32, #tpu.memory_space<vmem>>, vector<1x128x128xf32>
    %41 = vector.shape_cast %40 : vector<1x128x128xf32> to vector<128x128xf32>
    %42 = vector.shape_cast %39 : vector<128x128xf32> to vector<1x128x128xf32>
    tpu.vector_store %arg6[%c0_32, %c0_33, %c0_34], %42 {strides = array<i32>} : memref<1x128x128xf32, #tpu.memory_space<vmem>>, vector<1x128x128xf32>,
    return
  }
  func.func @transform_0(%arg0: i32) -> (i32, i32, i32) {
    %c0_i32 = arith.constant 0 : i32
    %c0_i32_0 = arith.constant 0 : i32
    %c0_i32_1 = arith.constant 0 : i32
    return %arg0, %c0_i32, %c0_i32_0 : i32, i32, i32
  }
  func.func @transform_1(%arg0: i32) -> (i32, i32, i32) {
    %c0_i32 = arith.constant 0 : i32
    %c0_i32_0 = arith.constant 0 : i32
    %c0_i32_1 = arith.constant 0 : i32
    return %arg0, %c0_i32, %c0_i32_0 : i32, i32, i32
  }
  func.func @transform_2(%arg0: i32) -> (i32, i32) {
    %c0_i32 = arith.constant 0 : i32
    %c0_i32_0 = arith.constant 0 : i32
    %c0_i32_1 = arith.constant 0 : i32
    return %c0_i32, %c0_i32_0 : i32, i32
  }
  func.func @transform_3(%arg0: i32) -> (i32, i32, i32) {
    %c0_i32 = arith.constant 0 : i32
    %c0_i32_0 = arith.constant 0 : i32
    %c0_i32_1 = arith.constant 0 : i32
    %c0_i32_2 = arith.constant 0 : i32
    return %c0_i32, %c0_i32_0, %c0_i32_1 : i32, i32, i32
  }
  func.func @transform_4(%arg0: i32) -> (i32, i32, i32) {
    %c0_i32 = arith.constant 0 : i32
    %c0_i32_0 = arith.constant 0 : i32
    %c0_i32_1 = arith.constant 0 : i32
    %c0_i32_2 = arith.constant 0 : i32
    return %c0_i32, %c0_i32_0, %c0_i32_1 : i32, i32, i32
  }
  func.func @transform_5(%arg0: i32) -> (i32, i32, i32) {
    %c0_i32 = arith.constant 0 : i32
    %c0_i32_0 = arith.constant 0 : i32
    %c0_i32_1 = arith.constant 0 : i32
    return %arg0, %c0_i32, %c0_i32_0 : i32, i32, i32
  }
}

module attributes {stable_mosaic.version = 11 : i64} {
  func.func @_head_kernel(%arg0: i32, %arg1: memref<8x1920xf32, #tpu.memory_space<vmem>>, %arg2: memref<8x1920xf32, #tpu.memory_space<vmem>>, %arg3: memref<1920x240xf32, #tpu.memory_space<vmem>>, %arg4: memref<1x240xf32, #tpu.memory_space<vmem>>, %arg5: memref<240x352xf32, #tpu.memory_space<vmem>>, %arg6: memref<1x352xf32, #tpu.memory_space<vmem>>, %arg7: memref<352x128xf32, #tpu.memory_space<vmem>>, %arg8: memref<1x128xf32, #tpu.memory_space<vmem>>, %arg9: memref<128x128xf32, #tpu.memory_space<vmem>>, %arg10: memref<1x128xf32, #tpu.memory_space<vmem>>, %arg11: memref<8x128xf32, #tpu.memory_space<vmem>>) attributes {dimension_semantics = [#tpu.dimension_semantics<parallel>], iteration_bounds = array<i64: 1>, scalar_prefetch = 0 : i64, scratch_operands = 0 : i64, tpu.core_type = #tpu.core_type<tc>, window_params = [{transform_indices = @transform_0, window_bounds = array<i64: 8, 1920>}, {transform_indices = @transform_1, window_bounds = array<i64: 8, 1920>}, {pipeline_mode = #tpu.pipeline_mode<synchronous>, transform_indices = @transform_2, window_bounds = array<i64: 1920, 240>}, {pipeline_mode = #tpu.pipeline_mode<synchronous>, transform_indices = @transform_3, window_bounds = array<i64: 1, 240>}, {pipeline_mode = #tpu.pipeline_mode<synchronous>, transform_indices = @transform_4, window_bounds = array<i64: 240, 352>}, {pipeline_mode = #tpu.pipeline_mode<synchronous>, transform_indices = @transform_5, window_bounds = array<i64: 1, 352>}, {pipeline_mode = #tpu.pipeline_mode<synchronous>, transform_indices = @transform_6, window_bounds = array<i64: 352, 128>}, {pipeline_mode = #tpu.pipeline_mode<synchronous>, transform_indices = @transform_7, window_bounds = array<i64: 1, 128>}, {pipeline_mode = #tpu.pipeline_mode<synchronous>, transform_indices = @transform_8, window_bounds = array<i64: 128, 128>}, {pipeline_mode = #tpu.pipeline_mode<synchronous>, transform_indices = @transform_9, window_bounds = array<i64: 1, 128>}, {transform_indices = @transform_10, window_bounds = array<i64: 8, 128>}]} {
    %c0 = arith.constant 0 : index
    %c0_0 = arith.constant 0 : index
    %0 = vector.load %arg3[%c0, %c0_0] : memref<1920x240xf32, #tpu.memory_space<vmem>>, vector<1920x240xf32>
    %c0_1 = arith.constant 0 : index
    %c0_2 = arith.constant 0 : index
    %1 = vector.load %arg4[%c0_1, %c0_2] : memref<1x240xf32, #tpu.memory_space<vmem>>, vector<1x240xf32>
    %c0_3 = arith.constant 0 : index
    %c0_4 = arith.constant 0 : index
    %2 = vector.load %arg1[%c0_3, %c0_4] : memref<8x1920xf32, #tpu.memory_space<vmem>>, vector<8x1920xf32>
    %cst = arith.constant dense<0.000000e+00> : vector<8x240xf32>
    %3 = tpu.matmul %2, %0, %cst {dimension_numbers = #tpu.dot_dimension_numbers<[1], [0], [0], [1], [0, 0, 1, 1], [], []>} : vector<8x1920xf32>, vector<1920x240xf32>, vector<8x240xf32> -> vector<8x240xf32>
    %4 = vector.broadcast %1 : vector<1x240xf32> to vector<8x240xf32>
    %5 = arith.addf %3, %4 : vector<8x240xf32>
    %c0_5 = arith.constant 0 : index
    %c0_6 = arith.constant 0 : index
    %6 = vector.load %arg2[%c0_5, %c0_6] : memref<8x1920xf32, #tpu.memory_space<vmem>>, vector<8x1920xf32>
    %cst_7 = arith.constant dense<0.000000e+00> : vector<8x240xf32>
    %7 = tpu.matmul %6, %0, %cst_7 {dimension_numbers = #tpu.dot_dimension_numbers<[1], [0], [0], [1], [0, 0, 1, 1], [], []>} : vector<8x1920xf32>, vector<1920x240xf32>, vector<8x240xf32> -> vector<8x240xf32>
    %8 = vector.broadcast %1 : vector<1x240xf32> to vector<8x240xf32>
    %9 = arith.addf %7, %8 : vector<8x240xf32>
    %10 = arith.maximumf %5, %9 : vector<8x240xf32>
    %cst_8 = arith.constant 0.000000e+00 : f32
    %11 = vector.broadcast %cst_8 : f32 to vector<8x240xf32>
    %12 = arith.maximumf %10, %11 : vector<8x240xf32>
    %c0_9 = arith.constant 0 : index
    %c0_10 = arith.constant 0 : index
    %13 = vector.load %arg5[%c0_9, %c0_10] : memref<240x352xf32, #tpu.memory_space<vmem>>, vector<240x352xf32>
    %cst_11 = arith.constant dense<0.000000e+00> : vector<8x352xf32>
    %14 = tpu.matmul %12, %13, %cst_11 {dimension_numbers = #tpu.dot_dimension_numbers<[1], [0], [0], [1], [0, 0, 1, 1], [], []>} : vector<8x240xf32>, vector<240x352xf32>, vector<8x352xf32> -> vector<8x352xf32>
    %c0_12 = arith.constant 0 : index
    %c0_13 = arith.constant 0 : index
    %15 = vector.load %arg6[%c0_12, %c0_13] : memref<1x352xf32, #tpu.memory_space<vmem>>, vector<1x352xf32>
    %16 = vector.broadcast %15 : vector<1x352xf32> to vector<8x352xf32>
    %17 = arith.addf %14, %16 : vector<8x352xf32>
    %cst_14 = arith.constant 0.000000e+00 : f32
    %18 = vector.broadcast %cst_14 : f32 to vector<8x352xf32>
    %19 = arith.maximumf %17, %18 : vector<8x352xf32>
    %c0_15 = arith.constant 0 : index
    %c0_16 = arith.constant 0 : index
    %20 = vector.load %arg7[%c0_15, %c0_16] : memref<352x128xf32, #tpu.memory_space<vmem>>, vector<352x128xf32>
    %cst_17 = arith.constant dense<0.000000e+00> : vector<8x128xf32>
    %21 = tpu.matmul %19, %20, %cst_17 {dimension_numbers = #tpu.dot_dimension_numbers<[1], [0], [0], [1], [0, 0, 1, 1], [], []>} : vector<8x352xf32>, vector<352x128xf32>, vector<8x128xf32> -> vector<8x128xf32>
    %c0_18 = arith.constant 0 : index
    %c0_19 = arith.constant 0 : index
    %22 = vector.load %arg8[%c0_18, %c0_19] : memref<1x128xf32, #tpu.memory_space<vmem>>, vector<1x128xf32>
    %23 = vector.broadcast %22 : vector<1x128xf32> to vector<8x128xf32>
    %24 = arith.addf %21, %23 : vector<8x128xf32>
    %cst_20 = arith.constant 0.000000e+00 : f32
    %25 = vector.broadcast %cst_20 : f32 to vector<8x128xf32>
    %26 = arith.maximumf %24, %25 : vector<8x128xf32>
    %c0_21 = arith.constant 0 : index
    %c0_22 = arith.constant 0 : index
    %27 = vector.load %arg9[%c0_21, %c0_22] : memref<128x128xf32, #tpu.memory_space<vmem>>, vector<128x128xf32>
    %cst_23 = arith.constant dense<0.000000e+00> : vector<8x128xf32>
    %28 = tpu.matmul %26, %27, %cst_23 {dimension_numbers = #tpu.dot_dimension_numbers<[1], [0], [0], [1], [0, 0, 1, 1], [], []>} : vector<8x128xf32>, vector<128x128xf32>, vector<8x128xf32> -> vector<8x128xf32>
    %c0_24 = arith.constant 0 : index
    %c0_25 = arith.constant 0 : index
    %29 = vector.load %arg10[%c0_24, %c0_25] : memref<1x128xf32, #tpu.memory_space<vmem>>, vector<1x128xf32>
    %30 = vector.broadcast %29 : vector<1x128xf32> to vector<8x128xf32>
    %31 = arith.addf %28, %30 : vector<8x128xf32>
    %32 = arith.negf %31 : vector<8x128xf32>
    %33 = math.exp %32 : vector<8x128xf32>
    %cst_26 = arith.constant 1.000000e+00 : f32
    %34 = vector.broadcast %cst_26 : f32 to vector<8x128xf32>
    %35 = arith.addf %34, %33 : vector<8x128xf32>
    %36 = arith.divf %34, %35 : vector<8x128xf32>
    %c0_27 = arith.constant 0 : index
    %c0_28 = arith.constant 0 : index
    %37 = vector.load %arg11[%c0_27, %c0_28] : memref<8x128xf32, #tpu.memory_space<vmem>>, vector<8x128xf32>
    tpu.vector_store %arg11[%c0_27, %c0_28], %36 {strides = array<i32>} : memref<8x128xf32, #tpu.memory_space<vmem>>, vector<8x128xf32>,
    return
  }
  func.func @transform_0(%arg0: i32) -> (i32, i32) {
    %c0_i32 = arith.constant 0 : i32
    %c0_i32_0 = arith.constant 0 : i32
    return %arg0, %c0_i32 : i32, i32
  }
  func.func @transform_1(%arg0: i32) -> (i32, i32) {
    %c0_i32 = arith.constant 0 : i32
    %c0_i32_0 = arith.constant 0 : i32
    return %arg0, %c0_i32 : i32, i32
  }
  func.func @transform_2(%arg0: i32) -> (i32, i32) {
    %c0_i32 = arith.constant 0 : i32
    %c0_i32_0 = arith.constant 0 : i32
    %c0_i32_1 = arith.constant 0 : i32
    return %c0_i32, %c0_i32_0 : i32, i32
  }
  func.func @transform_3(%arg0: i32) -> (i32, i32) {
    %c0_i32 = arith.constant 0 : i32
    %c0_i32_0 = arith.constant 0 : i32
    %c0_i32_1 = arith.constant 0 : i32
    return %c0_i32, %c0_i32_0 : i32, i32
  }
  func.func @transform_4(%arg0: i32) -> (i32, i32) {
    %c0_i32 = arith.constant 0 : i32
    %c0_i32_0 = arith.constant 0 : i32
    %c0_i32_1 = arith.constant 0 : i32
    return %c0_i32, %c0_i32_0 : i32, i32
  }
  func.func @transform_5(%arg0: i32) -> (i32, i32) {
    %c0_i32 = arith.constant 0 : i32
    %c0_i32_0 = arith.constant 0 : i32
    %c0_i32_1 = arith.constant 0 : i32
    return %c0_i32, %c0_i32_0 : i32, i32
  }
  func.func @transform_6(%arg0: i32) -> (i32, i32) {
    %c0_i32 = arith.constant 0 : i32
    %c0_i32_0 = arith.constant 0 : i32
    %c0_i32_1 = arith.constant 0 : i32
    return %c0_i32, %c0_i32_0 : i32, i32
  }
  func.func @transform_7(%arg0: i32) -> (i32, i32) {
    %c0_i32 = arith.constant 0 : i32
    %c0_i32_0 = arith.constant 0 : i32
    %c0_i32_1 = arith.constant 0 : i32
    return %c0_i32, %c0_i32_0 : i32, i32
  }
  func.func @transform_8(%arg0: i32) -> (i32, i32) {
    %c0_i32 = arith.constant 0 : i32
    %c0_i32_0 = arith.constant 0 : i32
    %c0_i32_1 = arith.constant 0 : i32
    return %c0_i32, %c0_i32_0 : i32, i32
  }
  func.func @transform_9(%arg0: i32) -> (i32, i32) {
    %c0_i32 = arith.constant 0 : i32
    %c0_i32_0 = arith.constant 0 : i32
    %c0_i32_1 = arith.constant 0 : i32
    return %c0_i32, %c0_i32_0 : i32, i32
  }
  func.func @transform_10(%arg0: i32) -> (i32, i32) {
    %c0_i32 = arith.constant 0 : i32
    %c0_i32_0 = arith.constant 0 : i32
    return %arg0, %c0_i32 : i32, i32
  }
}

</mosaic_0001>

<bundles_post_ra>
// kernel: dgcnn_forward.2
= control target key start
LH: loop header
LB: loop body
LE: loop exit
PB: predicated region body
PF: predicated region fallthrough
CT: control target
= control target key end

     0   :  { %s2906_s18 = smov 0   ;;  %s3458_s0 = inlined_call_operand.vmem [shape: f32[2,128,128], index: 0, kind: input, shape index: {}]   ;;  %s3459_s1 = inlined_call_operand.vmem [shape: f32[2,128,8], index: 1, kind: input, shape index: {}]   ;;  %s3460_s2 = inlined_call_operand.vmem [shape: f32[8,32], index: 2, kind: input, shape index: {}]   ;;  %s3461_s3 = inlined_call_operand.vmem [shape: f32[3,32,32], index: 3, kind: input, shape index: {}]   ;;  %s3462_s4 = inlined_call_operand.vmem [shape: f32[4,1,32], index: 4, kind: input, shape index: {}]   ;;  %s3463_s5 = inlined_call_operand.vmem [shape: f32[2,128,128], index: 5, kind: output, shape index: {}]  }
   0x1 LB: > { %s2034_s19 = sadd.s32 4294967295, %s2871_s18   ;;  %p2038_p0 = scmp.ge.s32.totalorder %s2871_s18, 1  ;;  %s2871_s18 = sphi %s2906_s18, %s15_s18  }
   0x2   : > { %p197_p1 = scmp.lt.s32.totalorder %s2871_s18, 3 }
   0x4   : > { %p198_p2 = pnand %p2038_p0, %p197_p1 }
   0x5   : > { %p230_p3 = scmp.lt.s32.totalorder (!%p198_p2), %s2034_s19, 1  ;;  %s2873_s27 = smov (!%p198_p2), 32  }
   0x6   : > { %201 = sbr.rel (%p198_p2) target bundleno = 1994 (0x7ca), region = 40  ;;  %s2874_s13 = smov (!%p198_p2), 64  }
   0xb   : > { %s3465_s19 = smov (!%p230_p3, %s2034_s19), 1  ;;  %v422_v32 = vld [vmem:[%s3460_s2] sm:$0xff]  ;;  %v643_v33 = vld [vmem:[%s3461_s3 + $0x18] sm:$0xff]  ;;  %vm430_vm0 = vcmask 64512   ;;  %v642_v36 = vld [vmem:[%s3461_s3 + $0x10] sm:$0xff]  ;;  %vm644_vm1 = vcmask 261120  }
   0xc   : > { %s2914_s20 = sshll.u32 %s3465_s19, 7  ;;  %2390 = vmatprep.subr.mxu1 %v422_v32  ;;  %v641_v51 = vld [vmem:[%s3461_s3 + $0x8] sm:$0xff]  ;;  %v640_v52 = vld [vmem:[%s3461_s3] sm:$0xff]  ;;  %vm1917_vm2 = vcmask 523264   ;;  %vm1934_vm3 = vcmask 785408  }
   0xd   : > { %s2920_s23 = scalar_lea.vmem %s3459_s1, %s2914_s20  ;;  %s2929_s26 = scalar_lea.vmem %s3458_s0, %s2914_s20  ;;  %2391 = vmatpush3.msra.mxu1 %v422_v32  ;;  %v2045_v53 = vld [vmem:[%s3462_s4] ss:$0 sm:$0xff] }
   0xe   : > { %v276_v0 = vld [vmem:[%s2920_s23 + $0x78] sm:$0xff]  ;;  %v275_v1 = vld [vmem:[%s2920_s23 + $0x70] sm:$0xff]  ;;  %v274_v2 = vld [vmem:[%s2920_s23 + $0x68] sm:$0xff]  ;;  %2416 = vmatprep.subr.mxu1 %v643_v33  ;;  %s3361_s19 = scalar_lea.vmem %s3463_s5, %s2914_s20 }
   0xf   : > { %2334 = vmatprep.subr.mxu0 %v276_v0  ;;  %v273_v3 = vld [vmem:[%s2920_s23 + $0x60] sm:$0xff]  ;;  %v272_v5 = vld [vmem:[%s2920_s23 + $0x58] sm:$0xff]  ;;  %v271_v6 = vld [vmem:[%s2920_s23 + $0x50] sm:$0xff] }
  0x10   : > { %2335 = vmatpush3.msra.mxu0 %v276_v0  ;;  %v2933_v4 = vld [vmem:[%s2929_s26] sm:$0xff]  ;;  %v270_v7 = vld [vmem:[%s2920_s23 + $0x48] sm:$0xff]  ;;  %v268_v9 = vld [vmem:[%s2920_s23 + $0x38] sm:$0xff] }
  0x11   : > { %2336 = vmatprep.subr.mxu0 %v275_v1  ;;  %2366 = vmatprep.mubr.f32.mxu0 %v2933_v4  ;;  %v269_v8 = vld [vmem:[%s2920_s23 + $0x40] sm:$0xff]  ;;  %v267_v10 = vld [vmem:[%s2920_s23 + $0x30] sm:$0xff]  ;;  %v266_v11 = vld [vmem:[%s2920_s23 + $0x28] sm:$0xff] }
  0x12   : > { %2337 = vmatpush3.msra.mxu0 %v275_v1  ;;  %v265_v12 = vld [vmem:[%s2920_s23 + $0x20] sm:$0xff]  ;;  %v264_v13 = vld [vmem:[%s2920_s23 + $0x18] sm:$0xff]  ;;  %v263_v14 = vld [vmem:[%s2920_s23 + $0x10] sm:$0xff] }
  0x13   : > { %2338 = vmatprep.subr.mxu0 %v274_v2  ;;  %v262_v15 = vld [vmem:[%s2920_s23 + $0x8] sm:$0xff]  ;;  %v261_v16 = vld [vmem:[%s2920_s23] sm:$0xff]  ;;  %v2952_v18 = vld [vmem:[%s2929_s26 + $0x10] sm:$0xff] }
  0x14   : > { %2339 = vmatpush3.msra.mxu0 %v274_v2  ;;  %v2949_v17 = vld [vmem:[%s2929_s26 + $0x8] sm:$0xff]  ;;  %v2957_v19 = vld [vmem:[%s2929_s26 + $0x18] sm:$0xff]  ;;  %v2960_v20 = vld [vmem:[%s2929_s26 + $0x20] sm:$0xff] }
  0x15   : > { %2340 = vmatprep.subr.mxu0 %v273_v3  ;;  %v2965_v21 = vld [vmem:[%s2929_s26 + $0x28] sm:$0xff]  ;;  %v2968_v22 = vld [vmem:[%s2929_s26 + $0x30] sm:$0xff]  ;;  %v2973_v23 = vld [vmem:[%s2929_s26 + $0x38] sm:$0xff] }
  0x16   : > { %2341 = vmatpush3.msra.mxu0 %v273_v3  ;;  %v2976_v24 = vld [vmem:[%s2929_s26 + $0x40] sm:$0xff]  ;;  %v2981_v25 = vld [vmem:[%s2929_s26 + $0x48] sm:$0xff]  ;;  %v2984_v26 = vld [vmem:[%s2929_s26 + $0x50] sm:$0xff] }
  0x17   : > { %2342 = vmatprep.subr.mxu0 %v272_v5  ;;  %v2989_v27 = vld [vmem:[%s2929_s26 + $0x58] sm:$0xff]  ;;  %v2992_v28 = vld [vmem:[%s2929_s26 + $0x60] sm:$0xff]  ;;  %v2997_v29 = vld [vmem:[%s2929_s26 + $0x68] sm:$0xff] }
  0x18   : > { %2343 = vmatpush3.msra.mxu0 %v272_v5  ;;  %v3000_v30 = vld [vmem:[%s2929_s26 + $0x70] sm:$0xff]  ;;  %v3005_v31 = vld [vmem:[%s2929_s26 + $0x78] sm:$0xff] }
  0x19   : > { %2344 = vmatprep.subr.mxu0 %v271_v6 }
  0x1a   : > { %2345 = vmatpush3.msra.mxu0 %v271_v6 }
  0x1b   : > { %2346 = vmatprep.subr.mxu0 %v270_v7 }
  0x1c   : > { %2347 = vmatpush3.msra.mxu0 %v270_v7 }
  0x1d   : > { %2348 = vmatprep.subr.mxu0 %v269_v8 }
  0x1e   : > { %2349 = vmatpush3.msra.mxu0 %v269_v8 }
  0x1f   : > { %2350 = vmatprep.subr.mxu0 %v268_v9 }
  0x20   : > { %2351 = vmatpush3.msra.mxu0 %v268_v9 }
  0x21   : > { %2352 = vmatprep.subr.mxu0 %v267_v10 }
  0x22   : > { %2353 = vmatpush3.msra.mxu0 %v267_v10 }
  0x23   : > { %2354 = vmatprep.subr.mxu0 %v266_v11 }
  0x24   : > { %2355 = vmatpush3.msra.mxu0 %v266_v11 }
  0x25   : > { %2356 = vmatprep.subr.mxu0 %v265_v12 }
  0x26   : > { %2357 = vmatpush3.msra.mxu0 %v265_v12 }
  0x27   : > { %2358 = vmatprep.subr.mxu0 %v264_v13 }
  0x28   : > { %2359 = vmatpush3.msra.mxu0 %v264_v13 }
  0x29   : > { %2360 = vmatprep.subr.mxu0 %v263_v14 }
  0x2a   : > { %2361 = vmatpush3.msra.mxu0 %v263_v14 }
  0x2b   : > { %2362 = vmatprep.subr.mxu0 %v262_v15 }
  0x2c   : > { %2363 = vmatpush3.msra.mxu0 %v262_v15 }
  0x2d   : > { %2364 = vmatprep.subr.mxu0 %v261_v16 }
  0x2e   : > { %2365 = vmatpush3.msra.mxu0 %v261_v16 }
  0x2f   : > { %2367 = vmatmul.mubr.f32.vlgmr.msra.gmra.mxu0 %v2949_v17 }
  0x30   : > { %2369 = vmatprep.mubr.f32.mxu0 %v2952_v18 }
  0x33   : > { %2370 = vmatmul.mubr.f32.gmra.mxu0 %v2957_v19 }
  0x34   : > { %2372 = vmatprep.mubr.f32.mxu0 %v2960_v20 }
  0x37   : > { %2373 = vmatmul.mubr.f32.gmra.mxu0 %v2965_v21 }
  0x38   : > { %2375 = vmatprep.mubr.f32.mxu0 %v2968_v22 }
  0x3b   : > { %2376 = vmatmul.mubr.f32.gmra.mxu0 %v2973_v23 }
  0x3c   : > { %2378 = vmatprep.mubr.f32.mxu0 %v2976_v24 }
  0x3f   : > { %2379 = vmatmul.mubr.f32.gmra.mxu0 %v2981_v25 }
  0x40   : > { %2381 = vmatprep.mubr.f32.mxu0 %v2984_v26 }
  0x43   : > { %2382 = vmatmul.mubr.f32.gmra.mxu0 %v2989_v27 }
  0x44   : > { %2384 = vmatprep.mubr.f32.mxu0 %v2992_v28 }
  0x47   : > { %2385 = vmatmul.mubr.f32.gmra.mxu0 %v2997_v29 }
  0x48   : > { %2387 = vmatprep.mubr.f32.mxu0 %v3000_v30 }
  0x4b   : > { %2388 = vmatmul.mubr.f32.gmra.mxu0 %v3005_v31 }
  0x4c   : > { %2480 = vmatprep.mubr.f32.mxu0 %v2933_v4 }
  0xef   : > { %v2368_v34 = vpop.f32.mrf.mxu0 }
  0xf1   : > { %v343_v35 = vpop.f32.mrf.mxu0 }
  0xf2   : > { %2392 = vmatprep.mubr.msk.f32.mxu1 %vm430_vm0, %v343_v35 }
  0xf3   : > { %v2371_v37 = vpop.f32.mrf.mxu0  ;;  %2393 = vmatmul.mubr.msk.f32.vlgmr.msra.gmra.mxu1 %vm430_vm0, %v2368_v34 }
  0xf4   : > { %2417 = vmatpush3.msra.mxu1 %v643_v33 }
  0xf5   : > { %v353_v38 = vpop.f32.mrf.mxu0  ;;  %2418 = vmatprep.subr.mxu1 %v642_v36 }
  0xf6   : > { %2395 = vmatprep.mubr.msk.f32.mxu1 %vm430_vm0, %v353_v38  ;;  %2419 = vmatpush3.msra.mxu1 %v642_v36 }
  0xf7   : > { %v2374_v39 = vpop.f32.mrf.mxu0  ;;  %2396 = vmatmul.mubr.msk.f32.gmra.mxu1 %vm430_vm0, %v2371_v37  ;;  %2420 = vmatprep.subr.mxu1 %v641_v51 }
  0xf8   : > { %2421 = vmatpush3.msra.mxu1 %v641_v51 }
  0xf9   : > { %v363_v40 = vpop.f32.mrf.mxu0  ;;  %2422 = vmatprep.subr.mxu1 %v640_v52 }
  0xfa   : > { %2398 = vmatprep.mubr.msk.f32.mxu1 %vm430_vm0, %v363_v40  ;;  %2423 = vmatpush3.msra.mxu1 %v640_v52 }
  0xfb   : > { %v2377_v41 = vpop.f32.mrf.mxu0  ;;  %2399 = vmatmul.mubr.msk.f32.gmra.mxu1 %vm430_vm0, %v2374_v39 }
  0xfd   : > { %v373_v42 = vpop.f32.mrf.mxu0 }
  0xfe   : > { %2401 = vmatprep.mubr.msk.f32.mxu1 %vm430_vm0, %v373_v42 }
  0xff   : > { %v2380_v43 = vpop.f32.mrf.mxu0  ;;  %2402 = vmatmul.mubr.msk.f32.gmra.mxu1 %vm430_vm0, %v2377_v41 }
 0x101   : > { %v383_v44 = vpop.f32.mrf.mxu0 }
 0x102   : > { %2404 = vmatprep.mubr.msk.f32.mxu1 %vm430_vm0, %v383_v44 }
 0x103   : > { %v2383_v45 = vpop.f32.mrf.mxu0  ;;  %2405 = vmatmul.mubr.msk.f32.gmra.mxu1 %vm430_vm0, %v2380_v43 }
 0x105   : > { %v393_v46 = vpop.f32.mrf.mxu0 }
 0x106   : > { %2407 = vmatprep.mubr.msk.f32.mxu1 %vm430_vm0, %v393_v46 }
 0x107   : > { %v2386_v47 = vpop.f32.mrf.mxu0  ;;  %2408 = vmatmul.mubr.msk.f32.gmra.mxu1 %vm430_vm0, %v2383_v45 }
 0x109   : > { %v403_v48 = vpop.f32.mrf.mxu0 }
 0x10a   : > { %2410 = vmatprep.mubr.msk.f32.mxu1 %vm430_vm0, %v403_v48 }
 0x10b   : > { %v2389_v49 = vpop.f32.mrf.mxu0  ;;  %2411 = vmatmul.mubr.msk.f32.gmra.mxu1 %vm430_vm0, %v2386_v47 }
 0x10d   : > { %v413_v50 = vpop.f32.mrf.mxu0 }
 0x10e   : > { %2413 = vmatprep.mubr.msk.f32.mxu1 %vm430_vm0, %v413_v50 }
 0x10f   : > { %2414 = vmatmul.mubr.msk.f32.gmra.mxu1 %vm430_vm0, %v2389_v49 }
 0x1b3   : > { %v2394_v54 = vpop.f32.mrf.mxu1 }
 0x1b4   : > { %v551_v55 = vadd.f32 %v2394_v54, %v2045_v53  ;;  %v2083_v54 = vld [vmem:[%s3461_s3 + $0x38] sm:$0xff] }
 0x1b5   : > { %v545_v56 = vpop.f32.mrf.mxu1  ;;  %2504 = vmatprep.subr.mxu1 %v2083_v54 }
 0x1b6   : > { %v546_v57 = vadd.f32 %v2045_v53, %v545_v56 }
 0x1b7   : > { %v2397_v58 = vpop.f32.mrf.mxu1 }
 0x1b8   : > { %2723 = vtanh.f32 %v546_v57  ;;  %v561_v59 = vadd.f32 %v2397_v58, %v2045_v53 }
 0x1b9   : > { %2725 = vtanh.f32 %v551_v55  ;;  %v555_v60 = vpop.f32.mrf.mxu1  ;;  %v2082_v55 = vld [vmem:[%s3461_s3 + $0x30] sm:$0xff] }
 0x1ba   : > { %v556_v61 = vadd.f32 %v2045_v53, %v555_v60 }
 0x1bb   : > { %v2400_v62 = vpop.f32.mrf.mxu1 }
 0x1bc   : > { %2727 = vtanh.f32 %v556_v61  ;;  %v571_v63 = vadd.f32 %v2400_v62, %v2045_v53 }
 0x1bd   : > { %2729 = vtanh.f32 %v561_v59  ;;  %v565_v0 = vpop.f32.mrf.mxu1 }
 0x1be   : > { %v566_v1 = vadd.f32 %v2045_v53, %v565_v0 }
 0x1bf   : > { %v2403_v2 = vpop.f32.mrf.mxu1 }
 0x1c0   : > { %2731 = vtanh.f32 %v566_v1  ;;  %v581_v3 = vadd.f32 %v2403_v2, %v2045_v53 }
 0x1c1   : > { %2733 = vtanh.f32 %v571_v63  ;;  %v575_v5 = vpop.f32.mrf.mxu1 }
 0x1c2   : > { %v576_v6 = vadd.f32 %v2045_v53, %v575_v5 }
 0x1c3   : > { %v2406_v7 = vpop.f32.mrf.mxu1 }
 0x1c4   : > { %2735 = vtanh.f32 %v576_v6  ;;  %v591_v9 = vadd.f32 %v2406_v7, %v2045_v53 }
 0x1c5   : > { %v3043_v8 = vpop.eup %2723  ;;  %2737 = vtanh.f32 %v581_v3  ;;  %v585_v10 = vpop.f32.mrf.mxu1 }
 0x1c6   : > { %v3045_v11 = vpop.eup %2725  ;;  %v586_v12 = vadd.f32 %v2045_v53, %v585_v10  ;;  %2424 = vmatprep.mubr.msk.f32.mxu1 %vm644_vm1, %v3043_v8  ;;  %v2081_v10 = vld [vmem:[%s3461_s3 + $0x28] sm:$0xff] }
 0x1c7   : > { %v2409_v13 = vpop.f32.mrf.mxu1  ;;  %2425 = vmatmul.mubr.msk.f32.vlgmr.msra.gmra.mxu1 %vm644_vm1, %v3045_v11 }
 0x1c8   : > { %2739 = vtanh.f32 %v586_v12  ;;  %v601_v15 = vadd.f32 %v2409_v13, %v2045_v53  ;;  %2505 = vmatpush3.msra.mxu1 %v2083_v54  ;;  %v2080_v12 = vld [vmem:[%s3461_s3 + $0x20] sm:$0xff] }
 0x1c9   : > { %v3051_v14 = vpop.eup %2727  ;;  %2741 = vtanh.f32 %v591_v9  ;;  %v595_v16 = vpop.f32.mrf.mxu1  ;;  %2506 = vmatprep.subr.mxu1 %v2082_v55  ;;  %v3138_v13 = vld [vmem:[%s3462_s4 + $0x1] ss:$0 sm:$0xff] }
 0x1ca   : > { %v3053_v32 = vpop.eup %2729  ;;  %v596_v33 = vadd.f32 %v2045_v53, %v595_v16  ;;  %2427 = vmatprep.mubr.msk.f32.mxu1 %vm644_vm1, %v3051_v14  ;;  %2507 = vmatpush3.msra.mxu1 %v2082_v55 }
 0x1cb   : > { %v2412_v34 = vpop.f32.mrf.mxu1  ;;  %2428 = vmatmul.mubr.msk.f32.gmra.mxu1 %vm644_vm1, %v3053_v32  ;;  %2508 = vmatprep.subr.mxu1 %v2081_v10 }
 0x1cc   : > { %2743 = vtanh.f32 %v596_v33  ;;  %v611_v36 = vadd.f32 %v2412_v34, %v2045_v53  ;;  %2509 = vmatpush3.msra.mxu1 %v2081_v10 }
 0x1cd   : > { %v3059_v35 = vpop.eup %2731  ;;  %2745 = vtanh.f32 %v601_v15  ;;  %v605_v37 = vpop.f32.mrf.mxu1  ;;  %2510 = vmatprep.subr.mxu1 %v2080_v12 }
 0x1ce   : > { %v3061_v38 = vpop.eup %2733  ;;  %v606_v39 = vadd.f32 %v2045_v53, %v605_v37  ;;  %2430 = vmatprep.mubr.msk.f32.mxu1 %vm644_vm1, %v3059_v35  ;;  %2511 = vmatpush3.msra.mxu1 %v2080_v12 }
 0x1cf   : > { %v2415_v40 = vpop.f32.mrf.mxu1  ;;  %2431 = vmatmul.mubr.msk.f32.gmra.mxu1 %vm644_vm1, %v3061_v38 }
 0x1d0   : > { %2747 = vtanh.f32 %v606_v39  ;;  %v621_v42 = vadd.f32 %v2415_v40, %v2045_v53 }
 0x1d1   : > { %v3067_v41 = vpop.eup %2735  ;;  %2749 = vtanh.f32 %v611_v36  ;;  %v615_v43 = vpop.f32.mrf.mxu1 }
 0x1d2   : > { %v3069_v44 = vpop.eup %2737  ;;  %v616_v45 = vadd.f32 %v2045_v53, %v615_v43  ;;  %2433 = vmatprep.mubr.msk.f32.mxu1 %vm644_vm1, %v3067_v41 }
 0x1d3   : > { %2434 = vmatmul.mubr.msk.f32.gmra.mxu1 %vm644_vm1, %v3069_v44 }
 0x1d4   : > { %2751 = vtanh.f32 %v616_v45 }
 0x1d5   : > { %v3075_v46 = vpop.eup %2739  ;;  %2753 = vtanh.f32 %v621_v42 }
 0x1d6   : > { %v3077_v47 = vpop.eup %2741  ;;  %2436 = vmatprep.mubr.msk.f32.mxu1 %vm644_vm1, %v3075_v46 }
 0x1d7   : > { %2437 = vmatmul.mubr.msk.f32.gmra.mxu1 %vm644_vm1, %v3077_v47 }
 0x1d9   : > { %v3083_v48 = vpop.eup %2743 }
 0x1da   : > { %v3085_v49 = vpop.eup %2745  ;;  %2439 = vmatprep.mubr.msk.f32.mxu1 %vm644_vm1, %v3083_v48 }
 0x1db   : > { %2440 = vmatmul.mubr.msk.f32.gmra.mxu1 %vm644_vm1, %v3085_v49 }
 0x1dd   : > { %v3091_v50 = vpop.eup %2747 }
 0x1de   : > { %v3093_v51 = vpop.eup %2749  ;;  %2442 = vmatprep.mubr.msk.f32.mxu1 %vm644_vm1, %v3091_v50 }
 0x1df   : > { %2443 = vmatmul.mubr.msk.f32.gmra.mxu1 %vm644_vm1, %v3093_v51 }
 0x1e1   : > { %v3099_v52 = vpop.eup %2751 }
 0x1e2   : > { %v3101_v53 = vpop.eup %2753  ;;  %2445 = vmatprep.mubr.msk.f32.mxu1 %vm644_vm1, %v3099_v52 }
 0x1e3   : > { %2446 = vmatmul.mubr.msk.f32.gmra.mxu1 %vm644_vm1, %v3101_v53 }
 0x287   : > { %v2426_v56 = vpop.f32.mrf.mxu1 }
 0x289   : > { %v759_v57 = vpop.f32.mrf.mxu1 }
 0x28b   : > { %v2429_v58 = vpop.f32.mrf.mxu1 }
 0x28d   : > { %v769_v59 = vpop.f32.mrf.mxu1 }
 0x28f   : > { %v2432_v60 = vpop.f32.mrf.mxu1 }
 0x291   : > { %v779_v61 = vpop.f32.mrf.mxu1 }
 0x293   : > { %v2435_v62 = vpop.f32.mrf.mxu1 }
 0x295   : > { %v789_v63 = vpop.f32.mrf.mxu1 }
 0x297   : > { %v2438_v0 = vpop.f32.mrf.mxu1 }
 0x299   : > { %v799_v1 = vpop.f32.mrf.mxu1 }
 0x29b   : > { %v2441_v2 = vpop.f32.mrf.mxu1 }
 0x29d   : > { %v809_v3 = vpop.f32.mrf.mxu1 }
 0x29f   : > { %v2444_v5 = vpop.f32.mrf.mxu1 }
 0x2a1   : > { %v819_v6 = vpop.f32.mrf.mxu1 }
 0x2a3   : > { %v2447_v7 = vpop.f32.mrf.mxu1 }
 0x2a4   : > { %2448 = vmatprep.subr.mxu0 %v2447_v7 }
 0x2a5   : > { %v829_v9 = vpop.f32.mrf.mxu1  ;;  %2449 = vmatpush3.msra.mxu0 %v2447_v7 }
 0x2a6   : > { %2450 = vmatprep.subr.mxu0 %v829_v9 }
 0x2a7   : > { %2451 = vmatpush3.msra.mxu0 %v829_v9 }
 0x2a8   : > { %2452 = vmatprep.subr.mxu0 %v2444_v5 }
 0x2a9   : > { %2453 = vmatpush3.msra.mxu0 %v2444_v5 }
 0x2aa   : > { %2454 = vmatprep.subr.mxu0 %v819_v6 }
 0x2ab   : > { %2455 = vmatpush3.msra.mxu0 %v819_v6 }
 0x2ac   : > { %2456 = vmatprep.subr.mxu0 %v2441_v2 }
 0x2ad   : > { %2457 = vmatpush3.msra.mxu0 %v2441_v2 }
 0x2ae   : > { %2458 = vmatprep.subr.mxu0 %v809_v3 }
 0x2af   : > { %2459 = vmatpush3.msra.mxu0 %v809_v3 }
 0x2b0   : > { %2460 = vmatprep.subr.mxu0 %v2438_v0 }
 0x2b1   : > { %2461 = vmatpush3.msra.mxu0 %v2438_v0 }
 0x2b2   : > { %2462 = vmatprep.subr.mxu0 %v799_v1 }
 0x2b3   : > { %2463 = vmatpush3.msra.mxu0 %v799_v1 }
 0x2b4   : > { %2464 = vmatprep.subr.mxu0 %v2435_v62 }
 0x2b5   : > { %2465 = vmatpush3.msra.mxu0 %v2435_v62 }
 0x2b6   : > { %2466 = vmatprep.subr.mxu0 %v789_v63 }
 0x2b7   : > { %2467 = vmatpush3.msra.mxu0 %v789_v63 }
 0x2b8   : > { %2468 = vmatprep.subr.mxu0 %v2432_v60 }
 0x2b9   : > { %2469 = vmatpush3.msra.mxu0 %v2432_v60 }
 0x2ba   : > { %2470 = vmatprep.subr.mxu0 %v779_v61 }
 0x2bb   : > { %2471 = vmatpush3.msra.mxu0 %v779_v61 }
 0x2bc   : > { %2472 = vmatprep.subr.mxu0 %v2429_v58 }
 0x2bd   : > { %2473 = vmatpush3.msra.mxu0 %v2429_v58 }
 0x2be   : > { %2474 = vmatprep.subr.mxu0 %v769_v59 }
 0x2bf   : > { %2475 = vmatpush3.msra.mxu0 %v769_v59 }
 0x2c0   : > { %2476 = vmatprep.subr.mxu0 %v2426_v56 }
 0x2c1   : > { %2477 = vmatpush3.msra.mxu0 %v2426_v56 }
 0x2c2   : > { %2478 = vmatprep.subr.mxu0 %v759_v57 }
 0x2c3   : > { %2479 = vmatpush3.msra.mxu0 %v759_v57 }
 0x2c4   : > { %2481 = vmatmul.mubr.f32.vlgmr.msra.gmra.mxu0 %v2949_v17 }
 0x2c5   : > { %2483 = vmatprep.mubr.f32.mxu0 %v2952_v18 }
 0x2c8   : > { %2484 = vmatmul.mubr.f32.gmra.mxu0 %v2957_v19 }
 0x2c9   : > { %2486 = vmatprep.mubr.f32.mxu0 %v2960_v20 }
 0x2cc   : > { %2487 = vmatmul.mubr.f32.gmra.mxu0 %v2965_v21 }
 0x2cd   : > { %2489 = vmatprep.mubr.f32.mxu0 %v2968_v22 }
 0x2d0   : > { %2490 = vmatmul.mubr.f32.gmra.mxu0 %v2973_v23 }
 0x2d1   : > { %2492 = vmatprep.mubr.f32.mxu0 %v2976_v24 }
 0x2d4   : > { %2493 = vmatmul.mubr.f32.gmra.mxu0 %v2981_v25 }
 0x2d5   : > { %2495 = vmatprep.mubr.f32.mxu0 %v2984_v26 }
 0x2d8   : > { %2496 = vmatmul.mubr.f32.gmra.mxu0 %v2989_v27 }
 0x2d9   : > { %2498 = vmatprep.mubr.f32.mxu0 %v2992_v28 }
 0x2dc   : > { %2499 = vmatmul.mubr.f32.gmra.mxu0 %v2997_v29 }
 0x2dd   : > { %2501 = vmatprep.mubr.f32.mxu0 %v3000_v30 }
 0x2e0   : > { %2502 = vmatmul.mubr.f32.gmra.mxu0 %v3005_v31 }
 0x2e1   : > { %2568 = vmatprep.mubr.f32.mxu0 %v2933_v4 }
 0x384   : > { %v2482_v15 = vpop.f32.mrf.mxu0 }
 0x385   : > { %v918_v16 = vadd.f32 %v2482_v15, %v3138_v13 }
 0x386   : > { %v912_v33 = vpop.f32.mrf.mxu0 }
 0x387   : > { %2755 = vtanh.f32 %v918_v16  ;;  %v913_v34 = vadd.f32 %v3138_v13, %v912_v33 }
 0x388   : > { %v2485_v36 = vpop.f32.mrf.mxu0 }
 0x389   : > { %2757 = vtanh.f32 %v913_v34  ;;  %v928_v37 = vadd.f32 %v2485_v36, %v3138_v13 }
 0x38a   : > { %v922_v39 = vpop.f32.mrf.mxu0 }
 0x38b   : > { %2759 = vtanh.f32 %v928_v37  ;;  %v923_v40 = vadd.f32 %v3138_v13, %v922_v39 }
 0x38c   : > { %v2488_v42 = vpop.f32.mrf.mxu0 }
 0x38d   : > { %2761 = vtanh.f32 %v923_v40  ;;  %v938_v43 = vadd.f32 %v2488_v42, %v3138_v13 }
 0x38e   : > { %v932_v45 = vpop.f32.mrf.mxu0 }
 0x38f   : > { %v933_v54 = vadd.f32 %v3138_v13, %v932_v45 }
 0x390   : > { %v2491_v55 = vpop.f32.mrf.mxu0 }
 0x391   : > { %2763 = vtanh.f32 %v933_v54  ;;  %v948_v56 = vadd.f32 %v2491_v55, %v3138_v13 }
 0x392   : > { %2765 = vtanh.f32 %v938_v43  ;;  %v942_v57 = vpop.f32.mrf.mxu0 }
 0x393   : > { %v943_v58 = vadd.f32 %v3138_v13, %v942_v57 }
 0x394   : > { %v2756_v59 = vpop.eup %2755  ;;  %v2494_v60 = vpop.f32.mrf.mxu0 }
 0x395   : > { %2767 = vtanh.f32 %v943_v58  ;;  %1743 = vrot.lane.b32.xlu0 %v2756_v59, %s2873_s27  ;;  %v958_v62 = vadd.f32 %v2494_v60, %v3138_v13  ;;  %v2104_v60 = vld [vmem:[%s3461_s3 + $0x50] sm:$0xff] }
 0x396   : > { %v2758_v61 = vpop.eup %2757  ;;  %2769 = vtanh.f32 %v948_v56  ;;  %v952_v63 = vpop.f32.mrf.mxu0 }
 0x397   : > { %v953_v0 = vadd.f32 %v3138_v13, %v952_v63  ;;  %2512 = vmatprep.mubr.msk.f32.mxu1 %vm644_vm1, %v2758_v61 }
 0x398   : > { %v2760_v1 = vpop.eup %2759  ;;  %v2497_v2 = vpop.f32.mrf.mxu0  ;;  %2513 = vmatmul.mubr.msk.f32.vlgmr.msra.gmra.mxu1 %vm644_vm1, %v2756_v59  ;;  %v2105_v59 = vld [vmem:[%s3461_s3 + $0x58] sm:$0xff] }
 0x399   : > { %2771 = vtanh.f32 %v953_v0  ;;  %1747 = vrot.lane.b32.xlu1 %v2760_v1, %s2873_s27  ;;  %1741 = vrot.lane.b32.xlu0 %v2758_v61, %s2873_s27  ;;  %v968_v5 = vadd.f32 %v2497_v2, %v3138_v13 }
 0x39a   : > { %v2762_v3 = vpop.eup %2761  ;;  %2773 = vtanh.f32 %v958_v62  ;;  %v962_v6 = vpop.f32.mrf.mxu0  ;;  %2592 = vmatprep.subr.mxu1 %v2105_v59 }
 0x39b   : > { %v963_v7 = vadd.f32 %v3138_v13, %v962_v6  ;;  %2515 = vmatprep.mubr.msk.f32.mxu1 %vm644_vm1, %v2762_v3  ;;  %2593 = vmatpush3.msra.mxu1 %v2105_v59 }
 0x39c   : > { %v2500_v9 = vpop.f32.mrf.mxu0  ;;  %2516 = vmatmul.mubr.msk.f32.gmra.mxu1 %vm644_vm1, %v2760_v1  ;;  %2594 = vmatprep.subr.mxu1 %v2104_v60 }
 0x39d   : > { %2775 = vtanh.f32 %v963_v7  ;;  %1745 = vrot.lane.b32.xlu1 %v2762_v3, %s2873_s27  ;;  %v978_v12 = vadd.f32 %v2500_v9, %v3138_v13  ;;  %2595 = vmatpush3.msra.mxu1 %v2104_v60 }
 0x39e   : > { %v2764_v10 = vpop.eup %2763  ;;  %2777 = vtanh.f32 %v968_v5  ;;  %v972_v15 = vpop.f32.mrf.mxu0 }
 0x39f   : > { %v2766_v16 = vpop.eup %2765  ;;  %v973_v33 = vadd.f32 %v3138_v13, %v972_v15  ;;  %1749 = vrot.lane.b32.xlu0 %v2764_v10, %s2873_s27  ;;  %2518 = vmatprep.mubr.msk.f32.mxu1 %vm644_vm1, %v2764_v10 }
 0x3a0   : > { %v2503_v34 = vpop.f32.mrf.mxu0  ;;  %2519 = vmatmul.mubr.msk.f32.gmra.mxu1 %vm644_vm1, %v2766_v16 }
 0x3a1   : > { %2779 = vtanh.f32 %v973_v33  ;;  %1751 = vrot.lane.b32.xlu1 %v2766_v16, %s2873_s27  ;;  %v988_v37 = vadd.f32 %v2503_v34, %v3138_v13 }
 0x3a2   : > { %v2768_v36 = vpop.eup %2767  ;;  %2781 = vtanh.f32 %v978_v12  ;;  %v982_v39 = vpop.f32.mrf.mxu0 }
 0x3a3   : > { %v2770_v40 = vpop.eup %2769  ;;  %v983_v42 = vadd.f32 %v3138_v13, %v982_v39  ;;  %1753 = vrot.lane.b32.xlu0 %v2768_v36, %s2873_s27  ;;  %2521 = vmatprep.mubr.msk.f32.mxu1 %vm644_vm1, %v2768_v36 }
 0x3a4   : > { %2522 = vmatmul.mubr.msk.f32.gmra.mxu1 %vm644_vm1, %v2770_v40 }
 0x3a5   : > { %2783 = vtanh.f32 %v983_v42  ;;  %1755 = vrot.lane.b32.xlu1 %v2770_v40, %s2873_s27 }
 0x3a6   : > { %v2772_v43 = vpop.eup %2771  ;;  %2785 = vtanh.f32 %v988_v37 }
 0x3a7   : > { %v2774_v45 = vpop.eup %2773  ;;  %1757 = vrot.lane.b32.xlu0 %v2772_v43, %s2873_s27  ;;  %2524 = vmatprep.mubr.msk.f32.mxu1 %vm644_vm1, %v2772_v43 }
 0x3a8   : > { %2525 = vmatmul.mubr.msk.f32.gmra.mxu1 %vm644_vm1, %v2774_v45 }
 0x3a9   : > { %1759 = vrot.lane.b32.xlu1 %v2774_v45, %s2873_s27 }
 0x3aa   : > { %v2776_v13 = vpop.eup %2775 }
 0x3ab   : > { %v2778_v54 = vpop.eup %2777  ;;  %1761 = vrot.lane.b32.xlu0 %v2776_v13, %s2873_s27  ;;  %2527 = vmatprep.mubr.msk.f32.mxu1 %vm644_vm1, %v2776_v13 }
 0x3ac   : > { %2528 = vmatmul.mubr.msk.f32.gmra.mxu1 %vm644_vm1, %v2778_v54 }
 0x3ad   : > { %1763 = vrot.lane.b32.xlu1 %v2778_v54, %s2873_s27 }
 0x3ae   : > { %v2780_v55 = vpop.eup %2779 }
 0x3af   : > { %v2782_v56 = vpop.eup %2781  ;;  %1765 = vrot.lane.b32.xlu0 %v2780_v55, %s2873_s27  ;;  %2530 = vmatprep.mubr.msk.f32.mxu1 %vm644_vm1, %v2780_v55 }
 0x3b0   : > { %2531 = vmatmul.mubr.msk.f32.gmra.mxu1 %vm644_vm1, %v2782_v56 }
 0x3b1   : > { %1767 = vrot.lane.b32.xlu1 %v2782_v56, %s2873_s27 }
 0x3b2   : > { %v2784_v57 = vpop.eup %2783 }
 0x3b3   : > { %v2786_v58 = vpop.eup %2785  ;;  %1769 = vrot.lane.b32.xlu0 %v2784_v57, %s2873_s27  ;;  %2533 = vmatprep.mubr.msk.f32.mxu1 %vm644_vm1, %v2784_v57 }
 0x3b4   : > { %2534 = vmatmul.mubr.msk.f32.gmra.mxu1 %vm644_vm1, %v2786_v58 }
 0x3b5   : > { %1771 = vrot.lane.b32.xlu1 %v2786_v58, %s2873_s27 }
 0x458   : > { %v2514_v61 = vpop.f32.mrf.mxu1 }
 0x45a   : > { %v1126_v62 = vpop.f32.mrf.mxu1 }
 0x45c   : > { %v2517_v63 = vpop.f32.mrf.mxu1 }
 0x45e   : > { %v1136_v0 = vpop.f32.mrf.mxu1 }
 0x460   : > { %v2520_v1 = vpop.f32.mrf.mxu1 }
 0x462   : > { %v1146_v2 = vpop.f32.mrf.mxu1 }
 0x464   : > { %v2523_v3 = vpop.f32.mrf.mxu1 }
 0x466   : > { %v1156_v5 = vpop.f32.mrf.mxu1 }
 0x468   : > { %v2526_v6 = vpop.f32.mrf.mxu1 }
 0x46a   : > { %v1166_v7 = vpop.f32.mrf.mxu1 }
 0x46c   : > { %v2529_v9 = vpop.f32.mrf.mxu1 }
 0x46e   : > { %v1176_v10 = vpop.f32.mrf.mxu1 }
 0x470   : > { %v2532_v12 = vpop.f32.mrf.mxu1 }
 0x472   : > { %v1186_v15 = vpop.f32.mrf.mxu1 }
 0x474   : > { %v2535_v16 = vpop.f32.mrf.mxu1 }
 0x475   : > { %2536 = vmatprep.subr.mxu0 %v2535_v16 }
 0x476   : > { %v1196_v33 = vpop.f32.mrf.mxu1  ;;  %2537 = vmatpush3.msra.mxu0 %v2535_v16 }
 0x477   : > { %2538 = vmatprep.subr.mxu0 %v1196_v33 }
 0x478   : > { %2539 = vmatpush3.msra.mxu0 %v1196_v33 }
 0x479   : > { %2540 = vmatprep.subr.mxu0 %v2532_v12 }
 0x47a   : > { %2541 = vmatpush3.msra.mxu0 %v2532_v12 }
 0x47b   : > { %2542 = vmatprep.subr.mxu0 %v1186_v15 }
 0x47c   : > { %2543 = vmatpush3.msra.mxu0 %v1186_v15 }
 0x47d   : > { %2544 = vmatprep.subr.mxu0 %v2529_v9 }
 0x47e   : > { %2545 = vmatpush3.msra.mxu0 %v2529_v9 }
 0x47f   : > { %2546 = vmatprep.subr.mxu0 %v1176_v10 }
 0x480   : > { %2547 = vmatpush3.msra.mxu0 %v1176_v10 }
 0x481   : > { %2548 = vmatprep.subr.mxu0 %v2526_v6 }
 0x482   : > { %2549 = vmatpush3.msra.mxu0 %v2526_v6 }
 0x483   : > { %2550 = vmatprep.subr.mxu0 %v1166_v7 }
 0x484   : > { %2551 = vmatpush3.msra.mxu0 %v1166_v7 }
 0x485   : > { %2552 = vmatprep.subr.mxu0 %v2523_v3 }
 0x486   : > { %2553 = vmatpush3.msra.mxu0 %v2523_v3 }
 0x487   : > { %2554 = vmatprep.subr.mxu0 %v1156_v5 }
 0x488   : > { %2555 = vmatpush3.msra.mxu0 %v1156_v5 }
 0x489   : > { %2556 = vmatprep.subr.mxu0 %v2520_v1 }
 0x48a   : > { %2557 = vmatpush3.msra.mxu0 %v2520_v1 }
 0x48b   : > { %2558 = vmatprep.subr.mxu0 %v1146_v2 }
 0x48c   : > { %2559 = vmatpush3.msra.mxu0 %v1146_v2 }
 0x48d   : > { %2560 = vmatprep.subr.mxu0 %v2517_v63 }
 0x48e   : > { %2561 = vmatpush3.msra.mxu0 %v2517_v63 }
 0x48f   : > { %2562 = vmatprep.subr.mxu0 %v1136_v0 }
 0x490   : > { %2563 = vmatpush3.msra.mxu0 %v1136_v0 }
 0x491   : > { %2564 = vmatprep.subr.mxu0 %v2514_v61 }
 0x492   : > { %2565 = vmatpush3.msra.mxu0 %v2514_v61 }
 0x493   : > { %2566 = vmatprep.subr.mxu0 %v1126_v62 }
 0x494   : > { %2567 = vmatpush3.msra.mxu0 %v1126_v62 }
 0x495   : > { %2569 = vmatmul.mubr.f32.vlgmr.msra.gmra.mxu0 %v2949_v17  ;;  %v2103_v17 = vld [vmem:[%s3461_s3 + $0x48] sm:$0xff] }
 0x496   : > { %2571 = vmatprep.mubr.f32.mxu0 %v2952_v18  ;;  %2596 = vmatprep.subr.mxu1 %v2103_v17  ;;  %v2102_v18 = vld [vmem:[%s3461_s3 + $0x40] sm:$0xff] }
 0x497   : > { %2597 = vmatpush3.msra.mxu1 %v2103_v17 }
 0x498   : > { %2598 = vmatprep.subr.mxu1 %v2102_v18 }
 0x499   : > { %2572 = vmatmul.mubr.f32.gmra.mxu0 %v2957_v19  ;;  %2599 = vmatpush3.msra.mxu1 %v2102_v18  ;;  %v3219_v19 = vld [vmem:[%s3462_s4 + $0x2] ss:$0 sm:$0xff] }
 0x49a   : > { %2574 = vmatprep.mubr.f32.mxu0 %v2960_v20 }
 0x49d   : > { %2575 = vmatmul.mubr.f32.gmra.mxu0 %v2965_v21 }
 0x49e   : > { %2577 = vmatprep.mubr.f32.mxu0 %v2968_v22 }
 0x4a1   : > { %2578 = vmatmul.mubr.f32.gmra.mxu0 %v2973_v23 }
 0x4a2   : > { %2580 = vmatprep.mubr.f32.mxu0 %v2976_v24 }
 0x4a5   : > { %2581 = vmatmul.mubr.f32.gmra.mxu0 %v2981_v25 }
 0x4a6   : > { %2583 = vmatprep.mubr.f32.mxu0 %v2984_v26 }
 0x4a9   : > { %2584 = vmatmul.mubr.f32.gmra.mxu0 %v2989_v27 }
 0x4aa   : > { %2586 = vmatprep.mubr.f32.mxu0 %v2992_v28 }
 0x4ad   : > { %2587 = vmatmul.mubr.f32.gmra.mxu0 %v2997_v29 }
 0x4ae   : > { %2589 = vmatprep.mubr.f32.mxu0 %v3000_v30 }
 0x4b1   : > { %2590 = vmatmul.mubr.f32.gmra.mxu0 %v3005_v31 }
 0x4b2   : > { %2656 = vmatprep.mubr.f32.mxu0 %v2933_v4 }
 0x555   : > { %v2570_v20 = vpop.f32.mrf.mxu0 }
 0x556   : > { %v1285_v4 = vadd.f32 %v2570_v20, %v3219_v19 }
 0x557   : > { %v1279_v21 = vpop.f32.mrf.mxu0 }
 0x558   : > { %2787 = vtanh.f32 %v1285_v4  ;;  %v1280_v22 = vadd.f32 %v3219_v19, %v1279_v21 }
 0x559   : > { %v2573_v23 = vpop.f32.mrf.mxu0 }
 0x55a   : > { %2789 = vtanh.f32 %v1280_v22  ;;  %v1295_v24 = vadd.f32 %v2573_v23, %v3219_v19 }
 0x55b   : > { %v1289_v25 = vpop.f32.mrf.mxu0 }
 0x55c   : > { %2791 = vtanh.f32 %v1295_v24  ;;  %v1290_v27 = vadd.f32 %v3219_v19, %v1289_v25 }
 0x55d   : > { %v2576_v28 = vpop.f32.mrf.mxu0 }
 0x55e   : > { %2793 = vtanh.f32 %v1290_v27  ;;  %v1305_v29 = vadd.f32 %v2576_v28, %v3219_v19 }
 0x55f   : > { %v1299_v30 = vpop.f32.mrf.mxu0 }
 0x560   : > { %2795 = vtanh.f32 %v1305_v29  ;;  %v1300_v31 = vadd.f32 %v3219_v19, %v1299_v30 }
 0x561   : > { %v2579_v34 = vpop.f32.mrf.mxu0 }
 0x562   : > { %2797 = vtanh.f32 %v1300_v31  ;;  %v1315_v36 = vadd.f32 %v2579_v34, %v3219_v19 }
 0x563   : > { %v1309_v37 = vpop.f32.mrf.mxu0 }
 0x564   : > { %2799 = vtanh.f32 %v1315_v36  ;;  %v1310_v39 = vadd.f32 %v3219_v19, %v1309_v37 }
 0x565   : > { %v2788_v40 = vpop.eup %2787  ;;  %v2582_v42 = vpop.f32.mrf.mxu0 }
 0x566   : > { %2801 = vtanh.f32 %v1310_v39  ;;  %v1325_v43 = vadd.f32 %v2582_v42, %v3219_v19  ;;  %1791 = vrot.lane.b32.xlu1 %v2788_v40, %s2874_s13  ;;  %v2852_v42 = vld [vmem:[%s2929_s26 + $0x58] sm:$0xff] }
 0x567   : > { %v2790_v45 = vpop.eup %2789  ;;  %v1319_v13 = vpop.f32.mrf.mxu0 }
 0x568   : > { %2803 = vtanh.f32 %v1325_v43  ;;  %v1320_v54 = vadd.f32 %v3219_v19, %v1319_v13  ;;  %1789 = vrot.lane.b32.xlu0 %v2790_v45, %s2874_s13  ;;  %2600 = vmatprep.mubr.msk.f32.mxu1 %vm644_vm1, %v2790_v45  ;;  %v2853_v43 = vld [vmem:[%s2929_s26 + $0x10] sm:$0xff]  ;;  %v2854_v45 = vld [vmem:[%s2929_s26 + $0x60] sm:$0xff]  ;;  %v2855_v13 = vld [vmem:[%s2929_s26 + $0x18] sm:$0xff] }
 0x569   : > { %v2792_v55 = vpop.eup %2791  ;;  %v2585_v56 = vpop.f32.mrf.mxu0  ;;  %2601 = vmatmul.mubr.msk.f32.vlgmr.msra.gmra.mxu1 %vm644_vm1, %v2788_v40  ;;  %v2851_v40 = vld [vmem:[%s2929_s26 + $0x8] sm:$0xff] }
 0x56a   : > { %2805 = vtanh.f32 %v1320_v54  ;;  %v1335_v57 = vadd.f32 %v2585_v56, %v3219_v19  ;;  %1795 = vrot.lane.b32.xlu1 %v2792_v55, %s2874_s13  ;;  %v2856_v54 = vld [vmem:[%s2929_s26 + $0x68] sm:$0xff]  ;;  %v2858_v56 = vld [vmem:[%s2929_s26 + $0x70] sm:$0xff] }
 0x56b   : > { %v2794_v58 = vpop.eup %2793  ;;  %v1329_v59 = vpop.f32.mrf.mxu0 }
 0x56c   : > { %2807 = vtanh.f32 %v1335_v57  ;;  %v1330_v60 = vadd.f32 %v3219_v19, %v1329_v59  ;;  %1793 = vrot.lane.b32.xlu0 %v2794_v58, %s2874_s13  ;;  %2603 = vmatprep.mubr.msk.f32.mxu1 %vm644_vm1, %v2794_v58  ;;  %v2859_v57 = vld [vmem:[%s2929_s26 + $0x28] sm:$0xff]  ;;  %v2860_v58 = vld [vmem:[%s2929_s26 + $0x78] sm:$0xff]  ;;  %v2861_v59 = vld [vmem:[%s2929_s26 + $0x30] sm:$0xff] }
 0x56d   : > { %v2796_v61 = vpop.eup %2795  ;;  %v2588_v62 = vpop.f32.mrf.mxu0  ;;  %2604 = vmatmul.mubr.msk.f32.gmra.mxu1 %vm644_vm1, %v2792_v55  ;;  %v2857_v55 = vld [vmem:[%s2929_s26 + $0x20] sm:$0xff] }
 0x56e   : > { %2809 = vtanh.f32 %v1330_v60  ;;  %v1345_v63 = vadd.f32 %v2588_v62, %v3219_v19  ;;  %1799 = vrot.lane.b32.xlu1 %v2796_v61, %s2874_s13  ;;  %v2862_v60 = vld [vmem:[%s2929_s26 + $0x38] sm:$0xff]  ;;  %v2864_v62 = vld [vmem:[%s2929_s26 + $0x48] sm:$0xff] }
 0x56f   : > { %v2798_v0 = vpop.eup %2797  ;;  %v1339_v1 = vpop.f32.mrf.mxu0 }
 0x570   : > { %2811 = vtanh.f32 %v1345_v63  ;;  %v1340_v2 = vadd.f32 %v3219_v19, %v1339_v1  ;;  %1797 = vrot.lane.b32.xlu0 %v2798_v0, %s2874_s13  ;;  %2606 = vmatprep.mubr.msk.f32.mxu1 %vm644_vm1, %v2798_v0  ;;  %v2123_v63 = vld [vmem:[%s3462_s4 + $0x3] ss:$0 sm:$0xff] }
 0x571   : > { %v2800_v3 = vpop.eup %2799  ;;  %v2591_v5 = vpop.f32.mrf.mxu0  ;;  %2607 = vmatmul.mubr.msk.f32.gmra.mxu1 %vm644_vm1, %v2796_v61  ;;  %v2863_v61 = vld [vmem:[%s2929_s26 + $0x40] sm:$0xff]  ;;  %s2875_s26 = smov 96  }
 0x572   : > { %2813 = vtanh.f32 %v1340_v2  ;;  %v1355_v6 = vadd.f32 %v2591_v5, %v3219_v19  ;;  %1803 = vrot.lane.b32.xlu1 %v2800_v3, %s2874_s13 }
 0x573   : > { %v2802_v7 = vpop.eup %2801  ;;  %v1349_v9 = vpop.f32.mrf.mxu0 }
 0x574   : > { %2815 = vtanh.f32 %v1355_v6  ;;  %v1350_v10 = vadd.f32 %v3219_v19, %v1349_v9  ;;  %1801 = vrot.lane.b32.xlu0 %v2802_v7, %s2874_s13  ;;  %2609 = vmatprep.mubr.msk.f32.mxu1 %vm644_vm1, %v2802_v7 }
 0x575   : > { %v2804_v12 = vpop.eup %2803  ;;  %2610 = vmatmul.mubr.msk.f32.gmra.mxu1 %vm644_vm1, %v2800_v3 }
 0x576   : > { %2817 = vtanh.f32 %v1350_v10  ;;  %1807 = vrot.lane.b32.xlu1 %v2804_v12, %s2874_s13 }
 0x577   : > { %v2806_v15 = vpop.eup %2805 }
 0x578   : > { %1805 = vrot.lane.b32.xlu0 %v2806_v15, %s2874_s13  ;;  %2612 = vmatprep.mubr.msk.f32.mxu1 %vm644_vm1, %v2806_v15 }
 0x579   : > { %v2808_v16 = vpop.eup %2807  ;;  %2613 = vmatmul.mubr.msk.f32.gmra.mxu1 %vm644_vm1, %v2804_v12 }
 0x57a   : > { %1811 = vrot.lane.b32.xlu1 %v2808_v16, %s2874_s13 }
 0x57b   : > { %v2810_v33 = vpop.eup %2809 }
 0x57c   : > { %1809 = vrot.lane.b32.xlu0 %v2810_v33, %s2874_s13  ;;  %2615 = vmatprep.mubr.msk.f32.mxu1 %vm644_vm1, %v2810_v33 }
 0x57d   : > { %v2812_v17 = vpop.eup %2811  ;;  %2616 = vmatmul.mubr.msk.f32.gmra.mxu1 %vm644_vm1, %v2808_v16 }
 0x57e   : > { %1815 = vrot.lane.b32.xlu1 %v2812_v17, %s2874_s13 }
 0x57f   : > { %v2814_v18 = vpop.eup %2813 }
 0x580   : > { %1813 = vrot.lane.b32.xlu0 %v2814_v18, %s2874_s13  ;;  %2618 = vmatprep.mubr.msk.f32.mxu1 %vm644_vm1, %v2814_v18 }
 0x581   : > { %v2816_v19 = vpop.eup %2815  ;;  %2619 = vmatmul.mubr.msk.f32.gmra.mxu1 %vm644_vm1, %v2812_v17 }
 0x582   : > { %1819 = vrot.lane.b32.xlu1 %v2816_v19, %s2874_s13 }
 0x583   : > { %v2818_v20 = vpop.eup %2817 }
 0x584   : > { %1817 = vrot.lane.b32.xlu0 %v2818_v20, %s2874_s13  ;;  %2621 = vmatprep.mubr.msk.f32.mxu1 %vm644_vm1, %v2818_v20 }
 0x585   : > { %2622 = vmatmul.mubr.msk.f32.gmra.mxu1 %vm644_vm1, %v2816_v19 }
 0x586   : > { %2671 = vmatprep.mubr.f32.mxu1 %v2984_v26 }
 0x629   : > { %v3270_v4 = vpop.f32.mrf.mxu1 }
 0x62b   : > { %v3272_v21 = vpop.f32.mrf.mxu1 }
 0x62d   : > { %v3274_v22 = vpop.f32.mrf.mxu1 }
 0x62f   : > { %v3276_v23 = vpop.f32.mrf.mxu1 }
 0x631   : > { %v2608_v24 = vpop.f32.mrf.mxu1 }
 0x633   : > { %v1513_v25 = vpop.f32.mrf.mxu1 }
 0x635   : > { %v2611_v27 = vpop.f32.mrf.mxu1 }
 0x637   : > { %v1523_v28 = vpop.f32.mrf.mxu1 }
 0x639   : > { %v2614_v29 = vpop.f32.mrf.mxu1 }
 0x63b   : > { %v1533_v30 = vpop.f32.mrf.mxu1 }
 0x63d   : > { %v2617_v31 = vpop.f32.mrf.mxu1 }
 0x63f   : > { %v1543_v34 = vpop.f32.mrf.mxu1 }
 0x641   : > { %v2620_v36 = vpop.f32.mrf.mxu1 }
 0x643   : > { %v1553_v37 = vpop.f32.mrf.mxu1 }
 0x645   : > { %v2623_v39 = vpop.f32.mrf.mxu1 }
 0x646   : > { %2624 = vmatprep.subr.mxu0 %v2623_v39  ;;  %2680 = vmatprep.subr.mxu1 %v2623_v39 }
 0x647   : > { %v1563_v26 = vpop.f32.mrf.mxu1  ;;  %2625 = vmatpush3.msra.mxu0 %v2623_v39  ;;  %2696 = vmatpush3.msra.mxu1 %v2623_v39 }
 0x648   : > { %2626 = vmatprep.subr.mxu0 %v1563_v26  ;;  %2681 = vmatprep.subr.mxu1 %v1563_v26 }
 0x649   : > { %2627 = vmatpush3.msra.mxu0 %v1563_v26  ;;  %2697 = vmatpush3.msra.mxu1 %v1563_v26 }
 0x64a   : > { %2628 = vmatprep.subr.mxu0 %v2620_v36  ;;  %2682 = vmatprep.subr.mxu1 %v2620_v36 }
 0x64b   : > { %2629 = vmatpush3.msra.mxu0 %v2620_v36  ;;  %2698 = vmatpush3.msra.mxu1 %v2620_v36 }
 0x64c   : > { %2630 = vmatprep.subr.mxu0 %v1553_v37  ;;  %2683 = vmatprep.subr.mxu1 %v1553_v37 }
 0x64d   : > { %2631 = vmatpush3.msra.mxu0 %v1553_v37  ;;  %2699 = vmatpush3.msra.mxu1 %v1553_v37 }
 0x64e   : > { %2632 = vmatprep.subr.mxu0 %v2617_v31  ;;  %2684 = vmatprep.subr.mxu1 %v2617_v31 }
 0x64f   : > { %2633 = vmatpush3.msra.mxu0 %v2617_v31  ;;  %2700 = vmatpush3.msra.mxu1 %v2617_v31 }
 0x650   : > { %2634 = vmatprep.subr.mxu0 %v1543_v34  ;;  %2685 = vmatprep.subr.mxu1 %v1543_v34 }
 0x651   : > { %2635 = vmatpush3.msra.mxu0 %v1543_v34  ;;  %2701 = vmatpush3.msra.mxu1 %v1543_v34 }
 0x652   : > { %2636 = vmatprep.subr.mxu0 %v2614_v29  ;;  %2686 = vmatprep.subr.mxu1 %v2614_v29 }
 0x653   : > { %2637 = vmatpush3.msra.mxu0 %v2614_v29  ;;  %2702 = vmatpush3.msra.mxu1 %v2614_v29 }
 0x654   : > { %2638 = vmatprep.subr.mxu0 %v1533_v30  ;;  %2687 = vmatprep.subr.mxu1 %v1533_v30 }
 0x655   : > { %2639 = vmatpush3.msra.mxu0 %v1533_v30  ;;  %2703 = vmatpush3.msra.mxu1 %v1533_v30 }
 0x656   : > { %2640 = vmatprep.subr.mxu0 %v2611_v27  ;;  %2688 = vmatprep.subr.mxu1 %v2611_v27 }
 0x657   : > { %2641 = vmatpush3.msra.mxu0 %v2611_v27  ;;  %2704 = vmatpush3.msra.mxu1 %v2611_v27 }
 0x658   : > { %2642 = vmatprep.subr.mxu0 %v1523_v28  ;;  %2689 = vmatprep.subr.mxu1 %v1523_v28 }
 0x659   : > { %2643 = vmatpush3.msra.mxu0 %v1523_v28  ;;  %2705 = vmatpush3.msra.mxu1 %v1523_v28 }
 0x65a   : > { %2644 = vmatprep.subr.mxu0 %v2608_v24  ;;  %2690 = vmatprep.subr.mxu1 %v2608_v24 }
 0x65b   : > { %2645 = vmatpush3.msra.mxu0 %v2608_v24  ;;  %2706 = vmatpush3.msra.mxu1 %v2608_v24 }
 0x65c   : > { %2646 = vmatprep.subr.mxu0 %v1513_v25  ;;  %2691 = vmatprep.subr.mxu1 %v1513_v25 }
 0x65d   : > { %2647 = vmatpush3.msra.mxu0 %v1513_v25  ;;  %2707 = vmatpush3.msra.mxu1 %v1513_v25 }
 0x65e   : > { %2648 = vmatprep.subr.mxu0 %v3274_v22  ;;  %2692 = vmatprep.subr.mxu1 %v3274_v22 }
 0x65f   : > { %2649 = vmatpush3.msra.mxu0 %v3274_v22  ;;  %2708 = vmatpush3.msra.mxu1 %v3274_v22 }
 0x660   : > { %2650 = vmatprep.subr.mxu0 %v3276_v23  ;;  %2693 = vmatprep.subr.mxu1 %v3276_v23 }
 0x661   : > { %2651 = vmatpush3.msra.mxu0 %v3276_v23  ;;  %2709 = vmatpush3.msra.mxu1 %v3276_v23 }
 0x662   : > { %2652 = vmatprep.subr.mxu0 %v3270_v4  ;;  %2694 = vmatprep.subr.mxu1 %v3270_v4 }
 0x663   : > { %2653 = vmatpush3.msra.mxu0 %v3270_v4  ;;  %2710 = vmatpush3.msra.mxu1 %v3270_v4 }
 0x664   : > { %2654 = vmatprep.subr.mxu0 %v3272_v21  ;;  %2695 = vmatprep.subr.mxu1 %v3272_v21 }
 0x665   : > { %2655 = vmatpush3.msra.mxu0 %v3272_v21  ;;  %2711 = vmatpush3.msra.mxu1 %v3272_v21 }
 0x666   : > { %2657 = vmatmul.mubr.f32.vlgmr.msra.gmra.mxu0 %v2851_v40  ;;  %2672 = vmatmul.mubr.f32.vlgmr.msra.gmra.mxu1 %v2852_v42 }
 0x667   : > { %2659 = vmatprep.mubr.f32.mxu0 %v2853_v43  ;;  %2674 = vmatprep.mubr.f32.mxu1 %v2854_v45 }
 0x66a   : > { %2660 = vmatmul.mubr.f32.gmra.mxu0 %v2855_v13  ;;  %2675 = vmatmul.mubr.f32.gmra.mxu1 %v2856_v54 }
 0x66b   : > { %2662 = vmatprep.mubr.f32.mxu0 %v2857_v55  ;;  %2677 = vmatprep.mubr.f32.mxu1 %v2858_v56 }
 0x66e   : > { %2663 = vmatmul.mubr.f32.gmra.mxu0 %v2859_v57  ;;  %2678 = vmatmul.mubr.f32.gmra.mxu1 %v2860_v58 }
 0x66f   : > { %2665 = vmatprep.mubr.f32.mxu0 %v2861_v59 }
 0x672   : > { %2666 = vmatmul.mubr.f32.gmra.mxu0 %v2862_v60 }
 0x673   : > { %2668 = vmatprep.mubr.f32.mxu0 %v2863_v61  ;;  %v1748_v61 = vpop.permute.xlu1 %1747 }
 0x676   : > { %2669 = vmatmul.mubr.f32.gmra.mxu0 %v2864_v62 }
 0x726   : > { %v2658_v0 = vpop.f32.mrf.mxu0  ;;  %v2673_v1 = vpop.f32.mrf.mxu1 }
 0x727   : > { %v1652_v2 = vadd.f32 %v2658_v0, %v2123_v63  ;;  %v1702_v3 = vadd.f32 %v2673_v1, %v2123_v63  ;;  %v1744_v0 = vpop.permute.xlu0 %1743  ;;  %v1746_v1 = vpop.permute.xlu1 %1745 }
 0x728   : > { %v1646_v5 = vpop.f32.mrf.mxu0  ;;  %v1696_v6 = vpop.f32.mrf.mxu1 }
 0x729   : > { %2819 = vtanh.f32 %v1652_v2  ;;  %v1647_v7 = vadd.f32 %v2123_v63, %v1646_v5  ;;  %v1697_v9 = vadd.f32 %v2123_v63, %v1696_v6 }
 0x72a   : > { %2821 = vtanh.f32 %v1702_v3  ;;  %v2661_v10 = vpop.f32.mrf.mxu0  ;;  %v2676_v15 = vpop.f32.mrf.mxu1 }
 0x72b   : > { %2823 = vtanh.f32 %v1647_v7  ;;  %v1662_v12 = vadd.f32 %v2661_v10, %v2123_v63  ;;  %v1712_v33 = vadd.f32 %v2676_v15, %v2123_v63  ;;  %v1742_v3 = vpop.permute.xlu0 %1741  ;;  %v3327_v5 = vpop.permute.xlu1 %1751 }
 0x72c   : > { %v1656_v16 = vpop.f32.mrf.mxu0  ;;  %2825 = vtanh.f32 %v1697_v9  ;;  %v1706_v19 = vpop.f32.mrf.mxu1 }
 0x72d   : > { %2827 = vtanh.f32 %v1662_v12  ;;  %v1657_v18 = vadd.f32 %v2123_v63, %v1656_v16  ;;  %v1707_v4 = vadd.f32 %v2123_v63, %v1706_v19 }
 0x72e   : > { %v2664_v17 = vpop.f32.mrf.mxu0  ;;  %2829 = vtanh.f32 %v1712_v33  ;;  %v2679_v26 = vpop.f32.mrf.mxu1 }
 0x72f   : > { %2831 = vtanh.f32 %v1657_v18  ;;  %v1672_v22 = vadd.f32 %v2664_v17, %v2123_v63  ;;  %v1722_v40 = vadd.f32 %v2679_v26, %v2123_v63  ;;  %v3329_v6 = vpop.permute.xlu0 %1749  ;;  %v3331_v7 = vpop.permute.xlu1 %1755  ;;  %v1902_v26 = vsel %vm644_vm1, %v3045_v11, %v1744_v0 }
 0x730   : > { %v1666_v20 = vpop.f32.mrf.mxu0  ;;  %2833 = vtanh.f32 %v1707_v4  ;;  %v1716_v13 = vpop.f32.mrf.mxu1 }
 0x731   : > { %v1667_v25 = vadd.f32 %v2123_v63, %v1666_v20  ;;  %2835 = vtanh.f32 %v1672_v22  ;;  %v1717_v55 = vadd.f32 %v2123_v63, %v1716_v13 }
 0x732   : > { %v2667_v21 = vpop.f32.mrf.mxu0 }
 0x733   : > { %v1682_v28 = vadd.f32 %v2667_v21, %v2123_v63  ;;  %2837 = vtanh.f32 %v1667_v25  ;;  %v3333_v9 = vpop.permute.xlu0 %1753  ;;  %v3335_v10 = vpop.permute.xlu1 %1759 }
 0x734   : > { %v1676_v23 = vpop.f32.mrf.mxu0 }
 0x735   : > { %v1677_v31 = vadd.f32 %v2123_v63, %v1676_v23  ;;  %2839 = vtanh.f32 %v1682_v28 }
 0x736   : > { %v2820_v24 = vpop.eup %2819  ;;  %v2670_v30 = vpop.f32.mrf.mxu0 }
 0x737   : > { %v2822_v27 = vpop.eup %2821  ;;  %1855 = vrot.lane.b32.xlu1 %v2820_v24, %s2875_s26  ;;  %v1692_v36 = vadd.f32 %v2670_v30, %v2123_v63  ;;  %2841 = vtanh.f32 %v1677_v31  ;;  %v3337_v12 = vpop.permute.xlu0 %1757 }
 0x738   : > { %v2824_v29 = vpop.eup %2823  ;;  %v1686_v39 = vpop.f32.mrf.mxu0 }
 0x739   : > { %1853 = vrot.lane.b32.xlu0 %v2824_v29, %s2875_s26  ;;  %v2826_v34 = vpop.eup %2825  ;;  %2843 = vtanh.f32 %v1692_v36  ;;  %v1687_v43 = vadd.f32 %v2123_v63, %v1686_v39  ;;  %v1764_v15 = vpop.permute.xlu1 %1763 }
 0x73a   : > { %v2828_v37 = vpop.eup %2827  ;;  %2845 = vtanh.f32 %v1722_v40 }
 0x73b   : > { %1875 = vrot.lane.b32.xlu1 %v2822_v27, %s2875_s26  ;;  %v2830_v42 = vpop.eup %2829  ;;  %2847 = vtanh.f32 %v1687_v43  ;;  %v1762_v16 = vpop.permute.xlu0 %1761  ;;  %v1901_v43 = vsel %vm644_vm1, %v3043_v8, %v1742_v3 }
 0x73c   : > { %v2832_v45 = vpop.eup %2831  ;;  %2849 = vtanh.f32 %v1717_v55  ;;  %v1911_v8 = vsel %vm644_vm1, %v3083_v48, %v1762_v16  ;;  %v1903_v48 = vsel %vm644_vm1, %v3051_v14, %v1746_v1 }
 0x73d   : > { %1873 = vrot.lane.b32.xlu0 %v2826_v34, %s2875_s26  ;;  %v2834_v54 = vpop.eup %2833  ;;  %v1768_v33 = vpop.permute.xlu1 %1767 }
 0x73e   : > { %v2836_v56 = vpop.eup %2835 }
 0x73f   : > { %1859 = vrot.lane.b32.xlu1 %v2828_v37, %s2875_s26  ;;  %v1766_v17 = vpop.permute.xlu0 %1765 }
 0x740   : > { %v2838_v57 = vpop.eup %2837  ;;  %v1913_v14 = vsel %vm644_vm1, %v3091_v50, %v1766_v17  ;;  %v1905_v50 = vsel %vm644_vm1, %v3059_v35, %v3329_v6  ;;  %v1907_v35 = vsel %vm644_vm1, %v3067_v41, %v3333_v9  ;;  %v1909_v9 = vsel %vm644_vm1, %v3075_v46, %v3337_v12 }
 0x741   : > { %1857 = vrot.lane.b32.xlu0 %v2832_v45, %s2875_s26  ;;  %v3339_v18 = vpop.permute.xlu1 %1771 }
 0x742   : > { %v2840_v58 = vpop.eup %2839 }
 0x743   : > { %1879 = vrot.lane.b32.xlu1 %v2830_v42, %s2875_s26  ;;  %v3341_v19 = vpop.permute.xlu0 %1769 }
 0x744   : > { %v2842_v59 = vpop.eup %2841  ;;  %v1915_v46 = vsel %vm644_vm1, %v3099_v52, %v3341_v19 }
 0x745   : > { %1877 = vrot.lane.b32.xlu0 %v2834_v54, %s2875_s26  ;;  %v1792_v20 = vpop.permute.xlu1 %1791  ;;  %v1912_v54 = vsel %vm644_vm1, %v3085_v49, %v1764_v15  ;;  %v1904_v49 = vsel %vm644_vm1, %v3053_v32, %v1748_v61  ;;  %v1914_v32 = vsel %vm644_vm1, %v3093_v51, %v1768_v33  ;;  %v1906_v51 = vsel %vm644_vm1, %v3061_v38, %v3327_v5 }
 0x746   : > { %v2844_v60 = vpop.eup %2843  ;;  %v1919_v40 = vsel %vm1917_vm2, %v1902_v26, %v1792_v20  ;;  %v1908_v38 = vsel %vm644_vm1, %v3069_v44, %v3331_v7  ;;  %v1910_v7 = vsel %vm644_vm1, %v3077_v47, %v3335_v10  ;;  %v1916_v10 = vsel %vm644_vm1, %v3101_v53, %v3339_v18 }
 0x747   : > { %1863 = vrot.lane.b32.xlu1 %v2836_v56, %s2875_s26  ;;  %v2846_v62 = vpop.eup %2845  ;;  %v1790_v4 = vpop.permute.xlu0 %1789 }
 0x748   : > { %v2848_v63 = vpop.eup %2847  ;;  %v1918_v13 = vsel %vm1917_vm2, %v1901_v43, %v1790_v4 }
 0x749   : > { %1861 = vrot.lane.b32.xlu0 %v2838_v57, %s2875_s26  ;;  %v2850_v2 = vpop.eup %2849  ;;  %v1796_v21 = vpop.permute.xlu1 %1795 }
 0x74b   : > { %1867 = vrot.lane.b32.xlu1 %v2840_v58, %s2875_s26  ;;  %v1794_v22 = vpop.permute.xlu0 %1793 }
 0x74c   : > { %v1920_v3 = vsel %vm1917_vm2, %v1903_v48, %v1794_v22 }
 0x74d   : > { %1865 = vrot.lane.b32.xlu0 %v2842_v59, %s2875_s26  ;;  %v1800_v23 = vpop.permute.xlu1 %1799 }
 0x74e   : > { %v1923_v22 = vsel %vm1917_vm2, %v1906_v51, %v1800_v23 }
 0x74f   : > { %1871 = vrot.lane.b32.xlu1 %v2844_v60, %s2875_s26  ;;  %v1798_v24 = vpop.permute.xlu0 %1797 }
 0x751   : > { %1869 = vrot.lane.b32.xlu0 %v2848_v63, %s2875_s26  ;;  %v3343_v25 = vpop.permute.xlu1 %1803  ;;  %v1921_v63 = vsel %vm1917_vm2, %v1904_v49, %v1796_v21 }
 0x752   : > { %v1925_v23 = vsel %vm1917_vm2, %v1908_v38, %v3343_v25 }
 0x753   : > { %1883 = vrot.lane.b32.xlu1 %v2846_v62, %s2875_s26  ;;  %v3345_v27 = vpop.permute.xlu0 %1801 }
 0x755   : > { %1881 = vrot.lane.b32.xlu0 %v2850_v2, %s2875_s26  ;;  %v3347_v28 = vpop.permute.xlu1 %1807 }
 0x756   : > { %v1927_v26 = vsel %vm1917_vm2, %v1910_v7, %v3347_v28 }
 0x757   : > { %v3349_v29 = vpop.permute.xlu0 %1805 }
 0x759   : > { %v1812_v30 = vpop.permute.xlu1 %1811 }
 0x75a   : > { %v1929_v56 = vsel %vm1917_vm2, %v1912_v54, %v1812_v30 }
 0x75b   : > { %v1810_v31 = vpop.permute.xlu0 %1809 }
 0x75c   : > { %v1928_v59 = vsel %vm1917_vm2, %v1911_v8, %v1810_v31  ;;  %v1922_v31 = vsel %vm1917_vm2, %v1905_v50, %v1798_v24  ;;  %v1924_v24 = vsel %vm1917_vm2, %v1907_v35, %v3345_v27 }
 0x75d   : > { %v1816_v34 = vpop.permute.xlu1 %1815 }
 0x75e   : > { %v1931_v16 = vsel %vm1917_vm2, %v1914_v32, %v1816_v34 }
 0x75f   : > { %v1814_v36 = vpop.permute.xlu0 %1813 }
 0x760   : > { %v1930_v4 = vsel %vm1917_vm2, %v1913_v14, %v1814_v36 }
 0x761   : > { %v3351_v37 = vpop.permute.xlu1 %1819 }
 0x763   : > { %v3353_v39 = vpop.permute.xlu0 %1817 }
 0x7a9   : > { %v1856_v42 = vpop.permute.xlu1 %1855 }
 0x7aa   : > { %v1936_v45 = vsel %vm1934_vm3, %v1919_v40, %v1856_v42  ;;  %v1926_v40 = vsel %vm1917_vm2, %v1909_v9, %v3349_v29  ;;  %v1933_v42 = vsel %vm1917_vm2, %v1916_v10, %v3351_v37  ;;  %v1932_v29 = vsel %vm1917_vm2, %v1915_v46, %v3353_v39 }
 0x7ab   : > { %1952 = vst [vmem:[%s3361_s19 + $0x8] sm:$0xff] %v1936_v45  ;;  %v1854_v11 = vpop.permute.xlu0 %1853 }
 0x7ac   : > { %v1935_v55 = vsel %vm1934_vm3, %v1918_v13, %v1854_v11 }
 0x7ad   : > { %1951 = vst [vmem:[%s3361_s19] sm:$0xff] %v1935_v55  ;;  %v1876_v57 = vpop.permute.xlu1 %1875 }
 0x7ae   : > { %v1946_v58 = vsel %vm1934_vm3, %v1929_v56, %v1876_v57 }
 0x7af   : > { %1962 = vst [vmem:[%s3361_s19 + $0x58] sm:$0xff] %v1946_v58  ;;  %v1874_v60 = vpop.permute.xlu0 %1873 }
 0x7b0   : > { %v1945_v62 = vsel %vm1934_vm3, %v1928_v59, %v1874_v60 }
 0x7b1   : > { %1961 = vst [vmem:[%s3361_s19 + $0x50] sm:$0xff] %v1945_v62  ;;  %v1860_v0 = vpop.permute.xlu1 %1859 }
 0x7b2   : > { %v1938_v2 = vsel %vm1934_vm3, %v1921_v63, %v1860_v0 }
 0x7b3   : > { %1954 = vst [vmem:[%s3361_s19 + $0x18] sm:$0xff] %v1938_v2  ;;  %v1858_v15 = vpop.permute.xlu0 %1857 }
 0x7b4   : > { %v1937_v61 = vsel %vm1934_vm3, %v1920_v3, %v1858_v15 }
 0x7b5   : > { %1953 = vst [vmem:[%s3361_s19 + $0x10] sm:$0xff] %v1937_v61  ;;  %v1880_v20 = vpop.permute.xlu1 %1879 }
 0x7b6   : > { %v1948_v1 = vsel %vm1934_vm3, %v1931_v16, %v1880_v20 }
 0x7b7   : > { %1964 = vst [vmem:[%s3361_s19 + $0x68] sm:$0xff] %v1948_v1  ;;  %v1878_v21 = vpop.permute.xlu0 %1877 }
 0x7b8   : > { %v1947_v33 = vsel %vm1934_vm3, %v1930_v4, %v1878_v21 }
 0x7b9   : > { %1963 = vst [vmem:[%s3361_s19 + $0x60] sm:$0xff] %v1947_v33  ;;  %v1864_v30 = vpop.permute.xlu1 %1863 }
 0x7ba   : > { %v1940_v17 = vsel %vm1934_vm3, %v1923_v22, %v1864_v30 }
 0x7bb   : > { %1956 = vst [vmem:[%s3361_s19 + $0x28] sm:$0xff] %v1940_v17  ;;  %v1862_v34 = vpop.permute.xlu0 %1861 }
 0x7bc   : > { %v1939_v5 = vsel %vm1934_vm3, %v1922_v31, %v1862_v34 }
 0x7bd   : > { %1955 = vst [vmem:[%s3361_s19 + $0x20] sm:$0xff] %v1939_v5  ;;  %v1868_v36 = vpop.permute.xlu1 %1867 }
 0x7be   : > { %v1942_v6 = vsel %vm1934_vm3, %v1925_v23, %v1868_v36 }
 0x7bf   : > { %1958 = vst [vmem:[%s3361_s19 + $0x38] sm:$0xff] %v1942_v6  ;;  %v1866_v44 = vpop.permute.xlu0 %1865 }
 0x7c0   : > { %v1941_v25 = vsel %vm1934_vm3, %v1924_v24, %v1866_v44 }
 0x7c1   : > { %1957 = vst [vmem:[%s3361_s19 + $0x30] sm:$0xff] %v1941_v25  ;;  %v1872_v41 = vpop.permute.xlu1 %1871 }
 0x7c2   : > { %v1944_v27 = vsel %vm1934_vm3, %v1927_v26, %v1872_v41 }
 0x7c3   : > { %1960 = vst [vmem:[%s3361_s19 + $0x48] sm:$0xff] %v1944_v27  ;;  %v1870_v47 = vpop.permute.xlu0 %1869 }
 0x7c4   : > { %v1943_v28 = vsel %vm1934_vm3, %v1926_v40, %v1870_v47 }
 0x7c5   : > { %1959 = vst [vmem:[%s3361_s19 + $0x40] sm:$0xff] %v1943_v28  ;;  %v1884_v43 = vpop.permute.xlu1 %1883 }
 0x7c6   : > { %v1950_v12 = vsel %vm1934_vm3, %v1933_v42, %v1884_v43 }
 0x7c7   : > { %1966 = vst [vmem:[%s3361_s19 + $0x78] sm:$0xff] %v1950_v12  ;;  %v1882_v45 = vpop.permute.xlu0 %1881 }
 0x7c8   : > { %v1949_v53 = vsel %vm1934_vm3, %v1932_v29, %v1882_v45 }
 0x7c9   : > { %1965 = vst [vmem:[%s3361_s19 + $0x70] sm:$0xff] %v1949_v53 }
 0x7ca PF: > { %s15_s18 = sadd.s32 1, %s2871_s18  }
 0x7cb   : > { %p12_p4 = scmp.ge.s32.totalorder %s15_s18, 4  }
 0x7cd   :  { %14 = sbr.rel (!%p12_p4) target bundleno = 1 (0x1), region = 78 }

// kernel: dgcnn_forward.3
= control target key start
LH: loop header
LB: loop body
LE: loop exit
PB: predicated region body
PF: predicated region fallthrough
CT: control target
= control target key end

     0   :  { %vm1804_vm0 = vcmask 916480   ;;  %vm2842_vm1 = vmmov 0   ;;  %vm2003_vm2 = vcmask 785408   ;;  %s6440_s2 = inlined_call_operand.vmem [shape: f32[1920,240], index: 2, kind: input, shape index: {}]   ;;  %s6441_s0 = inlined_call_operand.vmem [shape: f32[8,1920], index: 0, kind: input, shape index: {}]   ;;  %s6442_s1 = inlined_call_operand.vmem [shape: f32[8,1920], index: 1, kind: input, shape index: {}]   ;;  %s6443_s4 = inlined_call_operand.vmem [shape: f32[240,352], index: 4, kind: input, shape index: {}]   ;;  %s6444_s6 = inlined_call_operand.vmem [shape: f32[352,128], index: 6, kind: input, shape index: {}]   ;;  %s6445_s3 = inlined_call_operand.vmem [shape: f32[1,240], index: 3, kind: input, shape index: {}]   ;;  %s6446_s5 = inlined_call_operand.vmem [shape: f32[1,352], index: 5, kind: input, shape index: {}]   ;;  %s6447_s8 = inlined_call_operand.vmem [shape: f32[128,128], index: 8, kind: input, shape index: {}]   ;;  %s6448_s7 = inlined_call_operand.vmem [shape: f32[1,128], index: 7, kind: input, shape index: {}]   ;;  %s6449_s9 = inlined_call_operand.vmem [shape: f32[1,128], index: 9, kind: input, shape index: {}]   ;;  %s6450_s10 = inlined_call_operand.vmem [shape: f32[8,128], index: 10, kind: output, shape index: {}]  }
   0x1   :  { %v66_v0 = vld [vmem:[%s6440_s2 + $0xf8] sm:$0xff]  ;;  %v65_v2 = vld [vmem:[%s6440_s2 + $0xf0] sm:$0xff]  ;;  %v64_v4 = vld [vmem:[%s6440_s2 + $0xe8] sm:$0xff] }
   0x2   :  { %v130_v1 = vld [vmem:[%s6440_s2 + $0x2f8] sm:$0xff]  ;;  %542 = vmatprep.subr.mxu0 %v66_v0  ;;  %v129_v3 = vld [vmem:[%s6440_s2 + $0x2f0] sm:$0xff]  ;;  %v128_v5 = vld [vmem:[%s6440_s2 + $0x2e8] sm:$0xff] }
   0x3   :  { %613 = vmatprep.subr.mxu1 %v130_v1  ;;  %543 = vmatpush1.msra.mxu0 %v65_v2  ;;  %v63_v6 = vld [vmem:[%s6440_s2 + $0xe0] sm:$0xff]  ;;  %v62_v8 = vld [vmem:[%s6440_s2 + $0xd8] sm:$0xff]  ;;  %v61_v10 = vld [vmem:[%s6440_s2 + $0xd0] sm:$0xff] }
   0x4   :  { %614 = vmatpush1.msra.mxu1 %v129_v3  ;;  %v127_v7 = vld [vmem:[%s6440_s2 + $0x2e0] sm:$0xff]  ;;  %544 = vmatprep.subr.mxu0 %v64_v4  ;;  %v126_v9 = vld [vmem:[%s6440_s2 + $0x2d8] sm:$0xff]  ;;  %v125_v11 = vld [vmem:[%s6440_s2 + $0x2d0] sm:$0xff] }
   0x5   :  { %615 = vmatprep.subr.mxu1 %v128_v5  ;;  %545 = vmatpush1.msra.mxu0 %v63_v6  ;;  %v60_v12 = vld [vmem:[%s6440_s2 + $0xc8] sm:$0xff]  ;;  %v59_v14 = vld [vmem:[%s6440_s2 + $0xc0] sm:$0xff]  ;;  %v58_v16 = vld [vmem:[%s6440_s2 + $0xb8] sm:$0xff] }
   0x6   :  { %616 = vmatpush1.msra.mxu1 %v127_v7  ;;  %v124_v13 = vld [vmem:[%s6440_s2 + $0x2c8] sm:$0xff]  ;;  %546 = vmatprep.subr.mxu0 %v62_v8  ;;  %v123_v15 = vld [vmem:[%s6440_s2 + $0x2c0] sm:$0xff]  ;;  %v122_v17 = vld [vmem:[%s6440_s2 + $0x2b8] sm:$0xff] }
   0x7   :  { %617 = vmatprep.subr.mxu1 %v126_v9  ;;  %547 = vmatpush1.msra.mxu0 %v61_v10  ;;  %v57_v18 = vld [vmem:[%s6440_s2 + $0xb0] sm:$0xff]  ;;  %v56_v20 = vld [vmem:[%s6440_s2 + $0xa8] sm:$0xff]  ;;  %v55_v22 = vld [vmem:[%s6440_s2 + $0xa0] sm:$0xff] }
   0x8   :  { %618 = vmatpush1.msra.mxu1 %v125_v11  ;;  %548 = vmatprep.subr.mxu0 %v60_v12  ;;  %v121_v19 = vld [vmem:[%s6440_s2 + $0x2b0] sm:$0xff]  ;;  %v120_v21 = vld [vmem:[%s6440_s2 + $0x2a8] sm:$0xff]  ;;  %v119_v23 = vld [vmem:[%s6440_s2 + $0x2a0] sm:$0xff] }
   0x9   :  { %619 = vmatprep.subr.mxu1 %v124_v13  ;;  %549 = vmatpush1.msra.mxu0 %v59_v14  ;;  %v54_v24 = vld [vmem:[%s6440_s2 + $0x98] sm:$0xff]  ;;  %v53_v26 = vld [vmem:[%s6440_s2 + $0x90] sm:$0xff]  ;;  %v52_v28 = vld [vmem:[%s6440_s2 + $0x88] sm:$0xff] }
   0xa   :  { %620 = vmatpush1.msra.mxu1 %v123_v15  ;;  %550 = vmatprep.subr.mxu0 %v58_v16  ;;  %v118_v25 = vld [vmem:[%s6440_s2 + $0x298] sm:$0xff]  ;;  %v117_v27 = vld [vmem:[%s6440_s2 + $0x290] sm:$0xff]  ;;  %v116_v29 = vld [vmem:[%s6440_s2 + $0x288] sm:$0xff] }
   0xb   :  { %621 = vmatprep.subr.mxu1 %v122_v17  ;;  %551 = vmatpush1.msra.mxu0 %v57_v18  ;;  %v51_v30 = vld [vmem:[%s6440_s2 + $0x80] sm:$0xff]  ;;  %v50_v32 = vld [vmem:[%s6440_s2 + $0x78] sm:$0xff]  ;;  %v49_v34 = vld [vmem:[%s6440_s2 + $0x70] sm:$0xff] }
   0xc   :  { %622 = vmatpush1.msra.mxu1 %v121_v19  ;;  %552 = vmatprep.subr.mxu0 %v56_v20  ;;  %v115_v31 = vld [vmem:[%s6440_s2 + $0x280] sm:$0xff]  ;;  %v114_v33 = vld [vmem:[%s6440_s2 + $0x278] sm:$0xff]  ;;  %v113_v35 = vld [vmem:[%s6440_s2 + $0x270] sm:$0xff] }
   0xd   :  { %623 = vmatprep.subr.mxu1 %v120_v21  ;;  %553 = vmatpush1.msra.mxu0 %v55_v22  ;;  %v48_v36 = vld [vmem:[%s6440_s2 + $0x68] sm:$0xff]  ;;  %v47_v38 = vld [vmem:[%s6440_s2 + $0x60] sm:$0xff]  ;;  %v46_v40 = vld [vmem:[%s6440_s2 + $0x58] sm:$0xff] }
   0xe   :  { %624 = vmatpush1.msra.mxu1 %v119_v23  ;;  %554 = vmatprep.subr.mxu0 %v54_v24  ;;  %v112_v37 = vld [vmem:[%s6440_s2 + $0x268] sm:$0xff]  ;;  %v111_v39 = vld [vmem:[%s6440_s2 + $0x260] sm:$0xff]  ;;  %v110_v41 = vld [vmem:[%s6440_s2 + $0x258] sm:$0xff] }
   0xf   :  { %625 = vmatprep.subr.mxu1 %v118_v25  ;;  %555 = vmatpush1.msra.mxu0 %v53_v26  ;;  %v45_v42 = vld [vmem:[%s6440_s2 + $0x50] sm:$0xff]  ;;  %v44_v44 = vld [vmem:[%s6440_s2 + $0x48] sm:$0xff]  ;;  %v43_v46 = vld [vmem:[%s6440_s2 + $0x40] sm:$0xff] }
  0x10   :  { %626 = vmatpush1.msra.mxu1 %v117_v27  ;;  %556 = vmatprep.subr.mxu0 %v52_v28  ;;  %v109_v43 = vld [vmem:[%s6440_s2 + $0x250] sm:$0xff]  ;;  %v108_v45 = vld [vmem:[%s6440_s2 + $0x248] sm:$0xff]  ;;  %v107_v47 = vld [vmem:[%s6440_s2 + $0x240] sm:$0xff] }
  0x11   :  { %627 = vmatprep.subr.mxu1 %v116_v29  ;;  %557 = vmatpush1.msra.mxu0 %v51_v30  ;;  %v42_v48 = vld [vmem:[%s6440_s2 + $0x38] sm:$0xff]  ;;  %v41_v50 = vld [vmem:[%s6440_s2 + $0x30] sm:$0xff]  ;;  %v40_v52 = vld [vmem:[%s6440_s2 + $0x28] sm:$0xff] }
  0x12   :  { %628 = vmatpush1.msra.mxu1 %v115_v31  ;;  %558 = vmatprep.subr.mxu0 %v50_v32  ;;  %v106_v49 = vld [vmem:[%s6440_s2 + $0x238] sm:$0xff]  ;;  %v105_v51 = vld [vmem:[%s6440_s2 + $0x230] sm:$0xff]  ;;  %v104_v53 = vld [vmem:[%s6440_s2 + $0x228] sm:$0xff] }
  0x13   :  { %629 = vmatprep.subr.mxu1 %v114_v33  ;;  %559 = vmatpush1.msra.mxu0 %v49_v34  ;;  %v39_v54 = vld [vmem:[%s6440_s2 + $0x20] sm:$0xff]  ;;  %v38_v56 = vld [vmem:[%s6440_s2 + $0x18] sm:$0xff]  ;;  %v37_v58 = vld [vmem:[%s6440_s2 + $0x10] sm:$0xff] }
  0x14   :  { %630 = vmatpush1.msra.mxu1 %v113_v35  ;;  %560 = vmatprep.subr.mxu0 %v48_v36  ;;  %v103_v55 = vld [vmem:[%s6440_s2 + $0x220] sm:$0xff]  ;;  %v102_v57 = vld [vmem:[%s6440_s2 + $0x218] sm:$0xff]  ;;  %v101_v59 = vld [vmem:[%s6440_s2 + $0x210] sm:$0xff] }
  0x15   :  { %631 = vmatprep.subr.mxu1 %v112_v37  ;;  %561 = vmatpush1.msra.mxu0 %v47_v38  ;;  %v36_v60 = vld [vmem:[%s6440_s2 + $0x8] sm:$0xff]  ;;  %v35_v62 = vld [vmem:[%s6440_s2] sm:$0xff]  ;;  %v98_v0 = vld [vmem:[%s6440_s2 + $0x1f8] sm:$0xff] }
  0x16   :  { %632 = vmatpush1.msra.mxu1 %v111_v39  ;;  %562 = vmatprep.subr.mxu0 %v46_v40  ;;  %v100_v61 = vld [vmem:[%s6440_s2 + $0x208] sm:$0xff]  ;;  %v99_v63 = vld [vmem:[%s6440_s2 + $0x200] sm:$0xff]  ;;  %v162_v1 = vld [vmem:[%s6440_s2 + $0x3f8] sm:$0xff] }
  0x17   :  { %633 = vmatprep.subr.mxu1 %v110_v41  ;;  %563 = vmatpush1.msra.mxu0 %v45_v42  ;;  %v97_v2 = vld [vmem:[%s6440_s2 + $0x1f0] sm:$0xff]  ;;  %v96_v4 = vld [vmem:[%s6440_s2 + $0x1e8] sm:$0xff]  ;;  %v95_v6 = vld [vmem:[%s6440_s2 + $0x1e0] sm:$0xff] }
  0x18   :  { %634 = vmatpush1.msra.mxu1 %v109_v43  ;;  %564 = vmatprep.subr.mxu0 %v44_v44  ;;  %v161_v3 = vld [vmem:[%s6440_s2 + $0x3f0] sm:$0xff]  ;;  %v160_v5 = vld [vmem:[%s6440_s2 + $0x3e8] sm:$0xff]  ;;  %v159_v7 = vld [vmem:[%s6440_s2 + $0x3e0] sm:$0xff] }
  0x19   :  { %635 = vmatprep.subr.mxu1 %v108_v45  ;;  %565 = vmatpush1.msra.mxu0 %v43_v46  ;;  %v94_v8 = vld [vmem:[%s6440_s2 + $0x1d8] sm:$0xff]  ;;  %v93_v10 = vld [vmem:[%s6440_s2 + $0x1d0] sm:$0xff]  ;;  %v92_v12 = vld [vmem:[%s6440_s2 + $0x1c8] sm:$0xff] }
  0x1a   :  { %636 = vmatpush1.msra.mxu1 %v107_v47  ;;  %566 = vmatprep.subr.mxu0 %v42_v48  ;;  %v158_v9 = vld [vmem:[%s6440_s2 + $0x3d8] sm:$0xff]  ;;  %v157_v11 = vld [vmem:[%s6440_s2 + $0x3d0] sm:$0xff]  ;;  %v156_v13 = vld [vmem:[%s6440_s2 + $0x3c8] sm:$0xff] }
  0x1b   :  { %637 = vmatprep.subr.mxu1 %v106_v49  ;;  %567 = vmatpush1.msra.mxu0 %v41_v50  ;;  %v91_v14 = vld [vmem:[%s6440_s2 + $0x1c0] sm:$0xff]  ;;  %v90_v16 = vld [vmem:[%s6440_s2 + $0x1b8] sm:$0xff]  ;;  %v89_v18 = vld [vmem:[%s6440_s2 + $0x1b0] sm:$0xff] }
  0x1c   :  { %638 = vmatpush1.msra.mxu1 %v105_v51  ;;  %568 = vmatprep.subr.mxu0 %v40_v52  ;;  %v155_v15 = vld [vmem:[%s6440_s2 + $0x3c0] sm:$0xff]  ;;  %v154_v17 = vld [vmem:[%s6440_s2 + $0x3b8] sm:$0xff]  ;;  %v153_v19 = vld [vmem:[%s6440_s2 + $0x3b0] sm:$0xff] }
  0x1d   :  { %639 = vmatprep.subr.mxu1 %v104_v53  ;;  %569 = vmatpush1.msra.mxu0 %v39_v54  ;;  %v88_v20 = vld [vmem:[%s6440_s2 + $0x1a8] sm:$0xff]  ;;  %v87_v22 = vld [vmem:[%s6440_s2 + $0x1a0] sm:$0xff]  ;;  %v86_v24 = vld [vmem:[%s6440_s2 + $0x198] sm:$0xff] }
  0x1e   :  { %640 = vmatpush1.msra.mxu1 %v103_v55  ;;  %570 = vmatprep.subr.mxu0 %v38_v56  ;;  %v152_v21 = vld [vmem:[%s6440_s2 + $0x3a8] sm:$0xff]  ;;  %v151_v23 = vld [vmem:[%s6440_s2 + $0x3a0] sm:$0xff]  ;;  %v150_v25 = vld [vmem:[%s6440_s2 + $0x398] sm:$0xff] }
  0x1f   :  { %641 = vmatprep.subr.mxu1 %v102_v57  ;;  %571 = vmatpush1.msra.mxu0 %v37_v58  ;;  %v85_v26 = vld [vmem:[%s6440_s2 + $0x190] sm:$0xff]  ;;  %v84_v28 = vld [vmem:[%s6440_s2 + $0x188] sm:$0xff]  ;;  %v83_v30 = vld [vmem:[%s6440_s2 + $0x180] sm:$0xff] }
  0x20   :  { %642 = vmatpush1.msra.mxu1 %v101_v59  ;;  %572 = vmatprep.subr.mxu0 %v36_v60  ;;  %v149_v27 = vld [vmem:[%s6440_s2 + $0x390] sm:$0xff]  ;;  %v148_v29 = vld [vmem:[%s6440_s2 + $0x388] sm:$0xff]  ;;  %v147_v31 = vld [vmem:[%s6440_s2 + $0x380] sm:$0xff] }
  0x21   :  { %643 = vmatprep.subr.mxu1 %v100_v61  ;;  %573 = vmatpush1.msra.mxu0 %v35_v62  ;;  %v82_v32 = vld [vmem:[%s6440_s2 + $0x178] sm:$0xff]  ;;  %v81_v34 = vld [vmem:[%s6440_s2 + $0x170] sm:$0xff]  ;;  %v80_v36 = vld [vmem:[%s6440_s2 + $0x168] sm:$0xff] }
  0x22   :  { %644 = vmatpush1.msra.mxu1 %v99_v63  ;;  %574 = vmatprep.subr.mxu0 %v98_v0  ;;  %v146_v33 = vld [vmem:[%s6440_s2 + $0x378] sm:$0xff]  ;;  %v145_v35 = vld [vmem:[%s6440_s2 + $0x370] sm:$0xff]  ;;  %v144_v37 = vld [vmem:[%s6440_s2 + $0x368] sm:$0xff] }
  0x23   :  { %645 = vmatprep.subr.mxu1 %v162_v1  ;;  %575 = vmatpush2.msra.mxu0 %v97_v2  ;;  %v79_v38 = vld [vmem:[%s6440_s2 + $0x160] sm:$0xff]  ;;  %v78_v40 = vld [vmem:[%s6440_s2 + $0x158] sm:$0xff]  ;;  %v77_v42 = vld [vmem:[%s6440_s2 + $0x150] sm:$0xff] }
  0x24   :  { %646 = vmatpush2.msra.mxu1 %v161_v3  ;;  %576 = vmatprep.subr.mxu0 %v96_v4  ;;  %v143_v39 = vld [vmem:[%s6440_s2 + $0x360] sm:$0xff]  ;;  %v142_v41 = vld [vmem:[%s6440_s2 + $0x358] sm:$0xff]  ;;  %v141_v43 = vld [vmem:[%s6440_s2 + $0x350] sm:$0xff] }
  0x25   :  { %647 = vmatprep.subr.mxu1 %v160_v5  ;;  %577 = vmatpush2.msra.mxu0 %v95_v6  ;;  %v76_v44 = vld [vmem:[%s6440_s2 + $0x148] sm:$0xff]  ;;  %v75_v46 = vld [vmem:[%s6440_s2 + $0x140] sm:$0xff]  ;;  %v74_v48 = vld [vmem:[%s6440_s2 + $0x138] sm:$0xff] }
  0x26   :  { %648 = vmatpush2.msra.mxu1 %v159_v7  ;;  %578 = vmatprep.subr.mxu0 %v94_v8  ;;  %v140_v45 = vld [vmem:[%s6440_s2 + $0x348] sm:$0xff]  ;;  %v139_v47 = vld [vmem:[%s6440_s2 + $0x340] sm:$0xff]  ;;  %v138_v49 = vld [vmem:[%s6440_s2 + $0x338] sm:$0xff] }
  0x27   :  { %649 = vmatprep.subr.mxu1 %v158_v9  ;;  %579 = vmatpush2.msra.mxu0 %v93_v10  ;;  %v73_v50 = vld [vmem:[%s6440_s2 + $0x130] sm:$0xff]  ;;  %v72_v52 = vld [vmem:[%s6440_s2 + $0x128] sm:$0xff]  ;;  %v71_v54 = vld [vmem:[%s6440_s2 + $0x120] sm:$0xff] }
  0x28   :  { %650 = vmatpush2.msra.mxu1 %v157_v11  ;;  %580 = vmatprep.subr.mxu0 %v92_v12  ;;  %v137_v51 = vld [vmem:[%s6440_s2 + $0x330] sm:$0xff]  ;;  %v136_v53 = vld [vmem:[%s6440_s2 + $0x328] sm:$0xff]  ;;  %v135_v55 = vld [vmem:[%s6440_s2 + $0x320] sm:$0xff] }
  0x29   :  { %651 = vmatprep.subr.mxu1 %v156_v13  ;;  %581 = vmatpush2.msra.mxu0 %v91_v14  ;;  %v70_v56 = vld [vmem:[%s6440_s2 + $0x118] sm:$0xff]  ;;  %v69_v58 = vld [vmem:[%s6440_s2 + $0x110] sm:$0xff]  ;;  %v68_v60 = vld [vmem:[%s6440_s2 + $0x108] sm:$0xff] }
  0x2a   :  { %652 = vmatpush2.msra.mxu1 %v155_v15  ;;  %582 = vmatprep.subr.mxu0 %v90_v16  ;;  %v134_v57 = vld [vmem:[%s6440_s2 + $0x318] sm:$0xff]  ;;  %v133_v59 = vld [vmem:[%s6440_s2 + $0x310] sm:$0xff]  ;;  %v132_v61 = vld [vmem:[%s6440_s2 + $0x308] sm:$0xff] }
  0x2b   :  { %653 = vmatprep.subr.mxu1 %v154_v17  ;;  %583 = vmatpush2.msra.mxu0 %v89_v18  ;;  %v67_v62 = vld [vmem:[%s6440_s2 + $0x100] sm:$0xff]  ;;  %v517_v63 = vld [vmem:[%s6441_s0 + $0x8] sm:$0xff]  ;;  %v519_v1 = vld [vmem:[%s6441_s0 + $0x18] sm:$0xff] }
  0x2c   :  { %654 = vmatpush2.msra.mxu1 %v153_v19  ;;  %584 = vmatprep.subr.mxu0 %v88_v20  ;;  %v131_v0 = vld [vmem:[%s6440_s2 + $0x300] sm:$0xff]  ;;  %v518_v3 = vld [vmem:[%s6441_s0 + $0x10] sm:$0xff]  ;;  %v194_v4 = vld [vmem:[%s6440_s2 + $0x4f8] sm:$0xff] }
  0x2d   :  { %655 = vmatprep.subr.mxu1 %v152_v21  ;;  %585 = vmatpush2.msra.mxu0 %v87_v22  ;;  %v516_v2 = vld [vmem:[%s6441_s0] sm:$0xff]  ;;  %v258_v5 = vld [vmem:[%s6440_s2 + $0x6f8] sm:$0xff]  ;;  %v193_v6 = vld [vmem:[%s6440_s2 + $0x4f0] sm:$0xff] }
  0x2e   :  { %656 = vmatpush2.msra.mxu1 %v151_v23  ;;  %586 = vmatprep.subr.mxu0 %v86_v24  ;;  %v257_v7 = vld [vmem:[%s6440_s2 + $0x6f0] sm:$0xff]  ;;  %v192_v8 = vld [vmem:[%s6440_s2 + $0x4e8] sm:$0xff]  ;;  %v191_v10 = vld [vmem:[%s6440_s2 + $0x4e0] sm:$0xff] }
  0x2f   :  { %657 = vmatprep.subr.mxu1 %v150_v25  ;;  %587 = vmatpush2.msra.mxu0 %v85_v26  ;;  %v256_v9 = vld [vmem:[%s6440_s2 + $0x6e8] sm:$0xff]  ;;  %v255_v11 = vld [vmem:[%s6440_s2 + $0x6e0] sm:$0xff]  ;;  %v190_v12 = vld [vmem:[%s6440_s2 + $0x4d8] sm:$0xff] }
  0x30   :  { %658 = vmatpush2.msra.mxu1 %v149_v27  ;;  %588 = vmatprep.subr.mxu0 %v84_v28  ;;  %v254_v13 = vld [vmem:[%s6440_s2 + $0x6d8] sm:$0xff]  ;;  %v189_v14 = vld [vmem:[%s6440_s2 + $0x4d0] sm:$0xff]  ;;  %v188_v16 = vld [vmem:[%s6440_s2 + $0x4c8] sm:$0xff] }
  0x31   :  { %659 = vmatprep.subr.mxu1 %v148_v29  ;;  %589 = vmatpush2.msra.mxu0 %v83_v30  ;;  %v253_v15 = vld [vmem:[%s6440_s2 + $0x6d0] sm:$0xff]  ;;  %v252_v17 = vld [vmem:[%s6440_s2 + $0x6c8] sm:$0xff]  ;;  %v187_v18 = vld [vmem:[%s6440_s2 + $0x4c0] sm:$0xff] }
  0x32   :  { %660 = vmatpush2.msra.mxu1 %v147_v31  ;;  %590 = vmatprep.subr.mxu0 %v82_v32  ;;  %v251_v19 = vld [vmem:[%s6440_s2 + $0x6c0] sm:$0xff]  ;;  %v186_v20 = vld [vmem:[%s6440_s2 + $0x4b8] sm:$0xff]  ;;  %v185_v22 = vld [vmem:[%s6440_s2 + $0x4b0] sm:$0xff] }
  0x33   :  { %661 = vmatprep.subr.mxu1 %v146_v33  ;;  %591 = vmatpush2.msra.mxu0 %v81_v34  ;;  %v250_v21 = vld [vmem:[%s6440_s2 + $0x6b8] sm:$0xff]  ;;  %v249_v23 = vld [vmem:[%s6440_s2 + $0x6b0] sm:$0xff]  ;;  %v184_v24 = vld [vmem:[%s6440_s2 + $0x4a8] sm:$0xff] }
  0x34   :  { %662 = vmatpush2.msra.mxu1 %v145_v35  ;;  %592 = vmatprep.subr.mxu0 %v80_v36  ;;  %v248_v25 = vld [vmem:[%s6440_s2 + $0x6a8] sm:$0xff]  ;;  %v183_v26 = vld [vmem:[%s6440_s2 + $0x4a0] sm:$0xff]  ;;  %v182_v28 = vld [vmem:[%s6440_s2 + $0x498] sm:$0xff] }
  0x35   :  { %663 = vmatprep.subr.mxu1 %v144_v37  ;;  %593 = vmatpush2.msra.mxu0 %v79_v38  ;;  %v247_v27 = vld [vmem:[%s6440_s2 + $0x6a0] sm:$0xff]  ;;  %v246_v29 = vld [vmem:[%s6440_s2 + $0x698] sm:$0xff]  ;;  %v181_v30 = vld [vmem:[%s6440_s2 + $0x490] sm:$0xff] }
  0x36   :  { %664 = vmatpush2.msra.mxu1 %v143_v39  ;;  %594 = vmatprep.subr.mxu0 %v78_v40  ;;  %v245_v31 = vld [vmem:[%s6440_s2 + $0x690] sm:$0xff]  ;;  %v180_v32 = vld [vmem:[%s6440_s2 + $0x488] sm:$0xff]  ;;  %v179_v34 = vld [vmem:[%s6440_s2 + $0x480] sm:$0xff] }
  0x37   :  { %665 = vmatprep.subr.mxu1 %v142_v41  ;;  %595 = vmatpush2.msra.mxu0 %v77_v42  ;;  %v244_v33 = vld [vmem:[%s6440_s2 + $0x688] sm:$0xff]  ;;  %v243_v35 = vld [vmem:[%s6440_s2 + $0x680] sm:$0xff]  ;;  %v178_v36 = vld [vmem:[%s6440_s2 + $0x478] sm:$0xff] }
  0x38   :  { %666 = vmatpush2.msra.mxu1 %v141_v43  ;;  %596 = vmatprep.subr.mxu0 %v76_v44  ;;  %v242_v37 = vld [vmem:[%s6440_s2 + $0x678] sm:$0xff]  ;;  %v177_v38 = vld [vmem:[%s6440_s2 + $0x470] sm:$0xff]  ;;  %v176_v40 = vld [vmem:[%s6440_s2 + $0x468] sm:$0xff] }
  0x39   :  { %667 = vmatprep.subr.mxu1 %v140_v45  ;;  %597 = vmatpush2.msra.mxu0 %v75_v46  ;;  %v241_v39 = vld [vmem:[%s6440_s2 + $0x670] sm:$0xff]  ;;  %v240_v41 = vld [vmem:[%s6440_s2 + $0x668] sm:$0xff]  ;;  %v175_v42 = vld [vmem:[%s6440_s2 + $0x460] sm:$0xff] }
  0x3a   :  { %668 = vmatpush2.msra.mxu1 %v139_v47  ;;  %598 = vmatprep.subr.mxu0 %v74_v48  ;;  %v239_v43 = vld [vmem:[%s6440_s2 + $0x660] sm:$0xff]  ;;  %v174_v44 = vld [vmem:[%s6440_s2 + $0x458] sm:$0xff]  ;;  %v173_v46 = vld [vmem:[%s6440_s2 + $0x450] sm:$0xff] }
  0x3b   :  { %669 = vmatprep.subr.mxu1 %v138_v49  ;;  %599 = vmatpush2.msra.mxu0 %v73_v50  ;;  %v238_v45 = vld [vmem:[%s6440_s2 + $0x658] sm:$0xff]  ;;  %v237_v47 = vld [vmem:[%s6440_s2 + $0x650] sm:$0xff]  ;;  %v172_v48 = vld [vmem:[%s6440_s2 + $0x448] sm:$0xff] }
  0x3c   :  { %670 = vmatpush2.msra.mxu1 %v137_v51  ;;  %600 = vmatprep.subr.mxu0 %v72_v52  ;;  %v236_v49 = vld [vmem:[%s6440_s2 + $0x648] sm:$0xff]  ;;  %v171_v50 = vld [vmem:[%s6440_s2 + $0x440] sm:$0xff]  ;;  %v170_v52 = vld [vmem:[%s6440_s2 + $0x438] sm:$0xff] }
  0x3d   :  { %671 = vmatprep.subr.mxu1 %v136_v53  ;;  %601 = vmatpush2.msra.mxu0 %v71_v54  ;;  %v235_v51 = vld [vmem:[%s6440_s2 + $0x640] sm:$0xff]  ;;  %v234_v53 = vld [vmem:[%s6440_s2 + $0x638] sm:$0xff]  ;;  %v169_v54 = vld [vmem:[%s6440_s2 + $0x430] sm:$0xff] }
  0x3e   :  { %672 = vmatpush2.msra.mxu1 %v135_v55  ;;  %602 = vmatprep.subr.mxu0 %v70_v56  ;;  %v233_v55 = vld [vmem:[%s6440_s2 + $0x630] sm:$0xff]  ;;  %v168_v56 = vld [vmem:[%s6440_s2 + $0x428] sm:$0xff] }
  0x3f   :  { %673 = vmatprep.subr.mxu1 %v134_v57  ;;  %603 = vmatpush2.msra.mxu0 %v69_v58  ;;  %v232_v57 = vld [vmem:[%s6440_s2 + $0x628] sm:$0xff]  ;;  %v167_v58 = vld [vmem:[%s6440_s2 + $0x420] sm:$0xff] }
  0x40   :  { %674 = vmatpush2.msra.mxu1 %v133_v59  ;;  %604 = vmatprep.subr.mxu0 %v68_v60  ;;  %v231_v59 = vld [vmem:[%s6440_s2 + $0x620] sm:$0xff]  ;;  %v166_v60 = vld [vmem:[%s6440_s2 + $0x418] sm:$0xff] }
  0x41   :  { %675 = vmatprep.subr.mxu1 %v132_v61  ;;  %605 = vmatpush2.msra.mxu0 %v67_v62  ;;  %v230_v61 = vld [vmem:[%s6440_s2 + $0x618] sm:$0xff]  ;;  %v165_v62 = vld [vmem:[%s6440_s2 + $0x410] sm:$0xff] }
  0x42   :  { %606 = vmatprep.mubr.f32.mxu0 %v517_v63  ;;  %676 = vmatpush2.msra.mxu1 %v131_v0  ;;  %v229_v63 = vld [vmem:[%s6440_s2 + $0x610] sm:$0xff]  ;;  %v164_v0 = vld [vmem:[%s6440_s2 + $0x408] sm:$0xff] }
  0x43   :  { %677 = vmatprep.mubr.f32.mxu1 %v519_v1  ;;  %607 = vmatmul.mubr.f32.vlgmr.msra.gmra.mxu0 %v516_v2  ;;  %v228_v1 = vld [vmem:[%s6440_s2 + $0x608] sm:$0xff]  ;;  %v163_v2 = vld [vmem:[%s6440_s2 + $0x400] sm:$0xff] }
  0x44   :  { %678 = vmatmul.mubr.f32.vlgmr.msra.gmra.mxu1 %v518_v3  ;;  %684 = vmatprep.subr.mxu0 %v194_v4  ;;  %v227_v3 = vld [vmem:[%s6440_s2 + $0x600] sm:$0xff]  ;;  %v226_v4 = vld [vmem:[%s6440_s2 + $0x5f8] sm:$0xff] }
  0x45   :  { %755 = vmatprep.subr.mxu1 %v258_v5  ;;  %685 = vmatpush1.msra.mxu0 %v193_v6  ;;  %v290_v5 = vld [vmem:[%s6440_s2 + $0x7f8] sm:$0xff]  ;;  %v225_v6 = vld [vmem:[%s6440_s2 + $0x5f0] sm:$0xff] }
  0x46   :  { %756 = vmatpush1.msra.mxu1 %v257_v7  ;;  %686 = vmatprep.subr.mxu0 %v192_v8  ;;  %v289_v7 = vld [vmem:[%s6440_s2 + $0x7f0] sm:$0xff]  ;;  %v224_v8 = vld [vmem:[%s6440_s2 + $0x5e8] sm:$0xff] }
  0x47   :  { %757 = vmatprep.subr.mxu1 %v256_v9  ;;  %687 = vmatpush1.msra.mxu0 %v191_v10  ;;  %v288_v9 = vld [vmem:[%s6440_s2 + $0x7e8] sm:$0xff]  ;;  %v223_v10 = vld [vmem:[%s6440_s2 + $0x5e0] sm:$0xff] }
  0x48   :  { %758 = vmatpush1.msra.mxu1 %v255_v11  ;;  %688 = vmatprep.subr.mxu0 %v190_v12  ;;  %v287_v11 = vld [vmem:[%s6440_s2 + $0x7e0] sm:$0xff]  ;;  %v222_v12 = vld [vmem:[%s6440_s2 + $0x5d8] sm:$0xff] }
  0x49   :  { %759 = vmatprep.subr.mxu1 %v254_v13  ;;  %689 = vmatpush1.msra.mxu0 %v189_v14  ;;  %v286_v13 = vld [vmem:[%s6440_s2 + $0x7d8] sm:$0xff]  ;;  %v221_v14 = vld [vmem:[%s6440_s2 + $0x5d0] sm:$0xff] }
  0x4a   :  { %760 = vmatpush1.msra.mxu1 %v253_v15  ;;  %690 = vmatprep.subr.mxu0 %v188_v16  ;;  %v285_v15 = vld [vmem:[%s6440_s2 + $0x7d0] sm:$0xff]  ;;  %v220_v16 = vld [vmem:[%s6440_s2 + $0x5c8] sm:$0xff] }
  0x4b   :  { %761 = vmatprep.subr.mxu1 %v252_v17  ;;  %691 = vmatpush1.msra.mxu0 %v187_v18  ;;  %v284_v17 = vld [vmem:[%s6440_s2 + $0x7c8] sm:$0xff]  ;;  %v219_v18 = vld [vmem:[%s6440_s2 + $0x5c0] sm:$0xff] }
  0x4c   :  { %762 = vmatpush1.msra.mxu1 %v251_v19  ;;  %692 = vmatprep.subr.mxu0 %v186_v20  ;;  %v283_v19 = vld [vmem:[%s6440_s2 + $0x7c0] sm:$0xff]  ;;  %v218_v20 = vld [vmem:[%s6440_s2 + $0x5b8] sm:$0xff] }
  0x4d   :  { %763 = vmatprep.subr.mxu1 %v250_v21  ;;  %693 = vmatpush1.msra.mxu0 %v185_v22  ;;  %v282_v21 = vld [vmem:[%s6440_s2 + $0x7b8] sm:$0xff]  ;;  %v217_v22 = vld [vmem:[%s6440_s2 + $0x5b0] sm:$0xff] }
  0x4e   :  { %764 = vmatpush1.msra.mxu1 %v249_v23  ;;  %694 = vmatprep.subr.mxu0 %v184_v24  ;;  %v281_v23 = vld [vmem:[%s6440_s2 + $0x7b0] sm:$0xff]  ;;  %v216_v24 = vld [vmem:[%s6440_s2 + $0x5a8] sm:$0xff] }
  0x4f   :  { %765 = vmatprep.subr.mxu1 %v248_v25  ;;  %695 = vmatpush1.msra.mxu0 %v183_v26  ;;  %v280_v25 = vld [vmem:[%s6440_s2 + $0x7a8] sm:$0xff]  ;;  %v215_v26 = vld [vmem:[%s6440_s2 + $0x5a0] sm:$0xff] }
  0x50   :  { %766 = vmatpush1.msra.mxu1 %v247_v27  ;;  %696 = vmatprep.subr.mxu0 %v182_v28  ;;  %v279_v27 = vld [vmem:[%s6440_s2 + $0x7a0] sm:$0xff]  ;;  %v214_v28 = vld [vmem:[%s6440_s2 + $0x598] sm:$0xff] }
  0x51   :  { %767 = vmatprep.subr.mxu1 %v246_v29  ;;  %697 = vmatpush1.msra.mxu0 %v181_v30  ;;  %v278_v29 = vld [vmem:[%s6440_s2 + $0x798] sm:$0xff]  ;;  %v213_v30 = vld [vmem:[%s6440_s2 + $0x590] sm:$0xff] }
  0x52   :  { %768 = vmatpush1.msra.mxu1 %v245_v31  ;;  %698 = vmatprep.subr.mxu0 %v180_v32  ;;  %v277_v31 = vld [vmem:[%s6440_s2 + $0x790] sm:$0xff]  ;;  %v212_v32 = vld [vmem:[%s6440_s2 + $0x588] sm:$0xff] }
  0x53   :  { %769 = vmatprep.subr.mxu1 %v244_v33  ;;  %699 = vmatpush1.msra.mxu0 %v179_v34  ;;  %v276_v33 = vld [vmem:[%s6440_s2 + $0x788] sm:$0xff]  ;;  %v211_v34 = vld [vmem:[%s6440_s2 + $0x580] sm:$0xff] }
  0x54   :  { %770 = vmatpush1.msra.mxu1 %v243_v35  ;;  %700 = vmatprep.subr.mxu0 %v178_v36  ;;  %v275_v35 = vld [vmem:[%s6440_s2 + $0x780] sm:$0xff]  ;;  %v210_v36 = vld [vmem:[%s6440_s2 + $0x578] sm:$0xff] }
  0x55   :  { %771 = vmatprep.subr.mxu1 %v242_v37  ;;  %701 = vmatpush1.msra.mxu0 %v177_v38  ;;  %v274_v37 = vld [vmem:[%s6440_s2 + $0x778] sm:$0xff]  ;;  %v209_v38 = vld [vmem:[%s6440_s2 + $0x570] sm:$0xff] }
  0x56   :  { %772 = vmatpush1.msra.mxu1 %v241_v39  ;;  %702 = vmatprep.subr.mxu0 %v176_v40  ;;  %v273_v39 = vld [vmem:[%s6440_s2 + $0x770] sm:$0xff]  ;;  %v208_v40 = vld [vmem:[%s6440_s2 + $0x568] sm:$0xff] }
  0x57   :  { %773 = vmatprep.subr.mxu1 %v240_v41  ;;  %703 = vmatpush1.msra.mxu0 %v175_v42  ;;  %v272_v41 = vld [vmem:[%s6440_s2 + $0x768] sm:$0xff]  ;;  %v207_v42 = vld [vmem:[%s6440_s2 + $0x560] sm:$0xff] }
  0x58   :  { %774 = vmatpush1.msra.mxu1 %v239_v43  ;;  %704 = vmatprep.subr.mxu0 %v174_v44  ;;  %v271_v43 = vld [vmem:[%s6440_s2 + $0x760] sm:$0xff]  ;;  %v206_v44 = vld [vmem:[%s6440_s2 + $0x558] sm:$0xff] }
  0x59   :  { %775 = vmatprep.subr.mxu1 %v238_v45  ;;  %705 = vmatpush1.msra.mxu0 %v173_v46  ;;  %v270_v45 = vld [vmem:[%s6440_s2 + $0x758] sm:$0xff]  ;;  %v205_v46 = vld [vmem:[%s6440_s2 + $0x550] sm:$0xff] }
  0x5a   :  { %776 = vmatpush1.msra.mxu1 %v237_v47  ;;  %706 = vmatprep.subr.mxu0 %v172_v48  ;;  %v269_v47 = vld [vmem:[%s6440_s2 + $0x750] sm:$0xff]  ;;  %v204_v48 = vld [vmem:[%s6440_s2 + $0x548] sm:$0xff] }
  0x5b   :  { %777 = vmatprep.subr.mxu1 %v236_v49  ;;  %707 = vmatpush1.msra.mxu0 %v171_v50  ;;  %v268_v49 = vld [vmem:[%s6440_s2 + $0x748] sm:$0xff]  ;;  %v203_v50 = vld [vmem:[%s6440_s2 + $0x540] sm:$0xff] }
  0x5c   :  { %778 = vmatpush1.msra.mxu1 %v235_v51  ;;  %708 = vmatprep.subr.mxu0 %v170_v52  ;;  %v267_v51 = vld [vmem:[%s6440_s2 + $0x740] sm:$0xff]  ;;  %v202_v52 = vld [vmem:[%s6440_s2 + $0x538] sm:$0xff] }
  0x5d   :  { %779 = vmatprep.subr.mxu1 %v234_v53  ;;  %709 = vmatpush1.msra.mxu0 %v169_v54  ;;  %v266_v53 = vld [vmem:[%s6440_s2 + $0x738] sm:$0xff]  ;;  %v201_v54 = vld [vmem:[%s6440_s2 + $0x530] sm:$0xff] }
  0x5e   :  { %780 = vmatpush1.msra.mxu1 %v233_v55  ;;  %710 = vmatprep.subr.mxu0 %v168_v56  ;;  %v265_v55 = vld [vmem:[%s6440_s2 + $0x730] sm:$0xff]  ;;  %v200_v56 = vld [vmem:[%s6440_s2 + $0x528] sm:$0xff] }
  0x5f   :  { %781 = vmatprep.subr.mxu1 %v232_v57  ;;  %711 = vmatpush1.msra.mxu0 %v167_v58  ;;  %v264_v57 = vld [vmem:[%s6440_s2 + $0x728] sm:$0xff]  ;;  %v199_v58 = vld [vmem:[%s6440_s2 + $0x520] sm:$0xff] }
  0x60   :  { %782 = vmatpush1.msra.mxu1 %v231_v59  ;;  %712 = vmatprep.subr.mxu0 %v166_v60  ;;  %v263_v59 = vld [vmem:[%s6440_s2 + $0x720] sm:$0xff]  ;;  %v198_v60 = vld [vmem:[%s6440_s2 + $0x518] sm:$0xff] }
  0x61   :  { %783 = vmatprep.subr.mxu1 %v230_v61  ;;  %713 = vmatpush1.msra.mxu0 %v165_v62  ;;  %v262_v61 = vld [vmem:[%s6440_s2 + $0x718] sm:$0xff]  ;;  %v197_v62 = vld [vmem:[%s6440_s2 + $0x510] sm:$0xff] }
  0x62   :  { %784 = vmatpush1.msra.mxu1 %v229_v63  ;;  %714 = vmatprep.subr.mxu0 %v164_v0  ;;  %v261_v63 = vld [vmem:[%s6440_s2 + $0x710] sm:$0xff]  ;;  %v196_v0 = vld [vmem:[%s6440_s2 + $0x508] sm:$0xff] }
  0x63   :  { %785 = vmatprep.subr.mxu1 %v228_v1  ;;  %715 = vmatpush1.msra.mxu0 %v163_v2  ;;  %v260_v1 = vld [vmem:[%s6440_s2 + $0x708] sm:$0xff]  ;;  %v195_v2 = vld [vmem:[%s6440_s2 + $0x500] sm:$0xff] }
  0x64   :  { %786 = vmatpush1.msra.mxu1 %v227_v3  ;;  %716 = vmatprep.subr.mxu0 %v226_v4  ;;  %v521_v3 = vld [vmem:[%s6441_s0 + $0x28] sm:$0xff]  ;;  %v259_v4 = vld [vmem:[%s6440_s2 + $0x700] sm:$0xff] }
  0x65   :  { %787 = vmatprep.subr.mxu1 %v290_v5  ;;  %717 = vmatpush2.msra.mxu0 %v225_v6  ;;  %v523_v5 = vld [vmem:[%s6441_s0 + $0x38] sm:$0xff]  ;;  %v520_v6 = vld [vmem:[%s6441_s0 + $0x20] sm:$0xff] }
  0x66   :  { %788 = vmatpush2.msra.mxu1 %v289_v7  ;;  %718 = vmatprep.subr.mxu0 %v224_v8  ;;  %v522_v7 = vld [vmem:[%s6441_s0 + $0x30] sm:$0xff]  ;;  %v322_v8 = vld [vmem:[%s6440_s2 + $0x8f8] sm:$0xff] }
  0x67   :  { %789 = vmatprep.subr.mxu1 %v288_v9  ;;  %719 = vmatpush2.msra.mxu0 %v223_v10  ;;  %v386_v9 = vld [vmem:[%s6440_s2 + $0xaf8] sm:$0xff]  ;;  %v321_v10 = vld [vmem:[%s6440_s2 + $0x8f0] sm:$0xff] }
  0x68   :  { %790 = vmatpush2.msra.mxu1 %v287_v11  ;;  %720 = vmatprep.subr.mxu0 %v222_v12  ;;  %v385_v11 = vld [vmem:[%s6440_s2 + $0xaf0] sm:$0xff]  ;;  %v320_v12 = vld [vmem:[%s6440_s2 + $0x8e8] sm:$0xff] }
  0x69   :  { %791 = vmatprep.subr.mxu1 %v286_v13  ;;  %721 = vmatpush2.msra.mxu0 %v221_v14  ;;  %v384_v13 = vld [vmem:[%s6440_s2 + $0xae8] sm:$0xff]  ;;  %v319_v14 = vld [vmem:[%s6440_s2 + $0x8e0] sm:$0xff] }
  0x6a   :  { %792 = vmatpush2.msra.mxu1 %v285_v15  ;;  %722 = vmatprep.subr.mxu0 %v220_v16  ;;  %v383_v15 = vld [vmem:[%s6440_s2 + $0xae0] sm:$0xff]  ;;  %v318_v16 = vld [vmem:[%s6440_s2 + $0x8d8] sm:$0xff] }
  0x6b   :  { %793 = vmatprep.subr.mxu1 %v284_v17  ;;  %723 = vmatpush2.msra.mxu0 %v219_v18  ;;  %v382_v17 = vld [vmem:[%s6440_s2 + $0xad8] sm:$0xff]  ;;  %v317_v18 = vld [vmem:[%s6440_s2 + $0x8d0] sm:$0xff] }
  0x6c   :  { %794 = vmatpush2.msra.mxu1 %v283_v19  ;;  %724 = vmatprep.subr.mxu0 %v218_v20  ;;  %v381_v19 = vld [vmem:[%s6440_s2 + $0xad0] sm:$0xff]  ;;  %v316_v20 = vld [vmem:[%s6440_s2 + $0x8c8] sm:$0xff] }
  0x6d   :  { %795 = vmatprep.subr.mxu1 %v282_v21  ;;  %725 = vmatpush2.msra.mxu0 %v217_v22  ;;  %v380_v21 = vld [vmem:[%s6440_s2 + $0xac8] sm:$0xff]  ;;  %v315_v22 = vld [vmem:[%s6440_s2 + $0x8c0] sm:$0xff] }
  0x6e   :  { %796 = vmatpush2.msra.mxu1 %v281_v23  ;;  %726 = vmatprep.subr.mxu0 %v216_v24  ;;  %v379_v23 = vld [vmem:[%s6440_s2 + $0xac0] sm:$0xff]  ;;  %v314_v24 = vld [vmem:[%s6440_s2 + $0x8b8] sm:$0xff] }
  0x6f   :  { %797 = vmatprep.subr.mxu1 %v280_v25  ;;  %727 = vmatpush2.msra.mxu0 %v215_v26  ;;  %v378_v25 = vld [vmem:[%s6440_s2 + $0xab8] sm:$0xff]  ;;  %v313_v26 = vld [vmem:[%s6440_s2 + $0x8b0] sm:$0xff] }
  0x70   :  { %798 = vmatpush2.msra.mxu1 %v279_v27  ;;  %728 = vmatprep.subr.mxu0 %v214_v28  ;;  %v377_v27 = vld [vmem:[%s6440_s2 + $0xab0] sm:$0xff]  ;;  %v312_v28 = vld [vmem:[%s6440_s2 + $0x8a8] sm:$0xff] }
  0x71   :  { %799 = vmatprep.subr.mxu1 %v278_v29  ;;  %729 = vmatpush2.msra.mxu0 %v213_v30  ;;  %v376_v29 = vld [vmem:[%s6440_s2 + $0xaa8] sm:$0xff]  ;;  %v311_v30 = vld [vmem:[%s6440_s2 + $0x8a0] sm:$0xff] }
  0x72   :  { %800 = vmatpush2.msra.mxu1 %v277_v31  ;;  %730 = vmatprep.subr.mxu0 %v212_v32  ;;  %v375_v31 = vld [vmem:[%s6440_s2 + $0xaa0] sm:$0xff]  ;;  %v310_v32 = vld [vmem:[%s6440_s2 + $0x898] sm:$0xff] }
  0x73   :  { %801 = vmatprep.subr.mxu1 %v276_v33  ;;  %731 = vmatpush2.msra.mxu0 %v211_v34  ;;  %v374_v33 = vld [vmem:[%s6440_s2 + $0xa98] sm:$0xff]  ;;  %v309_v34 = vld [vmem:[%s6440_s2 + $0x890] sm:$0xff] }
  0x74   :  { %802 = vmatpush2.msra.mxu1 %v275_v35  ;;  %732 = vmatprep.subr.mxu0 %v210_v36  ;;  %v373_v35 = vld [vmem:[%s6440_s2 + $0xa90] sm:$0xff]  ;;  %v308_v36 = vld [vmem:[%s6440_s2 + $0x888] sm:$0xff] }
  0x75   :  { %803 = vmatprep.subr.mxu1 %v274_v37  ;;  %733 = vmatpush2.msra.mxu0 %v209_v38  ;;  %v372_v37 = vld [vmem:[%s6440_s2 + $0xa88] sm:$0xff]  ;;  %v307_v38 = vld [vmem:[%s6440_s2 + $0x880] sm:$0xff] }
  0x76   :  { %804 = vmatpush2.msra.mxu1 %v273_v39  ;;  %734 = vmatprep.subr.mxu0 %v208_v40  ;;  %v371_v39 = vld [vmem:[%s6440_s2 + $0xa80] sm:$0xff]  ;;  %v306_v40 = vld [vmem:[%s6440_s2 + $0x878] sm:$0xff] }
  0x77   :  { %805 = vmatprep.subr.mxu1 %v272_v41  ;;  %735 = vmatpush2.msra.mxu0 %v207_v42  ;;  %v370_v41 = vld [vmem:[%s6440_s2 + $0xa78] sm:$0xff]  ;;  %v305_v42 = vld [vmem:[%s6440_s2 + $0x870] sm:$0xff] }
  0x78   :  { %806 = vmatpush2.msra.mxu1 %v271_v43  ;;  %736 = vmatprep.subr.mxu0 %v206_v44  ;;  %v369_v43 = vld [vmem:[%s6440_s2 + $0xa70] sm:$0xff]  ;;  %v304_v44 = vld [vmem:[%s6440_s2 + $0x868] sm:$0xff] }
  0x79   :  { %807 = vmatprep.subr.mxu1 %v270_v45  ;;  %737 = vmatpush2.msra.mxu0 %v205_v46  ;;  %v368_v45 = vld [vmem:[%s6440_s2 + $0xa68] sm:$0xff]  ;;  %v303_v46 = vld [vmem:[%s6440_s2 + $0x860] sm:$0xff] }
  0x7a   :  { %808 = vmatpush2.msra.mxu1 %v269_v47  ;;  %738 = vmatprep.subr.mxu0 %v204_v48  ;;  %v367_v47 = vld [vmem:[%s6440_s2 + $0xa60] sm:$0xff]  ;;  %v302_v48 = vld [vmem:[%s6440_s2 + $0x858] sm:$0xff] }
  0x7b   :  { %809 = vmatprep.subr.mxu1 %v268_v49  ;;  %739 = vmatpush2.msra.mxu0 %v203_v50  ;;  %v366_v49 = vld [vmem:[%s6440_s2 + $0xa58] sm:$0xff]  ;;  %v301_v50 = vld [vmem:[%s6440_s2 + $0x850] sm:$0xff] }
  0x7c   :  { %810 = vmatpush2.msra.mxu1 %v267_v51  ;;  %740 = vmatprep.subr.mxu0 %v202_v52  ;;  %v365_v51 = vld [vmem:[%s6440_s2 + $0xa50] sm:$0xff]  ;;  %v300_v52 = vld [vmem:[%s6440_s2 + $0x848] sm:$0xff] }
  0x7d   :  { %811 = vmatprep.subr.mxu1 %v266_v53  ;;  %741 = vmatpush2.msra.mxu0 %v201_v54  ;;  %v364_v53 = vld [vmem:[%s6440_s2 + $0xa48] sm:$0xff]  ;;  %v299_v54 = vld [vmem:[%s6440_s2 + $0x840] sm:$0xff] }
  0x7e   :  { %812 = vmatpush2.msra.mxu1 %v265_v55  ;;  %742 = vmatprep.subr.mxu0 %v200_v56  ;;  %v363_v55 = vld [vmem:[%s6440_s2 + $0xa40] sm:$0xff]  ;;  %v298_v56 = vld [vmem:[%s6440_s2 + $0x838] sm:$0xff] }
  0x7f   :  { %813 = vmatprep.subr.mxu1 %v264_v57  ;;  %743 = vmatpush2.msra.mxu0 %v199_v58  ;;  %v362_v57 = vld [vmem:[%s6440_s2 + $0xa38] sm:$0xff]  ;;  %v297_v58 = vld [vmem:[%s6440_s2 + $0x830] sm:$0xff] }
  0x80   :  { %814 = vmatpush2.msra.mxu1 %v263_v59  ;;  %744 = vmatprep.subr.mxu0 %v198_v60  ;;  %v361_v59 = vld [vmem:[%s6440_s2 + $0xa30] sm:$0xff]  ;;  %v296_v60 = vld [vmem:[%s6440_s2 + $0x828] sm:$0xff] }
  0x81   :  { %815 = vmatprep.subr.mxu1 %v262_v61  ;;  %745 = vmatpush2.msra.mxu0 %v197_v62  ;;  %v360_v61 = vld [vmem:[%s6440_s2 + $0xa28] sm:$0xff]  ;;  %v295_v62 = vld [vmem:[%s6440_s2 + $0x820] sm:$0xff] }
  0x82   :  { %816 = vmatpush2.msra.mxu1 %v261_v63  ;;  %746 = vmatprep.subr.mxu0 %v196_v0  ;;  %v359_v63 = vld [vmem:[%s6440_s2 + $0xa20] sm:$0xff]  ;;  %v294_v0 = vld [vmem:[%s6440_s2 + $0x818] sm:$0xff] }
  0x83   :  { %817 = vmatprep.subr.mxu1 %v260_v1  ;;  %747 = vmatpush2.msra.mxu0 %v195_v2  ;;  %v358_v1 = vld [vmem:[%s6440_s2 + $0xa18] sm:$0xff]  ;;  %v293_v2 = vld [vmem:[%s6440_s2 + $0x810] sm:$0xff] }
  0x84   :  { %748 = vmatprep.mubr.f32.mxu0 %v521_v3  ;;  %818 = vmatpush2.msra.mxu1 %v259_v4  ;;  %v357_v3 = vld [vmem:[%s6440_s2 + $0xa10] sm:$0xff]  ;;  %v292_v4 = vld [vmem:[%s6440_s2 + $0x808] sm:$0xff] }
  0x85   :  { %819 = vmatprep.mubr.f32.mxu1 %v523_v5  ;;  %749 = vmatmul.mubr.f32.vlgmr.msra.gmra.mxu0 %v520_v6  ;;  %v356_v5 = vld [vmem:[%s6440_s2 + $0xa08] sm:$0xff]  ;;  %v291_v6 = vld [vmem:[%s6440_s2 + $0x800] sm:$0xff] }
  0x86   :  { %820 = vmatmul.mubr.f32.vlgmr.msra.gmra.mxu1 %v522_v7  ;;  %826 = vmatprep.subr.mxu0 %v322_v8  ;;  %v355_v7 = vld [vmem:[%s6440_s2 + $0xa00] sm:$0xff]  ;;  %v354_v8 = vld [vmem:[%s6440_s2 + $0x9f8] sm:$0xff] }
  0x87   :  { %897 = vmatprep.subr.mxu1 %v386_v9  ;;  %827 = vmatpush1.msra.mxu0 %v321_v10  ;;  %v418_v9 = vld [vmem:[%s6440_s2 + $0xbf8] sm:$0xff]  ;;  %v353_v10 = vld [vmem:[%s6440_s2 + $0x9f0] sm:$0xff] }
  0x88   :  { %898 = vmatpush1.msra.mxu1 %v385_v11  ;;  %828 = vmatprep.subr.mxu0 %v320_v12  ;;  %v417_v11 = vld [vmem:[%s6440_s2 + $0xbf0] sm:$0xff]  ;;  %v352_v12 = vld [vmem:[%s6440_s2 + $0x9e8] sm:$0xff] }
  0x89   :  { %899 = vmatprep.subr.mxu1 %v384_v13  ;;  %829 = vmatpush1.msra.mxu0 %v319_v14  ;;  %v416_v13 = vld [vmem:[%s6440_s2 + $0xbe8] sm:$0xff]  ;;  %v351_v14 = vld [vmem:[%s6440_s2 + $0x9e0] sm:$0xff] }
  0x8a   :  { %900 = vmatpush1.msra.mxu1 %v383_v15  ;;  %830 = vmatprep.subr.mxu0 %v318_v16  ;;  %v415_v15 = vld [vmem:[%s6440_s2 + $0xbe0] sm:$0xff]  ;;  %v350_v16 = vld [vmem:[%s6440_s2 + $0x9d8] sm:$0xff] }
  0x8b   :  { %901 = vmatprep.subr.mxu1 %v382_v17  ;;  %831 = vmatpush1.msra.mxu0 %v317_v18  ;;  %v414_v17 = vld [vmem:[%s6440_s2 + $0xbd8] sm:$0xff]  ;;  %v349_v18 = vld [vmem:[%s6440_s2 + $0x9d0] sm:$0xff] }
  0x8c   :  { %902 = vmatpush1.msra.mxu1 %v381_v19  ;;  %832 = vmatprep.subr.mxu0 %v316_v20  ;;  %v413_v19 = vld [vmem:[%s6440_s2 + $0xbd0] sm:$0xff]  ;;  %v348_v20 = vld [vmem:[%s6440_s2 + $0x9c8] sm:$0xff] }
  0x8d   :  { %903 = vmatprep.subr.mxu1 %v380_v21  ;;  %833 = vmatpush1.msra.mxu0 %v315_v22  ;;  %v412_v21 = vld [vmem:[%s6440_s2 + $0xbc8] sm:$0xff]  ;;  %v347_v22 = vld [vmem:[%s6440_s2 + $0x9c0] sm:$0xff] }
  0x8e   :  { %904 = vmatpush1.msra.mxu1 %v379_v23  ;;  %834 = vmatprep.subr.mxu0 %v314_v24  ;;  %v411_v23 = vld [vmem:[%s6440_s2 + $0xbc0] sm:$0xff]  ;;  %v346_v24 = vld [vmem:[%s6440_s2 + $0x9b8] sm:$0xff] }
  0x8f   :  { %905 = vmatprep.subr.mxu1 %v378_v25  ;;  %835 = vmatpush1.msra.mxu0 %v313_v26  ;;  %v410_v25 = vld [vmem:[%s6440_s2 + $0xbb8] sm:$0xff]  ;;  %v345_v26 = vld [vmem:[%s6440_s2 + $0x9b0] sm:$0xff] }
  0x90   :  { %906 = vmatpush1.msra.mxu1 %v377_v27  ;;  %836 = vmatprep.subr.mxu0 %v312_v28  ;;  %v409_v27 = vld [vmem:[%s6440_s2 + $0xbb0] sm:$0xff]  ;;  %v344_v28 = vld [vmem:[%s6440_s2 + $0x9a8] sm:$0xff] }
  0x91   :  { %907 = vmatprep.subr.mxu1 %v376_v29  ;;  %837 = vmatpush1.msra.mxu0 %v311_v30  ;;  %v408_v29 = vld [vmem:[%s6440_s2 + $0xba8] sm:$0xff]  ;;  %v343_v30 = vld [vmem:[%s6440_s2 + $0x9a0] sm:$0xff] }
  0x92   :  { %908 = vmatpush1.msra.mxu1 %v375_v31  ;;  %838 = vmatprep.subr.mxu0 %v310_v32  ;;  %v407_v31 = vld [vmem:[%s6440_s2 + $0xba0] sm:$0xff]  ;;  %v342_v32 = vld [vmem:[%s6440_s2 + $0x998] sm:$0xff] }
  0x93   :  { %909 = vmatprep.subr.mxu1 %v374_v33  ;;  %839 = vmatpush1.msra.mxu0 %v309_v34  ;;  %v406_v33 = vld [vmem:[%s6440_s2 + $0xb98] sm:$0xff]  ;;  %v341_v34 = vld [vmem:[%s6440_s2 + $0x990] sm:$0xff] }
  0x94   :  { %910 = vmatpush1.msra.mxu1 %v373_v35  ;;  %840 = vmatprep.subr.mxu0 %v308_v36  ;;  %v405_v35 = vld [vmem:[%s6440_s2 + $0xb90] sm:$0xff]  ;;  %v340_v36 = vld [vmem:[%s6440_s2 + $0x988] sm:$0xff] }
  0x95   :  { %911 = vmatprep.subr.mxu1 %v372_v37  ;;  %841 = vmatpush1.msra.mxu0 %v307_v38  ;;  %v404_v37 = vld [vmem:[%s6440_s2 + $0xb88] sm:$0xff]  ;;  %v339_v38 = vld [vmem:[%s6440_s2 + $0x980] sm:$0xff] }
  0x96   :  { %912 = vmatpush1.msra.mxu1 %v371_v39  ;;  %842 = vmatprep.subr.mxu0 %v306_v40  ;;  %v403_v39 = vld [vmem:[%s6440_s2 + $0xb80] sm:$0xff]  ;;  %v338_v40 = vld [vmem:[%s6440_s2 + $0x978] sm:$0xff] }
  0x97   :  { %913 = vmatprep.subr.mxu1 %v370_v41  ;;  %843 = vmatpush1.msra.mxu0 %v305_v42  ;;  %v402_v41 = vld [vmem:[%s6440_s2 + $0xb78] sm:$0xff]  ;;  %v337_v42 = vld [vmem:[%s6440_s2 + $0x970] sm:$0xff] }
  0x98   :  { %914 = vmatpush1.msra.mxu1 %v369_v43  ;;  %844 = vmatprep.subr.mxu0 %v304_v44  ;;  %v401_v43 = vld [vmem:[%s6440_s2 + $0xb70] sm:$0xff]  ;;  %v336_v44 = vld [vmem:[%s6440_s2 + $0x968] sm:$0xff] }
  0x99   :  { %915 = vmatprep.subr.mxu1 %v368_v45  ;;  %845 = vmatpush1.msra.mxu0 %v303_v46  ;;  %v400_v45 = vld [vmem:[%s6440_s2 + $0xb68] sm:$0xff]  ;;  %v335_v46 = vld [vmem:[%s6440_s2 + $0x960] sm:$0xff] }
  0x9a   :  { %916 = vmatpush1.msra.mxu1 %v367_v47  ;;  %846 = vmatprep.subr.mxu0 %v302_v48  ;;  %v399_v47 = vld [vmem:[%s6440_s2 + $0xb60] sm:$0xff]  ;;  %v334_v48 = vld [vmem:[%s6440_s2 + $0x958] sm:$0xff] }
  0x9b   :  { %917 = vmatprep.subr.mxu1 %v366_v49  ;;  %847 = vmatpush1.msra.mxu0 %v301_v50  ;;  %v398_v49 = vld [vmem:[%s6440_s2 + $0xb58] sm:$0xff]  ;;  %v333_v50 = vld [vmem:[%s6440_s2 + $0x950] sm:$0xff] }
  0x9c   :  { %918 = vmatpush1.msra.mxu1 %v365_v51  ;;  %848 = vmatprep.subr.mxu0 %v300_v52  ;;  %v397_v51 = vld [vmem:[%s6440_s2 + $0xb50] sm:$0xff]  ;;  %v332_v52 = vld [vmem:[%s6440_s2 + $0x948] sm:$0xff] }
  0x9d   :  { %919 = vmatprep.subr.mxu1 %v364_v53  ;;  %849 = vmatpush1.msra.mxu0 %v299_v54  ;;  %v396_v53 = vld [vmem:[%s6440_s2 + $0xb48] sm:$0xff]  ;;  %v331_v54 = vld [vmem:[%s6440_s2 + $0x940] sm:$0xff] }
  0x9e   :  { %920 = vmatpush1.msra.mxu1 %v363_v55  ;;  %850 = vmatprep.subr.mxu0 %v298_v56  ;;  %v395_v55 = vld [vmem:[%s6440_s2 + $0xb40] sm:$0xff]  ;;  %v330_v56 = vld [vmem:[%s6440_s2 + $0x938] sm:$0xff] }
  0x9f   :  { %921 = vmatprep.subr.mxu1 %v362_v57  ;;  %851 = vmatpush1.msra.mxu0 %v297_v58  ;;  %v394_v57 = vld [vmem:[%s6440_s2 + $0xb38] sm:$0xff]  ;;  %v329_v58 = vld [vmem:[%s6440_s2 + $0x930] sm:$0xff] }
  0xa0   :  { %922 = vmatpush1.msra.mxu1 %v361_v59  ;;  %852 = vmatprep.subr.mxu0 %v296_v60  ;;  %v393_v59 = vld [vmem:[%s6440_s2 + $0xb30] sm:$0xff]  ;;  %v328_v60 = vld [vmem:[%s6440_s2 + $0x928] sm:$0xff] }
  0xa1   :  { %923 = vmatprep.subr.mxu1 %v360_v61  ;;  %853 = vmatpush1.msra.mxu0 %v295_v62  ;;  %v392_v61 = vld [vmem:[%s6440_s2 + $0xb28] sm:$0xff]  ;;  %v327_v62 = vld [vmem:[%s6440_s2 + $0x920] sm:$0xff] }
  0xa2   :  { %924 = vmatpush1.msra.mxu1 %v359_v63  ;;  %854 = vmatprep.subr.mxu0 %v294_v0  ;;  %v391_v63 = vld [vmem:[%s6440_s2 + $0xb20] sm:$0xff]  ;;  %v326_v0 = vld [vmem:[%s6440_s2 + $0x918] sm:$0xff] }
  0xa3   :  { %925 = vmatprep.subr.mxu1 %v358_v1  ;;  %855 = vmatpush1.msra.mxu0 %v293_v2  ;;  %v390_v1 = vld [vmem:[%s6440_s2 + $0xb18] sm:$0xff]  ;;  %v325_v2 = vld [vmem:[%s6440_s2 + $0x910] sm:$0xff] }
  0xa4   :  { %926 = vmatpush1.msra.mxu1 %v357_v3  ;;  %856 = vmatprep.subr.mxu0 %v292_v4  ;;  %v389_v3 = vld [vmem:[%s6440_s2 + $0xb10] sm:$0xff]  ;;  %v324_v4 = vld [vmem:[%s6440_s2 + $0x908] sm:$0xff] }
  0xa5   :  { %927 = vmatprep.subr.mxu1 %v356_v5  ;;  %857 = vmatpush1.msra.mxu0 %v291_v6  ;;  %v388_v5 = vld [vmem:[%s6440_s2 + $0xb08] sm:$0xff]  ;;  %v323_v6 = vld [vmem:[%s6440_s2 + $0x900] sm:$0xff] }
  0xa6   :  { %928 = vmatpush1.msra.mxu1 %v355_v7  ;;  %858 = vmatprep.subr.mxu0 %v354_v8  ;;  %v525_v7 = vld [vmem:[%s6441_s0 + $0x48] sm:$0xff]  ;;  %v387_v8 = vld [vmem:[%s6440_s2 + $0xb00] sm:$0xff] }
  0xa7   :  { %929 = vmatprep.subr.mxu1 %v418_v9  ;;  %859 = vmatpush2.msra.mxu0 %v353_v10  ;;  %v527_v9 = vld [vmem:[%s6441_s0 + $0x58] sm:$0xff]  ;;  %v524_v10 = vld [vmem:[%s6441_s0 + $0x40] sm:$0xff] }
  0xa8   :  { %930 = vmatpush2.msra.mxu1 %v417_v11  ;;  %860 = vmatprep.subr.mxu0 %v352_v12  ;;  %v526_v11 = vld [vmem:[%s6441_s0 + $0x50] sm:$0xff]  ;;  %v450_v12 = vld [vmem:[%s6440_s2 + $0xcf8] sm:$0xff] }
  0xa9   :  { %931 = vmatprep.subr.mxu1 %v416_v13  ;;  %861 = vmatpush2.msra.mxu0 %v351_v14  ;;  %v514_v13 = vld [vmem:[%s6440_s2 + $0xef8] sm:$0xff]  ;;  %v449_v14 = vld [vmem:[%s6440_s2 + $0xcf0] sm:$0xff] }
  0xaa   :  { %932 = vmatpush2.msra.mxu1 %v415_v15  ;;  %862 = vmatprep.subr.mxu0 %v350_v16  ;;  %v513_v15 = vld [vmem:[%s6440_s2 + $0xef0] sm:$0xff]  ;;  %v448_v16 = vld [vmem:[%s6440_s2 + $0xce8] sm:$0xff] }
  0xab   :  { %933 = vmatprep.subr.mxu1 %v414_v17  ;;  %863 = vmatpush2.msra.mxu0 %v349_v18  ;;  %v512_v17 = vld [vmem:[%s6440_s2 + $0xee8] sm:$0xff]  ;;  %v447_v18 = vld [vmem:[%s6440_s2 + $0xce0] sm:$0xff] }
  0xac   :  { %934 = vmatpush2.msra.mxu1 %v413_v19  ;;  %864 = vmatprep.subr.mxu0 %v348_v20  ;;  %v511_v19 = vld [vmem:[%s6440_s2 + $0xee0] sm:$0xff]  ;;  %v446_v20 = vld [vmem:[%s6440_s2 + $0xcd8] sm:$0xff] }
  0xad   :  { %935 = vmatprep.subr.mxu1 %v412_v21  ;;  %865 = vmatpush2.msra.mxu0 %v347_v22  ;;  %v510_v21 = vld [vmem:[%s6440_s2 + $0xed8] sm:$0xff]  ;;  %v445_v22 = vld [vmem:[%s6440_s2 + $0xcd0] sm:$0xff] }
  0xae   :  { %936 = vmatpush2.msra.mxu1 %v411_v23  ;;  %866 = vmatprep.subr.mxu0 %v346_v24  ;;  %v509_v23 = vld [vmem:[%s6440_s2 + $0xed0] sm:$0xff]  ;;  %v444_v24 = vld [vmem:[%s6440_s2 + $0xcc8] sm:$0xff] }
  0xaf   :  { %937 = vmatprep.subr.mxu1 %v410_v25  ;;  %867 = vmatpush2.msra.mxu0 %v345_v26  ;;  %v508_v25 = vld [vmem:[%s6440_s2 + $0xec8] sm:$0xff]  ;;  %v443_v26 = vld [vmem:[%s6440_s2 + $0xcc0] sm:$0xff] }
  0xb0   :  { %938 = vmatpush2.msra.mxu1 %v409_v27  ;;  %868 = vmatprep.subr.mxu0 %v344_v28  ;;  %v507_v27 = vld [vmem:[%s6440_s2 + $0xec0] sm:$0xff]  ;;  %v442_v28 = vld [vmem:[%s6440_s2 + $0xcb8] sm:$0xff] }
  0xb1   :  { %939 = vmatprep.subr.mxu1 %v408_v29  ;;  %869 = vmatpush2.msra.mxu0 %v343_v30  ;;  %v506_v29 = vld [vmem:[%s6440_s2 + $0xeb8] sm:$0xff]  ;;  %v441_v30 = vld [vmem:[%s6440_s2 + $0xcb0] sm:$0xff] }
  0xb2   :  { %940 = vmatpush2.msra.mxu1 %v407_v31  ;;  %870 = vmatprep.subr.mxu0 %v342_v32  ;;  %v505_v31 = vld [vmem:[%s6440_s2 + $0xeb0] sm:$0xff]  ;;  %v440_v32 = vld [vmem:[%s6440_s2 + $0xca8] sm:$0xff] }
  0xb3   :  { %941 = vmatprep.subr.mxu1 %v406_v33  ;;  %871 = vmatpush2.msra.mxu0 %v341_v34  ;;  %v504_v33 = vld [vmem:[%s6440_s2 + $0xea8] sm:$0xff]  ;;  %v439_v34 = vld [vmem:[%s6440_s2 + $0xca0] sm:$0xff] }
  0xb4   :  { %942 = vmatpush2.msra.mxu1 %v405_v35  ;;  %872 = vmatprep.subr.mxu0 %v340_v36  ;;  %v503_v35 = vld [vmem:[%s6440_s2 + $0xea0] sm:$0xff]  ;;  %v438_v36 = vld [vmem:[%s6440_s2 + $0xc98] sm:$0xff] }
  0xb5   :  { %943 = vmatprep.subr.mxu1 %v404_v37  ;;  %873 = vmatpush2.msra.mxu0 %v339_v38  ;;  %v502_v37 = vld [vmem:[%s6440_s2 + $0xe98] sm:$0xff]  ;;  %v437_v38 = vld [vmem:[%s6440_s2 + $0xc90] sm:$0xff] }
  0xb6   :  { %944 = vmatpush2.msra.mxu1 %v403_v39  ;;  %874 = vmatprep.subr.mxu0 %v338_v40  ;;  %v501_v39 = vld [vmem:[%s6440_s2 + $0xe90] sm:$0xff]  ;;  %v436_v40 = vld [vmem:[%s6440_s2 + $0xc88] sm:$0xff] }
  0xb7   :  { %945 = vmatprep.subr.mxu1 %v402_v41  ;;  %875 = vmatpush2.msra.mxu0 %v337_v42  ;;  %v500_v41 = vld [vmem:[%s6440_s2 + $0xe88] sm:$0xff]  ;;  %v435_v42 = vld [vmem:[%s6440_s2 + $0xc80] sm:$0xff] }
  0xb8   :  { %946 = vmatpush2.msra.mxu1 %v401_v43  ;;  %876 = vmatprep.subr.mxu0 %v336_v44  ;;  %v499_v43 = vld [vmem:[%s6440_s2 + $0xe80] sm:$0xff]  ;;  %v434_v44 = vld [vmem:[%s6440_s2 + $0xc78] sm:$0xff] }
  0xb9   :  { %947 = vmatprep.subr.mxu1 %v400_v45  ;;  %877 = vmatpush2.msra.mxu0 %v335_v46  ;;  %v498_v45 = vld [vmem:[%s6440_s2 + $0xe78] sm:$0xff]  ;;  %v433_v46 = vld [vmem:[%s6440_s2 + $0xc70] sm:$0xff] }
  0xba   :  { %948 = vmatpush2.msra.mxu1 %v399_v47  ;;  %878 = vmatprep.subr.mxu0 %v334_v48  ;;  %v497_v47 = vld [vmem:[%s6440_s2 + $0xe70] sm:$0xff]  ;;  %v432_v48 = vld [vmem:[%s6440_s2 + $0xc68] sm:$0xff] }
  0xbb   :  { %949 = vmatprep.subr.mxu1 %v398_v49  ;;  %879 = vmatpush2.msra.mxu0 %v333_v50  ;;  %v496_v49 = vld [vmem:[%s6440_s2 + $0xe68] sm:$0xff]  ;;  %v431_v50 = vld [vmem:[%s6440_s2 + $0xc60] sm:$0xff] }
  0xbc   :  { %950 = vmatpush2.msra.mxu1 %v397_v51  ;;  %880 = vmatprep.subr.mxu0 %v332_v52  ;;  %v495_v51 = vld [vmem:[%s6440_s2 + $0xe60] sm:$0xff]  ;;  %v430_v52 = vld [vmem:[%s6440_s2 + $0xc58] sm:$0xff] }
  0xbd   :  { %951 = vmatprep.subr.mxu1 %v396_v53  ;;  %881 = vmatpush2.msra.mxu0 %v331_v54  ;;  %v494_v53 = vld [vmem:[%s6440_s2 + $0xe58] sm:$0xff]  ;;  %v429_v54 = vld [vmem:[%s6440_s2 + $0xc50] sm:$0xff] }
  0xbe   :  { %952 = vmatpush2.msra.mxu1 %v395_v55  ;;  %882 = vmatprep.subr.mxu0 %v330_v56  ;;  %v493_v55 = vld [vmem:[%s6440_s2 + $0xe50] sm:$0xff]  ;;  %v428_v56 = vld [vmem:[%s6440_s2 + $0xc48] sm:$0xff] }
  0xbf   :  { %953 = vmatprep.subr.mxu1 %v394_v57  ;;  %883 = vmatpush2.msra.mxu0 %v329_v58  ;;  %v492_v57 = vld [vmem:[%s6440_s2 + $0xe48] sm:$0xff]  ;;  %v427_v58 = vld [vmem:[%s6440_s2 + $0xc40] sm:$0xff] }
  0xc0   :  { %954 = vmatpush2.msra.mxu1 %v393_v59  ;;  %884 = vmatprep.subr.mxu0 %v328_v60  ;;  %v491_v59 = vld [vmem:[%s6440_s2 + $0xe40] sm:$0xff]  ;;  %v426_v60 = vld [vmem:[%s6440_s2 + $0xc38] sm:$0xff] }
  0xc1   :  { %955 = vmatprep.subr.mxu1 %v392_v61  ;;  %885 = vmatpush2.msra.mxu0 %v327_v62  ;;  %v490_v61 = vld [vmem:[%s6440_s2 + $0xe38] sm:$0xff]  ;;  %v425_v62 = vld [vmem:[%s6440_s2 + $0xc30] sm:$0xff] }
  0xc2   :  { %956 = vmatpush2.msra.mxu1 %v391_v63  ;;  %886 = vmatprep.subr.mxu0 %v326_v0  ;;  %v489_v63 = vld [vmem:[%s6440_s2 + $0xe30] sm:$0xff]  ;;  %v424_v0 = vld [vmem:[%s6440_s2 + $0xc28] sm:$0xff] }
  0xc3   :  { %957 = vmatprep.subr.mxu1 %v390_v1  ;;  %887 = vmatpush2.msra.mxu0 %v325_v2  ;;  %v488_v1 = vld [vmem:[%s6440_s2 + $0xe28] sm:$0xff]  ;;  %v423_v2 = vld [vmem:[%s6440_s2 + $0xc20] sm:$0xff] }
  0xc4   :  { %958 = vmatpush2.msra.mxu1 %v389_v3  ;;  %888 = vmatprep.subr.mxu0 %v324_v4  ;;  %v487_v3 = vld [vmem:[%s6440_s2 + $0xe20] sm:$0xff]  ;;  %v422_v4 = vld [vmem:[%s6440_s2 + $0xc18] sm:$0xff] }
  0xc5   :  { %959 = vmatprep.subr.mxu1 %v388_v5  ;;  %889 = vmatpush2.msra.mxu0 %v323_v6  ;;  %v486_v5 = vld [vmem:[%s6440_s2 + $0xe18] sm:$0xff]  ;;  %v421_v6 = vld [vmem:[%s6440_s2 + $0xc10] sm:$0xff] }
  0xc6   :  { %890 = vmatprep.mubr.f32.mxu0 %v525_v7  ;;  %960 = vmatpush2.msra.mxu1 %v387_v8  ;;  %v485_v7 = vld [vmem:[%s6440_s2 + $0xe10] sm:$0xff]  ;;  %v420_v8 = vld [vmem:[%s6440_s2 + $0xc08] sm:$0xff] }
  0xc7   :  { %961 = vmatprep.mubr.f32.mxu1 %v527_v9  ;;  %891 = vmatmul.mubr.f32.vlgmr.msra.gmra.mxu0 %v524_v10  ;;  %v484_v9 = vld [vmem:[%s6440_s2 + $0xe08] sm:$0xff]  ;;  %v419_v10 = vld [vmem:[%s6440_s2 + $0xc00] sm:$0xff] }
  0xc8   :  { %962 = vmatmul.mubr.f32.vlgmr.msra.gmra.mxu1 %v526_v11  ;;  %968 = vmatprep.subr.mxu0 %v450_v12  ;;  %v483_v11 = vld [vmem:[%s6440_s2 + $0xe00] sm:$0xff]  ;;  %v482_v12 = vld [vmem:[%s6440_s2 + $0xdf8] sm:$0xff] }
  0xc9   :  { %1039 = vmatprep.subr.mxu1 %v514_v13  ;;  %969 = vmatpush1.msra.mxu0 %v449_v14  ;;  %v530_v13 = vld [vmem:[%s6441_s0 + $0x70] sm:$0xff] }
  0xca   :  { %1040 = vmatpush1.msra.mxu1 %v513_v15  ;;  %970 = vmatprep.subr.mxu0 %v448_v16  ;;  %v481_v14 = vld [vmem:[%s6440_s2 + $0xdf0] sm:$0xff]  ;;  %v2841_v15 = vmov 0.0   ;;  %v4291_v16 = vld [vmem:[%s6440_s2 + $0xde8] sm:$0xff] }
  0xcb   :  { %1041 = vmatprep.subr.mxu1 %v512_v17  ;;  %971 = vmatpush1.msra.mxu0 %v447_v18  ;;  %v2391_v17 = vld [vmem:[%s6440_s2 + $0xf8] sm:$0xff]  ;;  %v4299_v18 = vld [vmem:[%s6440_s2 + $0xde0] sm:$0xff] }
  0xcc   :  { %1042 = vmatpush1.msra.mxu1 %v511_v19  ;;  %972 = vmatprep.subr.mxu0 %v446_v20  ;;  %v2392_v19 = vld [vmem:[%s6440_s2 + $0xf0] sm:$0xff]  ;;  %v4307_v20 = vld [vmem:[%s6440_s2 + $0xdd8] sm:$0xff] }
  0xcd   :  { %1043 = vmatprep.subr.mxu1 %v510_v21  ;;  %973 = vmatpush1.msra.mxu0 %v445_v22  ;;  %v2393_v21 = vld [vmem:[%s6440_s2 + $0xe8] sm:$0xff]  ;;  %v4316_v22 = vld [vmem:[%s6440_s2 + $0xdd0] sm:$0xff] }
  0xce   :  { %1044 = vmatpush1.msra.mxu1 %v509_v23  ;;  %974 = vmatprep.subr.mxu0 %v444_v24  ;;  %v2394_v23 = vld [vmem:[%s6440_s2 + $0xe0] sm:$0xff]  ;;  %v4325_v24 = vld [vmem:[%s6440_s2 + $0xdc8] sm:$0xff] }
  0xcf   :  { %1045 = vmatprep.subr.mxu1 %v508_v25  ;;  %975 = vmatpush1.msra.mxu0 %v443_v26  ;;  %v2395_v25 = vld [vmem:[%s6440_s2 + $0xd8] sm:$0xff]  ;;  %v4334_v26 = vld [vmem:[%s6440_s2 + $0xdc0] sm:$0xff] }
  0xd0   :  { %1046 = vmatpush1.msra.mxu1 %v507_v27  ;;  %976 = vmatprep.subr.mxu0 %v442_v28  ;;  %v2396_v27 = vld [vmem:[%s6440_s2 + $0xd0] sm:$0xff]  ;;  %v4343_v28 = vld [vmem:[%s6440_s2 + $0xdb8] sm:$0xff] }
  0xd1   :  { %1047 = vmatprep.subr.mxu1 %v506_v29  ;;  %977 = vmatpush1.msra.mxu0 %v441_v30  ;;  %v2397_v29 = vld [vmem:[%s6440_s2 + $0xc8] sm:$0xff]  ;;  %v4352_v30 = vld [vmem:[%s6440_s2 + $0xdb0] sm:$0xff] }
  0xd2   :  { %1048 = vmatpush1.msra.mxu1 %v505_v31  ;;  %978 = vmatprep.subr.mxu0 %v440_v32  ;;  %v2398_v31 = vld [vmem:[%s6440_s2 + $0xc0] sm:$0xff]  ;;  %v4361_v32 = vld [vmem:[%s6440_s2 + $0xda8] sm:$0xff] }
  0xd3   :  { %1049 = vmatprep.subr.mxu1 %v504_v33  ;;  %979 = vmatpush1.msra.mxu0 %v439_v34  ;;  %v2399_v33 = vld [vmem:[%s6440_s2 + $0xb8] sm:$0xff]  ;;  %v4370_v34 = vld [vmem:[%s6440_s2 + $0xda0] sm:$0xff] }
  0xd4   :  { %1050 = vmatpush1.msra.mxu1 %v503_v35  ;;  %980 = vmatprep.subr.mxu0 %v438_v36  ;;  %v2400_v35 = vld [vmem:[%s6440_s2 + $0xb0] sm:$0xff]  ;;  %v4379_v36 = vld [vmem:[%s6440_s2 + $0xd98] sm:$0xff] }
  0xd5   :  { %1051 = vmatprep.subr.mxu1 %v502_v37  ;;  %981 = vmatpush1.msra.mxu0 %v437_v38  ;;  %v2401_v37 = vld [vmem:[%s6440_s2 + $0xa8] sm:$0xff]  ;;  %v4388_v38 = vld [vmem:[%s6440_s2 + $0xd90] sm:$0xff] }
  0xd6   :  { %1052 = vmatpush1.msra.mxu1 %v501_v39  ;;  %982 = vmatprep.subr.mxu0 %v436_v40  ;;  %v2402_v39 = vld [vmem:[%s6440_s2 + $0xa0] sm:$0xff]  ;;  %v4397_v40 = vld [vmem:[%s6440_s2 + $0xd88] sm:$0xff] }
  0xd7   :  { %1053 = vmatprep.subr.mxu1 %v500_v41  ;;  %983 = vmatpush1.msra.mxu0 %v435_v42  ;;  %v2403_v41 = vld [vmem:[%s6440_s2 + $0x98] sm:$0xff]  ;;  %v4406_v42 = vld [vmem:[%s6440_s2 + $0xd80] sm:$0xff] }
  0xd8   :  { %1054 = vmatpush1.msra.mxu1 %v499_v43  ;;  %984 = vmatprep.subr.mxu0 %v434_v44  ;;  %v2404_v43 = vld [vmem:[%s6440_s2 + $0x90] sm:$0xff]  ;;  %v4415_v44 = vld [vmem:[%s6440_s2 + $0xd78] sm:$0xff] }
  0xd9   :  { %1055 = vmatprep.subr.mxu1 %v498_v45  ;;  %985 = vmatpush1.msra.mxu0 %v433_v46  ;;  %v2405_v45 = vld [vmem:[%s6440_s2 + $0x88] sm:$0xff]  ;;  %v4424_v46 = vld [vmem:[%s6440_s2 + $0xd70] sm:$0xff] }
  0xda   :  { %1056 = vmatpush1.msra.mxu1 %v497_v47  ;;  %986 = vmatprep.subr.mxu0 %v432_v48  ;;  %v2406_v47 = vld [vmem:[%s6440_s2 + $0x80] sm:$0xff]  ;;  %v4433_v48 = vld [vmem:[%s6440_s2 + $0xd68] sm:$0xff] }
  0xdb   :  { %1057 = vmatprep.subr.mxu1 %v496_v49  ;;  %987 = vmatpush1.msra.mxu0 %v431_v50  ;;  %v2407_v49 = vld [vmem:[%s6440_s2 + $0x78] sm:$0xff]  ;;  %v4442_v50 = vld [vmem:[%s6440_s2 + $0xd60] sm:$0xff] }
  0xdc   :  { %1058 = vmatpush1.msra.mxu1 %v495_v51  ;;  %988 = vmatprep.subr.mxu0 %v430_v52  ;;  %v2408_v51 = vld [vmem:[%s6440_s2 + $0x70] sm:$0xff]  ;;  %v4451_v52 = vld [vmem:[%s6440_s2 + $0xd58] sm:$0xff] }
  0xdd   :  { %1059 = vmatprep.subr.mxu1 %v494_v53  ;;  %989 = vmatpush1.msra.mxu0 %v429_v54  ;;  %v2409_v53 = vld [vmem:[%s6440_s2 + $0x68] sm:$0xff]  ;;  %v4460_v54 = vld [vmem:[%s6440_s2 + $0xd50] sm:$0xff] }
  0xde   :  { %1060 = vmatpush1.msra.mxu1 %v493_v55  ;;  %990 = vmatprep.subr.mxu0 %v428_v56  ;;  %v2410_v55 = vld [vmem:[%s6440_s2 + $0x60] sm:$0xff]  ;;  %v4469_v56 = vld [vmem:[%s6440_s2 + $0xd48] sm:$0xff] }
  0xdf   :  { %1061 = vmatprep.subr.mxu1 %v492_v57  ;;  %991 = vmatpush1.msra.mxu0 %v427_v58  ;;  %v2411_v57 = vld [vmem:[%s6440_s2 + $0x58] sm:$0xff]  ;;  %v4478_v58 = vld [vmem:[%s6440_s2 + $0xd40] sm:$0xff] }
  0xe0   :  { %1062 = vmatpush1.msra.mxu1 %v491_v59  ;;  %992 = vmatprep.subr.mxu0 %v426_v60  ;;  %v2412_v59 = vld [vmem:[%s6440_s2 + $0x50] sm:$0xff]  ;;  %v4487_v60 = vld [vmem:[%s6440_s2 + $0xd38] sm:$0xff] }
  0xe1   :  { %1063 = vmatprep.subr.mxu1 %v490_v61  ;;  %993 = vmatpush1.msra.mxu0 %v425_v62  ;;  %v2413_v61 = vld [vmem:[%s6440_s2 + $0x48] sm:$0xff]  ;;  %v4496_v62 = vld [vmem:[%s6440_s2 + $0xd30] sm:$0xff] }
  0xe2   :  { %1064 = vmatpush1.msra.mxu1 %v489_v63  ;;  %994 = vmatprep.subr.mxu0 %v424_v0  ;;  %v2414_v63 = vld [vmem:[%s6440_s2 + $0x40] sm:$0xff]  ;;  %v4505_v0 = vld [vmem:[%s6440_s2 + $0xd28] sm:$0xff] }
  0xe3   :  { %1065 = vmatprep.subr.mxu1 %v488_v1  ;;  %995 = vmatpush1.msra.mxu0 %v423_v2  ;;  %v2415_v1 = vld [vmem:[%s6440_s2 + $0x38] sm:$0xff]  ;;  %v4514_v2 = vld [vmem:[%s6440_s2 + $0xd20] sm:$0xff] }
  0xe4   :  { %1066 = vmatpush1.msra.mxu1 %v487_v3  ;;  %996 = vmatprep.subr.mxu0 %v422_v4  ;;  %v2416_v3 = vld [vmem:[%s6440_s2 + $0x30] sm:$0xff]  ;;  %v4523_v4 = vld [vmem:[%s6440_s2 + $0xd18] sm:$0xff] }
  0xe5   :  { %1067 = vmatprep.subr.mxu1 %v486_v5  ;;  %997 = vmatpush1.msra.mxu0 %v421_v6  ;;  %v2417_v5 = vld [vmem:[%s6440_s2 + $0x28] sm:$0xff]  ;;  %v4532_v6 = vld [vmem:[%s6440_s2 + $0xd10] sm:$0xff] }
  0xe6   :  { %1068 = vmatpush1.msra.mxu1 %v485_v7  ;;  %998 = vmatprep.subr.mxu0 %v420_v8  ;;  %v2418_v7 = vld [vmem:[%s6440_s2 + $0x20] sm:$0xff]  ;;  %v4541_v8 = vld [vmem:[%s6440_s2 + $0xd08] sm:$0xff] }
  0xe7   :  { %1069 = vmatprep.subr.mxu1 %v484_v9  ;;  %999 = vmatpush1.msra.mxu0 %v419_v10  ;;  %v2419_v9 = vld [vmem:[%s6440_s2 + $0x18] sm:$0xff]  ;;  %v4550_v10 = vld [vmem:[%s6440_s2 + $0xd00] sm:$0xff] }
  0xe8   :  { %1070 = vmatpush1.msra.mxu1 %v483_v11  ;;  %1103 = vmatprep.mubr.f32.mxu1 %v2841_v15  ;;  %v529_v11 = vld [vmem:[%s6441_s0 + $0x68] sm:$0xff] }
  0xe9   :  { %1000 = vmatprep.subr.mxu0 %v482_v12  ;;  %1104 = vmatmul.mubr.f32.vlgmr.msra.gmra.mxu1 %v530_v13  ;;  %v2420_v12 = vld [vmem:[%s6440_s2 + $0x10] sm:$0xff]  ;;  %v528_v13 = vld [vmem:[%s6441_s0 + $0x60] sm:$0xff] }
  0xea   :  { %1125 = vmatprep.subr.mxu1 %v2391_v17  ;;  %1001 = vmatpush2.msra.mxu0 %v481_v14  ;;  %v2421_v14 = vld [vmem:[%s6440_s2 + $0x8] sm:$0xff]  ;;  %v2422_v17 = vld [vmem:[%s6440_s2] sm:$0xff] }
  0xeb   :  { %1126 = vmatpush1.msra.mxu1 %v2392_v19  ;;  %1002 = vmatprep.subr.mxu0 %v4291_v16  ;;  %v2423_v19 = vld [vmem:[%s6440_s2 + $0x1f8] sm:$0xff] }
  0xec   :  { %1127 = vmatprep.subr.mxu1 %v2393_v21  ;;  %1003 = vmatpush2.msra.mxu0 %v4299_v18  ;;  %v2424_v21 = vld [vmem:[%s6440_s2 + $0x2f8] sm:$0xff] }
  0xed   :  { %1128 = vmatpush1.msra.mxu1 %v2394_v23  ;;  %1004 = vmatprep.subr.mxu0 %v4307_v20  ;;  %v2425_v23 = vld [vmem:[%s6440_s2 + $0x1f0] sm:$0xff] }
  0xee   :  { %1129 = vmatprep.subr.mxu1 %v2395_v25  ;;  %1005 = vmatpush2.msra.mxu0 %v4316_v22  ;;  %v2426_v25 = vld [vmem:[%s6440_s2 + $0x2f0] sm:$0xff] }
  0xef   :  { %1130 = vmatpush1.msra.mxu1 %v2396_v27  ;;  %1006 = vmatprep.subr.mxu0 %v4325_v24  ;;  %v2427_v27 = vld [vmem:[%s6440_s2 + $0x1e8] sm:$0xff] }
  0xf0   :  { %1131 = vmatprep.subr.mxu1 %v2397_v29  ;;  %1007 = vmatpush2.msra.mxu0 %v4334_v26  ;;  %v2428_v29 = vld [vmem:[%s6440_s2 + $0x2e8] sm:$0xff] }
  0xf1   :  { %1132 = vmatpush1.msra.mxu1 %v2398_v31  ;;  %1008 = vmatprep.subr.mxu0 %v4343_v28  ;;  %v2429_v31 = vld [vmem:[%s6440_s2 + $0x1e0] sm:$0xff] }
  0xf2   :  { %1133 = vmatprep.subr.mxu1 %v2399_v33  ;;  %1009 = vmatpush2.msra.mxu0 %v4352_v30  ;;  %v2430_v33 = vld [vmem:[%s6440_s2 + $0x2e0] sm:$0xff] }
  0xf3   :  { %1134 = vmatpush1.msra.mxu1 %v2400_v35  ;;  %1010 = vmatprep.subr.mxu0 %v4361_v32  ;;  %v2431_v35 = vld [vmem:[%s6440_s2 + $0x1d8] sm:$0xff] }
  0xf4   :  { %1135 = vmatprep.subr.mxu1 %v2401_v37  ;;  %1011 = vmatpush2.msra.mxu0 %v4370_v34  ;;  %v2432_v37 = vld [vmem:[%s6440_s2 + $0x2d8] sm:$0xff] }
  0xf5   :  { %1136 = vmatpush1.msra.mxu1 %v2402_v39  ;;  %1012 = vmatprep.subr.mxu0 %v4379_v36  ;;  %v2433_v39 = vld [vmem:[%s6440_s2 + $0x1d0] sm:$0xff] }
  0xf6   :  { %1137 = vmatprep.subr.mxu1 %v2403_v41  ;;  %1013 = vmatpush2.msra.mxu0 %v4388_v38  ;;  %v2434_v41 = vld [vmem:[%s6440_s2 + $0x2d0] sm:$0xff] }
  0xf7   :  { %1138 = vmatpush1.msra.mxu1 %v2404_v43  ;;  %1014 = vmatprep.subr.mxu0 %v4397_v40  ;;  %v2435_v43 = vld [vmem:[%s6440_s2 + $0x1c8] sm:$0xff] }
  0xf8   :  { %1139 = vmatprep.subr.mxu1 %v2405_v45  ;;  %1015 = vmatpush2.msra.mxu0 %v4406_v42  ;;  %v2436_v45 = vld [vmem:[%s6440_s2 + $0x2c8] sm:$0xff] }
  0xf9   :  { %1140 = vmatpush1.msra.mxu1 %v2406_v47  ;;  %1016 = vmatprep.subr.mxu0 %v4415_v44  ;;  %v2437_v47 = vld [vmem:[%s6440_s2 + $0x1c0] sm:$0xff] }
  0xfa   :  { %1141 = vmatprep.subr.mxu1 %v2407_v49  ;;  %1017 = vmatpush2.msra.mxu0 %v4424_v46  ;;  %v2438_v49 = vld [vmem:[%s6440_s2 + $0x2c0] sm:$0xff] }
  0xfb   :  { %1142 = vmatpush1.msra.mxu1 %v2408_v51  ;;  %1018 = vmatprep.subr.mxu0 %v4433_v48  ;;  %v2439_v51 = vld [vmem:[%s6440_s2 + $0x1b8] sm:$0xff] }
  0xfc   :  { %1143 = vmatprep.subr.mxu1 %v2409_v53  ;;  %1019 = vmatpush2.msra.mxu0 %v4442_v50  ;;  %v2440_v53 = vld [vmem:[%s6440_s2 + $0x2b8] sm:$0xff] }
  0xfd   :  { %1144 = vmatpush1.msra.mxu1 %v2410_v55  ;;  %1020 = vmatprep.subr.mxu0 %v4451_v52  ;;  %v2441_v55 = vld [vmem:[%s6440_s2 + $0x1b0] sm:$0xff] }
  0xfe   :  { %1145 = vmatprep.subr.mxu1 %v2411_v57  ;;  %1021 = vmatpush2.msra.mxu0 %v4460_v54  ;;  %v2442_v57 = vld [vmem:[%s6440_s2 + $0x2b0] sm:$0xff] }
  0xff   :  { %1146 = vmatpush1.msra.mxu1 %v2412_v59  ;;  %1022 = vmatprep.subr.mxu0 %v4469_v56  ;;  %v2443_v59 = vld [vmem:[%s6440_s2 + $0x1a8] sm:$0xff] }
 0x100   :  { %1147 = vmatprep.subr.mxu1 %v2413_v61  ;;  %1023 = vmatpush2.msra.mxu0 %v4478_v58  ;;  %v2444_v61 = vld [vmem:[%s6440_s2 + $0x2a8] sm:$0xff] }
 0x101   :  { %1148 = vmatpush1.msra.mxu1 %v2414_v63  ;;  %1024 = vmatprep.subr.mxu0 %v4487_v60  ;;  %v2445_v63 = vld [vmem:[%s6440_s2 + $0x1a0] sm:$0xff] }
 0x102   :  { %1149 = vmatprep.subr.mxu1 %v2415_v1  ;;  %1025 = vmatpush2.msra.mxu0 %v4496_v62  ;;  %v2446_v1 = vld [vmem:[%s6440_s2 + $0x2a0] sm:$0xff] }
 0x103   :  { %1150 = vmatpush1.msra.mxu1 %v2416_v3  ;;  %1026 = vmatprep.subr.mxu0 %v4505_v0  ;;  %v2447_v3 = vld [vmem:[%s6440_s2 + $0x198] sm:$0xff] }
 0x104   :  { %1151 = vmatprep.subr.mxu1 %v2417_v5  ;;  %1027 = vmatpush2.msra.mxu0 %v4514_v2  ;;  %v2448_v5 = vld [vmem:[%s6440_s2 + $0x298] sm:$0xff] }
 0x105   :  { %1152 = vmatpush1.msra.mxu1 %v2418_v7  ;;  %1028 = vmatprep.subr.mxu0 %v4523_v4  ;;  %v2449_v7 = vld [vmem:[%s6440_s2 + $0x190] sm:$0xff] }
 0x106   :  { %1153 = vmatprep.subr.mxu1 %v2419_v9  ;;  %1029 = vmatpush2.msra.mxu0 %v4532_v6  ;;  %v2450_v9 = vld [vmem:[%s6440_s2 + $0x290] sm:$0xff] }
 0x107   :  { %1154 = vmatpush1.msra.mxu1 %v2420_v12  ;;  %1030 = vmatprep.subr.mxu0 %v4541_v8  ;;  %v2452_v12 = vld [vmem:[%s6440_s2 + $0x288] sm:$0xff] }
 0x108   :  { %1155 = vmatprep.subr.mxu1 %v2421_v14  ;;  %1031 = vmatpush2.msra.mxu0 %v4550_v10  ;;  %v2454_v14 = vld [vmem:[%s6440_s2 + $0x280] sm:$0xff] }
 0x109   :  { %1032 = vmatprep.mubr.f32.mxu0 %v529_v11  ;;  %1156 = vmatpush1.msra.mxu1 %v2422_v17  ;;  %v2451_v11 = vld [vmem:[%s6440_s2 + $0x188] sm:$0xff]  ;;  %v2455_v17 = vld [vmem:[%s6440_s2 + $0x178] sm:$0xff] }
 0x10a   :  { %1033 = vmatmul.mubr.f32.vlgmr.msra.gmra.mxu0 %v528_v13  ;;  %1157 = vmatprep.subr.mxu1 %v2423_v19  ;;  %v2453_v13 = vld [vmem:[%s6440_s2 + $0x180] sm:$0xff]  ;;  %v2456_v19 = vld [vmem:[%s6440_s2 + $0x278] sm:$0xff] }
 0x10b   :  { %1196 = vmatprep.subr.mxu0 %v2424_v21  ;;  %1158 = vmatpush2.msra.mxu1 %v2425_v23  ;;  %v2457_v21 = vld [vmem:[%s6440_s2 + $0x170] sm:$0xff] }
 0x10c   :  { %1197 = vmatpush1.msra.mxu0 %v2426_v25  ;;  %1159 = vmatprep.subr.mxu1 %v2427_v27  ;;  %v2458_v23 = vld [vmem:[%s6440_s2 + $0x270] sm:$0xff]  ;;  %v2459_v25 = vld [vmem:[%s6440_s2 + $0x168] sm:$0xff] }
 0x10d   :  { %1198 = vmatprep.subr.mxu0 %v2428_v29  ;;  %1160 = vmatpush2.msra.mxu1 %v2429_v31  ;;  %v2460_v27 = vld [vmem:[%s6440_s2 + $0x268] sm:$0xff]  ;;  %v2461_v29 = vld [vmem:[%s6440_s2 + $0x160] sm:$0xff] }
 0x10e   :  { %1199 = vmatpush1.msra.mxu0 %v2430_v33  ;;  %1161 = vmatprep.subr.mxu1 %v2431_v35  ;;  %v2462_v31 = vld [vmem:[%s6440_s2 + $0x260] sm:$0xff]  ;;  %v2463_v33 = vld [vmem:[%s6440_s2 + $0x158] sm:$0xff] }
 0x10f   :  { %1200 = vmatprep.subr.mxu0 %v2432_v37  ;;  %1162 = vmatpush2.msra.mxu1 %v2433_v39  ;;  %v2464_v35 = vld [vmem:[%s6440_s2 + $0x258] sm:$0xff]  ;;  %v2465_v37 = vld [vmem:[%s6440_s2 + $0x150] sm:$0xff] }
 0x110   :  { %1201 = vmatpush1.msra.mxu0 %v2434_v41  ;;  %1163 = vmatprep.subr.mxu1 %v2435_v43  ;;  %v2466_v39 = vld [vmem:[%s6440_s2 + $0x250] sm:$0xff]  ;;  %v2467_v41 = vld [vmem:[%s6440_s2 + $0x148] sm:$0xff] }
 0x111   :  { %1202 = vmatprep.subr.mxu0 %v2436_v45  ;;  %1164 = vmatpush2.msra.mxu1 %v2437_v47  ;;  %v2468_v43 = vld [vmem:[%s6440_s2 + $0x248] sm:$0xff]  ;;  %v2469_v45 = vld [vmem:[%s6440_s2 + $0x140] sm:$0xff] }
 0x112   :  { %1203 = vmatpush1.msra.mxu0 %v2438_v49  ;;  %1165 = vmatprep.subr.mxu1 %v2439_v51  ;;  %v2470_v47 = vld [vmem:[%s6440_s2 + $0x240] sm:$0xff]  ;;  %v2471_v49 = vld [vmem:[%s6440_s2 + $0x138] sm:$0xff] }
 0x113   :  { %1204 = vmatprep.subr.mxu0 %v2440_v53  ;;  %1166 = vmatpush2.msra.mxu1 %v2441_v55  ;;  %v2472_v51 = vld [vmem:[%s6440_s2 + $0x238] sm:$0xff]  ;;  %v2473_v53 = vld [vmem:[%s6440_s2 + $0x130] sm:$0xff] }
 0x114   :  { %1205 = vmatpush1.msra.mxu0 %v2442_v57  ;;  %1167 = vmatprep.subr.mxu1 %v2443_v59  ;;  %v2474_v55 = vld [vmem:[%s6440_s2 + $0x230] sm:$0xff]  ;;  %v2475_v57 = vld [vmem:[%s6440_s2 + $0x128] sm:$0xff] }
 0x115   :  { %1206 = vmatprep.subr.mxu0 %v2444_v61  ;;  %1168 = vmatpush2.msra.mxu1 %v2445_v63  ;;  %v2476_v59 = vld [vmem:[%s6440_s2 + $0x228] sm:$0xff]  ;;  %v2477_v61 = vld [vmem:[%s6440_s2 + $0x120] sm:$0xff] }
 0x116   :  { %1207 = vmatpush1.msra.mxu0 %v2446_v1  ;;  %1169 = vmatprep.subr.mxu1 %v2447_v3  ;;  %v2478_v63 = vld [vmem:[%s6440_s2 + $0x220] sm:$0xff]  ;;  %v2479_v1 = vld [vmem:[%s6440_s2 + $0x118] sm:$0xff] }
 0x117   :  { %1208 = vmatprep.subr.mxu0 %v2448_v5  ;;  %1170 = vmatpush2.msra.mxu1 %v2449_v7  ;;  %v2480_v3 = vld [vmem:[%s6440_s2 + $0x218] sm:$0xff]  ;;  %v1111_v5 = vld [vmem:[%s6442_s1 + $0x8] sm:$0xff]  ;;  %v2481_v7 = vld [vmem:[%s6440_s2 + $0x110] sm:$0xff] }
 0x118   :  { %1209 = vmatpush1.msra.mxu0 %v2450_v9  ;;  %1171 = vmatprep.subr.mxu1 %v2451_v11  ;;  %v2482_v9 = vld [vmem:[%s6440_s2 + $0x210] sm:$0xff]  ;;  %v1110_v11 = vld [vmem:[%s6442_s1] sm:$0xff] }
 0x119   :  { %1210 = vmatprep.subr.mxu0 %v2452_v12  ;;  %1172 = vmatpush2.msra.mxu1 %v2453_v13  ;;  %v2483_v12 = vld [vmem:[%s6440_s2 + $0x108] sm:$0xff] }
 0x11a   :  { %1211 = vmatpush1.msra.mxu0 %v2454_v14  ;;  %1173 = vmatprep.subr.mxu1 %v2455_v17  ;;  %v2484_v13 = vld [vmem:[%s6440_s2 + $0x208] sm:$0xff]  ;;  %v2485_v14 = vld [vmem:[%s6440_s2 + $0x100] sm:$0xff] }
 0x11b   :  { %1212 = vmatprep.subr.mxu0 %v2456_v19  ;;  %1174 = vmatpush2.msra.mxu1 %v2457_v21  ;;  %v2486_v17 = vld [vmem:[%s6440_s2 + $0x200] sm:$0xff]  ;;  %v2487_v19 = vld [vmem:[%s6440_s2 + $0x3f8] sm:$0xff] }
 0x11c   :  { %1213 = vmatpush1.msra.mxu0 %v2458_v23  ;;  %1175 = vmatprep.subr.mxu1 %v2459_v25  ;;  %v2488_v21 = vld [vmem:[%s6440_s2 + $0x4f8] sm:$0xff]  ;;  %v2489_v23 = vld [vmem:[%s6440_s2 + $0x3f0] sm:$0xff] }
 0x11d   :  { %1214 = vmatprep.subr.mxu0 %v2460_v27  ;;  %1176 = vmatpush2.msra.mxu1 %v2461_v29  ;;  %v2490_v25 = vld [vmem:[%s6440_s2 + $0x4f0] sm:$0xff]  ;;  %v2491_v27 = vld [vmem:[%s6440_s2 + $0x3e8] sm:$0xff] }
 0x11e   :  { %1215 = vmatpush1.msra.mxu0 %v2462_v31  ;;  %1177 = vmatprep.subr.mxu1 %v2463_v33  ;;  %v2492_v29 = vld [vmem:[%s6440_s2 + $0x4e8] sm:$0xff]  ;;  %v2493_v31 = vld [vmem:[%s6440_s2 + $0x3e0] sm:$0xff] }
 0x11f   :  { %1216 = vmatprep.subr.mxu0 %v2464_v35  ;;  %1178 = vmatpush2.msra.mxu1 %v2465_v37  ;;  %v2494_v33 = vld [vmem:[%s6440_s2 + $0x4e0] sm:$0xff]  ;;  %v2495_v35 = vld [vmem:[%s6440_s2 + $0x3d8] sm:$0xff] }
 0x120   :  { %1217 = vmatpush1.msra.mxu0 %v2466_v39  ;;  %1179 = vmatprep.subr.mxu1 %v2467_v41  ;;  %v2496_v37 = vld [vmem:[%s6440_s2 + $0x4d8] sm:$0xff]  ;;  %v2497_v39 = vld [vmem:[%s6440_s2 + $0x3d0] sm:$0xff] }
 0x121   :  { %1218 = vmatprep.subr.mxu0 %v2468_v43  ;;  %1180 = vmatpush2.msra.mxu1 %v2469_v45  ;;  %v2498_v41 = vld [vmem:[%s6440_s2 + $0x4d0] sm:$0xff]  ;;  %v2499_v43 = vld [vmem:[%s6440_s2 + $0x3c8] sm:$0xff] }
 0x122   :  { %1219 = vmatpush1.msra.mxu0 %v2470_v47  ;;  %1181 = vmatprep.subr.mxu1 %v2471_v49  ;;  %v2500_v45 = vld [vmem:[%s6440_s2 + $0x4c8] sm:$0xff]  ;;  %v2501_v47 = vld [vmem:[%s6440_s2 + $0x3c0] sm:$0xff] }
 0x123   :  { %1220 = vmatprep.subr.mxu0 %v2472_v51  ;;  %1182 = vmatpush2.msra.mxu1 %v2473_v53  ;;  %v2502_v49 = vld [vmem:[%s6440_s2 + $0x4c0] sm:$0xff]  ;;  %v2503_v51 = vld [vmem:[%s6440_s2 + $0x3b8] sm:$0xff] }
 0x124   :  { %1221 = vmatpush1.msra.mxu0 %v2474_v55  ;;  %1183 = vmatprep.subr.mxu1 %v2475_v57  ;;  %v2504_v53 = vld [vmem:[%s6440_s2 + $0x4b8] sm:$0xff]  ;;  %v2505_v55 = vld [vmem:[%s6440_s2 + $0x3b0] sm:$0xff] }
 0x125   :  { %1222 = vmatprep.subr.mxu0 %v2476_v59  ;;  %1184 = vmatpush2.msra.mxu1 %v2477_v61  ;;  %v2506_v57 = vld [vmem:[%s6440_s2 + $0x4b0] sm:$0xff]  ;;  %v2507_v59 = vld [vmem:[%s6440_s2 + $0x3a8] sm:$0xff] }
 0x126   :  { %1223 = vmatpush1.msra.mxu0 %v2478_v63  ;;  %1185 = vmatprep.subr.mxu1 %v2479_v1  ;;  %v2508_v61 = vld [vmem:[%s6440_s2 + $0x4a8] sm:$0xff]  ;;  %v2509_v63 = vld [vmem:[%s6440_s2 + $0x3a0] sm:$0xff] }
 0x127   :  { %1224 = vmatprep.subr.mxu0 %v2480_v3  ;;  %1186 = vmatpush2.msra.mxu1 %v2481_v7  ;;  %v2510_v1 = vld [vmem:[%s6440_s2 + $0x4a0] sm:$0xff]  ;;  %v2511_v3 = vld [vmem:[%s6440_s2 + $0x398] sm:$0xff]  ;;  %v2513_v7 = vld [vmem:[%s6440_s2 + $0x390] sm:$0xff] }
 0x128   :  { %1225 = vmatpush1.msra.mxu0 %v2482_v9  ;;  %1187 = vmatprep.subr.mxu1 %v2483_v12  ;;  %v2514_v9 = vld [vmem:[%s6440_s2 + $0x490] sm:$0xff]  ;;  %v2516_v12 = vld [vmem:[%s6440_s2 + $0x488] sm:$0xff] }
 0x129   :  { %1226 = vmatprep.subr.mxu0 %v2484_v13  ;;  %1188 = vmatpush2.msra.mxu1 %v2485_v14  ;;  %v2517_v13 = vld [vmem:[%s6440_s2 + $0x380] sm:$0xff] }
 0x12a   :  { %1189 = vmatprep.mubr.f32.mxu1 %v1111_v5  ;;  %1227 = vmatpush1.msra.mxu0 %v2486_v17  ;;  %v2512_v5 = vld [vmem:[%s6440_s2 + $0x498] sm:$0xff]  ;;  %v2518_v14 = vld [vmem:[%s6440_s2 + $0x480] sm:$0xff] }
 0x12b   :  { %1190 = vmatmul.mubr.f32.vlgmr.msra.gmra.mxu1 %v1110_v11  ;;  %1228 = vmatprep.subr.mxu0 %v2487_v19  ;;  %v2515_v11 = vld [vmem:[%s6440_s2 + $0x388] sm:$0xff]  ;;  %v2519_v17 = vld [vmem:[%s6440_s2 + $0x378] sm:$0xff] }
 0x12c   :  { %1267 = vmatprep.subr.mxu1 %v2488_v21  ;;  %1229 = vmatpush2.msra.mxu0 %v2489_v23  ;;  %v2520_v19 = vld [vmem:[%s6440_s2 + $0x478] sm:$0xff]  ;;  %v2521_v21 = vld [vmem:[%s6440_s2 + $0x370] sm:$0xff] }
 0x12d   :  { %1268 = vmatpush1.msra.mxu1 %v2490_v25  ;;  %1230 = vmatprep.subr.mxu0 %v2491_v27  ;;  %v2522_v23 = vld [vmem:[%s6440_s2 + $0x470] sm:$0xff]  ;;  %v2523_v25 = vld [vmem:[%s6440_s2 + $0x368] sm:$0xff] }
 0x12e   :  { %1269 = vmatprep.subr.mxu1 %v2492_v29  ;;  %1231 = vmatpush2.msra.mxu0 %v2493_v31  ;;  %v2524_v27 = vld [vmem:[%s6440_s2 + $0x468] sm:$0xff]  ;;  %v2525_v29 = vld [vmem:[%s6440_s2 + $0x360] sm:$0xff] }
 0x12f   :  { %1270 = vmatpush1.msra.mxu1 %v2494_v33  ;;  %1232 = vmatprep.subr.mxu0 %v2495_v35  ;;  %v2526_v31 = vld [vmem:[%s6440_s2 + $0x460] sm:$0xff]  ;;  %v2527_v33 = vld [vmem:[%s6440_s2 + $0x358] sm:$0xff] }
 0x130   :  { %1271 = vmatprep.subr.mxu1 %v2496_v37  ;;  %1233 = vmatpush2.msra.mxu0 %v2497_v39  ;;  %v2528_v35 = vld [vmem:[%s6440_s2 + $0x458] sm:$0xff]  ;;  %v2529_v37 = vld [vmem:[%s6440_s2 + $0x350] sm:$0xff] }
 0x131   :  { %1272 = vmatpush1.msra.mxu1 %v2498_v41  ;;  %1234 = vmatprep.subr.mxu0 %v2499_v43  ;;  %v2530_v39 = vld [vmem:[%s6440_s2 + $0x450] sm:$0xff]  ;;  %v2531_v41 = vld [vmem:[%s6440_s2 + $0x348] sm:$0xff] }
 0x132   :  { %1273 = vmatprep.subr.mxu1 %v2500_v45  ;;  %1235 = vmatpush2.msra.mxu0 %v2501_v47  ;;  %v2532_v43 = vld [vmem:[%s6440_s2 + $0x448] sm:$0xff]  ;;  %v2533_v45 = vld [vmem:[%s6440_s2 + $0x340] sm:$0xff] }
 0x133   :  { %1274 = vmatpush1.msra.mxu1 %v2502_v49  ;;  %1236 = vmatprep.subr.mxu0 %v2503_v51  ;;  %v2534_v47 = vld [vmem:[%s6440_s2 + $0x440] sm:$0xff]  ;;  %v2535_v49 = vld [vmem:[%s6440_s2 + $0x338] sm:$0xff] }
 0x134   :  { %1275 = vmatprep.subr.mxu1 %v2504_v53  ;;  %1237 = vmatpush2.msra.mxu0 %v2505_v55  ;;  %v2536_v51 = vld [vmem:[%s6440_s2 + $0x438] sm:$0xff]  ;;  %v2537_v53 = vld [vmem:[%s6440_s2 + $0x330] sm:$0xff] }
 0x135   :  { %1276 = vmatpush1.msra.mxu1 %v2506_v57  ;;  %1238 = vmatprep.subr.mxu0 %v2507_v59  ;;  %v2538_v55 = vld [vmem:[%s6440_s2 + $0x430] sm:$0xff]  ;;  %v2539_v57 = vld [vmem:[%s6440_s2 + $0x328] sm:$0xff] }
 0x136   :  { %1277 = vmatprep.subr.mxu1 %v2508_v61  ;;  %1239 = vmatpush2.msra.mxu0 %v2509_v63  ;;  %v2540_v59 = vld [vmem:[%s6440_s2 + $0x428] sm:$0xff]  ;;  %v2541_v61 = vld [vmem:[%s6440_s2 + $0x320] sm:$0xff] }
 0x137   :  { %1278 = vmatpush1.msra.mxu1 %v2510_v1  ;;  %1240 = vmatprep.subr.mxu0 %v2511_v3  ;;  %v2542_v63 = vld [vmem:[%s6440_s2 + $0x420] sm:$0xff]  ;;  %v2543_v1 = vld [vmem:[%s6440_s2 + $0x318] sm:$0xff] }
 0x138   :  { %1279 = vmatprep.subr.mxu1 %v2512_v5  ;;  %1241 = vmatpush2.msra.mxu0 %v2513_v7  ;;  %v2544_v3 = vld [vmem:[%s6440_s2 + $0x418] sm:$0xff]  ;;  %v2545_v7 = vld [vmem:[%s6440_s2 + $0x310] sm:$0xff] }
 0x139   :  { %1280 = vmatpush1.msra.mxu1 %v2514_v9  ;;  %1242 = vmatprep.subr.mxu0 %v2515_v11  ;;  %v1113_v5 = vld [vmem:[%s6442_s1 + $0x18] sm:$0xff]  ;;  %v2546_v9 = vld [vmem:[%s6440_s2 + $0x410] sm:$0xff] }
 0x13a   :  { %1281 = vmatprep.subr.mxu1 %v2516_v12  ;;  %1243 = vmatpush2.msra.mxu0 %v2517_v13  ;;  %v1112_v11 = vld [vmem:[%s6442_s1 + $0x10] sm:$0xff]  ;;  %v2547_v12 = vld [vmem:[%s6440_s2 + $0x308] sm:$0xff] }
 0x13b   :  { %1282 = vmatpush1.msra.mxu1 %v2518_v14  ;;  %1244 = vmatprep.subr.mxu0 %v2519_v17  ;;  %v2548_v13 = vld [vmem:[%s6440_s2 + $0x408] sm:$0xff]  ;;  %v2549_v14 = vld [vmem:[%s6440_s2 + $0x300] sm:$0xff] }
 0x13c   :  { %1283 = vmatprep.subr.mxu1 %v2520_v19  ;;  %1245 = vmatpush2.msra.mxu0 %v2521_v21  ;;  %v2550_v17 = vld [vmem:[%s6440_s2 + $0x400] sm:$0xff]  ;;  %v2551_v19 = vld [vmem:[%s6440_s2 + $0x5f8] sm:$0xff] }
 0x13d   :  { %1284 = vmatpush1.msra.mxu1 %v2522_v23  ;;  %1246 = vmatprep.subr.mxu0 %v2523_v25  ;;  %v2552_v21 = vld [vmem:[%s6440_s2 + $0x6f8] sm:$0xff]  ;;  %v2553_v23 = vld [vmem:[%s6440_s2 + $0x5f0] sm:$0xff] }
 0x13e   :  { %1285 = vmatprep.subr.mxu1 %v2524_v27  ;;  %1247 = vmatpush2.msra.mxu0 %v2525_v29  ;;  %v2554_v25 = vld [vmem:[%s6440_s2 + $0x6f0] sm:$0xff]  ;;  %v2555_v27 = vld [vmem:[%s6440_s2 + $0x5e8] sm:$0xff] }
 0x13f   :  { %1286 = vmatpush1.msra.mxu1 %v2526_v31  ;;  %1248 = vmatprep.subr.mxu0 %v2527_v33  ;;  %v2556_v29 = vld [vmem:[%s6440_s2 + $0x6e8] sm:$0xff]  ;;  %v2557_v31 = vld [vmem:[%s6440_s2 + $0x5e0] sm:$0xff] }
 0x140   :  { %1287 = vmatprep.subr.mxu1 %v2528_v35  ;;  %1249 = vmatpush2.msra.mxu0 %v2529_v37  ;;  %v2558_v33 = vld [vmem:[%s6440_s2 + $0x6e0] sm:$0xff]  ;;  %v2559_v35 = vld [vmem:[%s6440_s2 + $0x5d8] sm:$0xff] }
 0x141   :  { %1288 = vmatpush1.msra.mxu1 %v2530_v39  ;;  %1250 = vmatprep.subr.mxu0 %v2531_v41  ;;  %v2560_v37 = vld [vmem:[%s6440_s2 + $0x6d8] sm:$0xff]  ;;  %v2561_v39 = vld [vmem:[%s6440_s2 + $0x5d0] sm:$0xff] }
 0x142   :  { %1289 = vmatprep.subr.mxu1 %v2532_v43  ;;  %1251 = vmatpush2.msra.mxu0 %v2533_v45  ;;  %v2562_v41 = vld [vmem:[%s6440_s2 + $0x6d0] sm:$0xff]  ;;  %v2563_v43 = vld [vmem:[%s6440_s2 + $0x5c8] sm:$0xff] }
 0x143   :  { %1290 = vmatpush1.msra.mxu1 %v2534_v47  ;;  %1252 = vmatprep.subr.mxu0 %v2535_v49  ;;  %v2564_v45 = vld [vmem:[%s6440_s2 + $0x6c8] sm:$0xff]  ;;  %v2565_v47 = vld [vmem:[%s6440_s2 + $0x5c0] sm:$0xff] }
 0x144   :  { %1291 = vmatprep.subr.mxu1 %v2536_v51  ;;  %1253 = vmatpush2.msra.mxu0 %v2537_v53  ;;  %v2566_v49 = vld [vmem:[%s6440_s2 + $0x6c0] sm:$0xff]  ;;  %v2567_v51 = vld [vmem:[%s6440_s2 + $0x5b8] sm:$0xff] }
 0x145   :  { %1292 = vmatpush1.msra.mxu1 %v2538_v55  ;;  %1254 = vmatprep.subr.mxu0 %v2539_v57  ;;  %v2568_v53 = vld [vmem:[%s6440_s2 + $0x6b8] sm:$0xff]  ;;  %v2569_v55 = vld [vmem:[%s6440_s2 + $0x5b0] sm:$0xff] }
 0x146   :  { %1293 = vmatprep.subr.mxu1 %v2540_v59  ;;  %1255 = vmatpush2.msra.mxu0 %v2541_v61  ;;  %v2570_v57 = vld [vmem:[%s6440_s2 + $0x6b0] sm:$0xff]  ;;  %v2571_v59 = vld [vmem:[%s6440_s2 + $0x5a8] sm:$0xff] }
 0x147   :  { %1294 = vmatpush1.msra.mxu1 %v2542_v63  ;;  %1256 = vmatprep.subr.mxu0 %v2543_v1  ;;  %v2572_v61 = vld [vmem:[%s6440_s2 + $0x6a8] sm:$0xff]  ;;  %v2573_v63 = vld [vmem:[%s6440_s2 + $0x5a0] sm:$0xff] }
 0x148   :  { %1295 = vmatprep.subr.mxu1 %v2544_v3  ;;  %1257 = vmatpush2.msra.mxu0 %v2545_v7  ;;  %v2574_v1 = vld [vmem:[%s6440_s2 + $0x6a0] sm:$0xff]  ;;  %v2575_v3 = vld [vmem:[%s6440_s2 + $0x598] sm:$0xff]  ;;  %v2577_v7 = vld [vmem:[%s6440_s2 + $0x590] sm:$0xff] }
 0x149   :  { %1296 = vmatpush1.msra.mxu1 %v2546_v9  ;;  %1258 = vmatprep.subr.mxu0 %v2547_v12  ;;  %v2578_v9 = vld [vmem:[%s6440_s2 + $0x690] sm:$0xff]  ;;  %v2580_v12 = vld [vmem:[%s6440_s2 + $0x688] sm:$0xff] }
 0x14a   :  { %1297 = vmatprep.subr.mxu1 %v2548_v13  ;;  %1259 = vmatpush2.msra.mxu0 %v2549_v14  ;;  %v2581_v13 = vld [vmem:[%s6440_s2 + $0x580] sm:$0xff] }
 0x14b   :  { %1260 = vmatprep.mubr.f32.mxu0 %v1113_v5  ;;  %1298 = vmatpush1.msra.mxu1 %v2550_v17  ;;  %v2576_v5 = vld [vmem:[%s6440_s2 + $0x698] sm:$0xff]  ;;  %v2582_v14 = vld [vmem:[%s6440_s2 + $0x680] sm:$0xff] }
 0x14c   :  { %1261 = vmatmul.mubr.f32.vlgmr.msra.gmra.mxu0 %v1112_v11  ;;  %1299 = vmatprep.subr.mxu1 %v2551_v19  ;;  %v2579_v11 = vld [vmem:[%s6440_s2 + $0x588] sm:$0xff]  ;;  %v2583_v17 = vld [vmem:[%s6440_s2 + $0x578] sm:$0xff] }
 0x14d   :  { %1338 = vmatprep.subr.mxu0 %v2552_v21  ;;  %1300 = vmatpush2.msra.mxu1 %v2553_v23  ;;  %v2584_v19 = vld [vmem:[%s6440_s2 + $0x678] sm:$0xff]  ;;  %v2585_v21 = vld [vmem:[%s6440_s2 + $0x570] sm:$0xff] }
 0x14e   :  { %1339 = vmatpush1.msra.mxu0 %v2554_v25  ;;  %1301 = vmatprep.subr.mxu1 %v2555_v27  ;;  %v2586_v23 = vld [vmem:[%s6440_s2 + $0x670] sm:$0xff]  ;;  %v2587_v25 = vld [vmem:[%s6440_s2 + $0x568] sm:$0xff] }
 0x14f   :  { %1340 = vmatprep.subr.mxu0 %v2556_v29  ;;  %1302 = vmatpush2.msra.mxu1 %v2557_v31  ;;  %v2588_v27 = vld [vmem:[%s6440_s2 + $0x668] sm:$0xff]  ;;  %v2589_v29 = vld [vmem:[%s6440_s2 + $0x560] sm:$0xff] }
 0x150   :  { %1341 = vmatpush1.msra.mxu0 %v2558_v33  ;;  %1303 = vmatprep.subr.mxu1 %v2559_v35  ;;  %v2590_v31 = vld [vmem:[%s6440_s2 + $0x660] sm:$0xff]  ;;  %v2591_v33 = vld [vmem:[%s6440_s2 + $0x558] sm:$0xff] }
 0x151   :  { %1342 = vmatprep.subr.mxu0 %v2560_v37  ;;  %1304 = vmatpush2.msra.mxu1 %v2561_v39  ;;  %v2592_v35 = vld [vmem:[%s6440_s2 + $0x658] sm:$0xff]  ;;  %v2593_v37 = vld [vmem:[%s6440_s2 + $0x550] sm:$0xff] }
 0x152   :  { %1343 = vmatpush1.msra.mxu0 %v2562_v41  ;;  %1305 = vmatprep.subr.mxu1 %v2563_v43  ;;  %v2594_v39 = vld [vmem:[%s6440_s2 + $0x650] sm:$0xff]  ;;  %v2595_v41 = vld [vmem:[%s6440_s2 + $0x548] sm:$0xff] }
 0x153   :  { %1344 = vmatprep.subr.mxu0 %v2564_v45  ;;  %1306 = vmatpush2.msra.mxu1 %v2565_v47  ;;  %v2596_v43 = vld [vmem:[%s6440_s2 + $0x648] sm:$0xff]  ;;  %v2597_v45 = vld [vmem:[%s6440_s2 + $0x540] sm:$0xff] }
 0x154   :  { %1345 = vmatpush1.msra.mxu0 %v2566_v49  ;;  %1307 = vmatprep.subr.mxu1 %v2567_v51  ;;  %v2598_v47 = vld [vmem:[%s6440_s2 + $0x640] sm:$0xff]  ;;  %v2599_v49 = vld [vmem:[%s6440_s2 + $0x538] sm:$0xff] }
 0x155   :  { %1346 = vmatprep.subr.mxu0 %v2568_v53  ;;  %1308 = vmatpush2.msra.mxu1 %v2569_v55  ;;  %v2600_v51 = vld [vmem:[%s6440_s2 + $0x638] sm:$0xff]  ;;  %v2601_v53 = vld [vmem:[%s6440_s2 + $0x530] sm:$0xff] }
 0x156   :  { %1347 = vmatpush1.msra.mxu0 %v2570_v57  ;;  %1309 = vmatprep.subr.mxu1 %v2571_v59  ;;  %v2602_v55 = vld [vmem:[%s6440_s2 + $0x630] sm:$0xff]  ;;  %v2603_v57 = vld [vmem:[%s6440_s2 + $0x528] sm:$0xff] }
 0x157   :  { %1348 = vmatprep.subr.mxu0 %v2572_v61  ;;  %1310 = vmatpush2.msra.mxu1 %v2573_v63  ;;  %v2604_v59 = vld [vmem:[%s6440_s2 + $0x628] sm:$0xff]  ;;  %v2605_v61 = vld [vmem:[%s6440_s2 + $0x520] sm:$0xff] }
 0x158   :  { %1349 = vmatpush1.msra.mxu0 %v2574_v1  ;;  %1311 = vmatprep.subr.mxu1 %v2575_v3  ;;  %v2606_v63 = vld [vmem:[%s6440_s2 + $0x620] sm:$0xff]  ;;  %v2607_v1 = vld [vmem:[%s6440_s2 + $0x518] sm:$0xff] }
 0x159   :  { %1350 = vmatprep.subr.mxu0 %v2576_v5  ;;  %1312 = vmatpush2.msra.mxu1 %v2577_v7  ;;  %v2608_v3 = vld [vmem:[%s6440_s2 + $0x618] sm:$0xff]  ;;  %v1115_v5 = vld [vmem:[%s6442_s1 + $0x28] sm:$0xff]  ;;  %v2609_v7 = vld [vmem:[%s6440_s2 + $0x510] sm:$0xff] }
 0x15a   :  { %1351 = vmatpush1.msra.mxu0 %v2578_v9  ;;  %1313 = vmatprep.subr.mxu1 %v2579_v11  ;;  %v2610_v9 = vld [vmem:[%s6440_s2 + $0x610] sm:$0xff]  ;;  %v1114_v11 = vld [vmem:[%s6442_s1 + $0x20] sm:$0xff] }
 0x15b   :  { %1352 = vmatprep.subr.mxu0 %v2580_v12  ;;  %1314 = vmatpush2.msra.mxu1 %v2581_v13  ;;  %v2611_v12 = vld [vmem:[%s6440_s2 + $0x508] sm:$0xff] }
 0x15c   :  { %1353 = vmatpush1.msra.mxu0 %v2582_v14  ;;  %1315 = vmatprep.subr.mxu1 %v2583_v17  ;;  %v2612_v13 = vld [vmem:[%s6440_s2 + $0x608] sm:$0xff]  ;;  %v2613_v14 = vld [vmem:[%s6440_s2 + $0x500] sm:$0xff] }
 0x15d   :  { %1354 = vmatprep.subr.mxu0 %v2584_v19  ;;  %1316 = vmatpush2.msra.mxu1 %v2585_v21  ;;  %v2614_v17 = vld [vmem:[%s6440_s2 + $0x600] sm:$0xff]  ;;  %v2615_v19 = vld [vmem:[%s6440_s2 + $0x7f8] sm:$0xff] }
 0x15e   :  { %1355 = vmatpush1.msra.mxu0 %v2586_v23  ;;  %1317 = vmatprep.subr.mxu1 %v2587_v25  ;;  %v2616_v21 = vld [vmem:[%s6440_s2 + $0x8f8] sm:$0xff]  ;;  %v2617_v23 = vld [vmem:[%s6440_s2 + $0x7f0] sm:$0xff] }
 0x15f   :  { %1356 = vmatprep.subr.mxu0 %v2588_v27  ;;  %1318 = vmatpush2.msra.mxu1 %v2589_v29  ;;  %v2618_v25 = vld [vmem:[%s6440_s2 + $0x8f0] sm:$0xff]  ;;  %v2619_v27 = vld [vmem:[%s6440_s2 + $0x7e8] sm:$0xff] }
 0x160   :  { %1357 = vmatpush1.msra.mxu0 %v2590_v31  ;;  %1319 = vmatprep.subr.mxu1 %v2591_v33  ;;  %v2620_v29 = vld [vmem:[%s6440_s2 + $0x8e8] sm:$0xff]  ;;  %v2621_v31 = vld [vmem:[%s6440_s2 + $0x7e0] sm:$0xff] }
 0x161   :  { %1358 = vmatprep.subr.mxu0 %v2592_v35  ;;  %1320 = vmatpush2.msra.mxu1 %v2593_v37  ;;  %v2622_v33 = vld [vmem:[%s6440_s2 + $0x8e0] sm:$0xff]  ;;  %v2623_v35 = vld [vmem:[%s6440_s2 + $0x7d8] sm:$0xff] }
 0x162   :  { %1359 = vmatpush1.msra.mxu0 %v2594_v39  ;;  %1321 = vmatprep.subr.mxu1 %v2595_v41  ;;  %v2624_v37 = vld [vmem:[%s6440_s2 + $0x8d8] sm:$0xff]  ;;  %v2625_v39 = vld [vmem:[%s6440_s2 + $0x7d0] sm:$0xff] }
 0x163   :  { %1360 = vmatprep.subr.mxu0 %v2596_v43  ;;  %1322 = vmatpush2.msra.mxu1 %v2597_v45  ;;  %v2626_v41 = vld [vmem:[%s6440_s2 + $0x8d0] sm:$0xff]  ;;  %v2627_v43 = vld [vmem:[%s6440_s2 + $0x7c8] sm:$0xff] }
 0x164   :  { %1361 = vmatpush1.msra.mxu0 %v2598_v47  ;;  %1323 = vmatprep.subr.mxu1 %v2599_v49  ;;  %v2628_v45 = vld [vmem:[%s6440_s2 + $0x8c8] sm:$0xff]  ;;  %v2629_v47 = vld [vmem:[%s6440_s2 + $0x7c0] sm:$0xff] }
 0x165   :  { %1362 = vmatprep.subr.mxu0 %v2600_v51  ;;  %1324 = vmatpush2.msra.mxu1 %v2601_v53  ;;  %v2630_v49 = vld [vmem:[%s6440_s2 + $0x8c0] sm:$0xff]  ;;  %v2631_v51 = vld [vmem:[%s6440_s2 + $0x7b8] sm:$0xff] }
 0x166   :  { %1363 = vmatpush1.msra.mxu0 %v2602_v55  ;;  %1325 = vmatprep.subr.mxu1 %v2603_v57  ;;  %v2632_v53 = vld [vmem:[%s6440_s2 + $0x8b8] sm:$0xff]  ;;  %v2633_v55 = vld [vmem:[%s6440_s2 + $0x7b0] sm:$0xff] }
 0x167   :  { %1364 = vmatprep.subr.mxu0 %v2604_v59  ;;  %1326 = vmatpush2.msra.mxu1 %v2605_v61  ;;  %v2634_v57 = vld [vmem:[%s6440_s2 + $0x8b0] sm:$0xff]  ;;  %v2635_v59 = vld [vmem:[%s6440_s2 + $0x7a8] sm:$0xff] }
 0x168   :  { %1365 = vmatpush1.msra.mxu0 %v2606_v63  ;;  %1327 = vmatprep.subr.mxu1 %v2607_v1  ;;  %v2636_v61 = vld [vmem:[%s6440_s2 + $0x8a8] sm:$0xff]  ;;  %v2637_v63 = vld [vmem:[%s6440_s2 + $0x7a0] sm:$0xff] }
 0x169   :  { %1366 = vmatprep.subr.mxu0 %v2608_v3  ;;  %1328 = vmatpush2.msra.mxu1 %v2609_v7  ;;  %v2638_v1 = vld [vmem:[%s6440_s2 + $0x8a0] sm:$0xff]  ;;  %v2639_v3 = vld [vmem:[%s6440_s2 + $0x798] sm:$0xff]  ;;  %v2641_v7 = vld [vmem:[%s6440_s2 + $0x790] sm:$0xff] }
 0x16a   :  { %1367 = vmatpush1.msra.mxu0 %v2610_v9  ;;  %1329 = vmatprep.subr.mxu1 %v2611_v12  ;;  %v2642_v9 = vld [vmem:[%s6440_s2 + $0x890] sm:$0xff]  ;;  %v2644_v12 = vld [vmem:[%s6440_s2 + $0x888] sm:$0xff] }
 0x16b   :  { %1368 = vmatprep.subr.mxu0 %v2612_v13  ;;  %1330 = vmatpush2.msra.mxu1 %v2613_v14  ;;  %v2645_v13 = vld [vmem:[%s6440_s2 + $0x780] sm:$0xff] }
 0x16c   :  { %1331 = vmatprep.mubr.f32.mxu1 %v1115_v5  ;;  %1369 = vmatpush1.msra.mxu0 %v2614_v17  ;;  %v2640_v5 = vld [vmem:[%s6440_s2 + $0x898] sm:$0xff]  ;;  %v2646_v14 = vld [vmem:[%s6440_s2 + $0x880] sm:$0xff] }
 0x16d   :  { %1332 = vmatmul.mubr.f32.vlgmr.msra.gmra.mxu1 %v1114_v11  ;;  %1370 = vmatprep.subr.mxu0 %v2615_v19  ;;  %v2643_v11 = vld [vmem:[%s6440_s2 + $0x788] sm:$0xff]  ;;  %v2647_v17 = vld [vmem:[%s6440_s2 + $0x778] sm:$0xff] }
 0x16e   :  { %1409 = vmatprep.subr.mxu1 %v2616_v21  ;;  %1371 = vmatpush2.msra.mxu0 %v2617_v23  ;;  %v2648_v19 = vld [vmem:[%s6440_s2 + $0x878] sm:$0xff]  ;;  %v2649_v21 = vld [vmem:[%s6440_s2 + $0x770] sm:$0xff] }
 0x16f   :  { %1410 = vmatpush1.msra.mxu1 %v2618_v25  ;;  %1372 = vmatprep.subr.mxu0 %v2619_v27  ;;  %v2650_v23 = vld [vmem:[%s6440_s2 + $0x870] sm:$0xff]  ;;  %v2651_v25 = vld [vmem:[%s6440_s2 + $0x768] sm:$0xff] }
 0x170   :  { %1411 = vmatprep.subr.mxu1 %v2620_v29  ;;  %1373 = vmatpush2.msra.mxu0 %v2621_v31  ;;  %v2652_v27 = vld [vmem:[%s6440_s2 + $0x868] sm:$0xff]  ;;  %v2653_v29 = vld [vmem:[%s6440_s2 + $0x760] sm:$0xff] }
 0x171   :  { %1412 = vmatpush1.msra.mxu1 %v2622_v33  ;;  %1374 = vmatprep.subr.mxu0 %v2623_v35  ;;  %v2654_v31 = vld [vmem:[%s6440_s2 + $0x860] sm:$0xff]  ;;  %v2655_v33 = vld [vmem:[%s6440_s2 + $0x758] sm:$0xff] }
 0x172   :  { %1413 = vmatprep.subr.mxu1 %v2624_v37  ;;  %1375 = vmatpush2.msra.mxu0 %v2625_v39  ;;  %v2656_v35 = vld [vmem:[%s6440_s2 + $0x858] sm:$0xff]  ;;  %v2657_v37 = vld [vmem:[%s6440_s2 + $0x750] sm:$0xff] }
 0x173   :  { %1414 = vmatpush1.msra.mxu1 %v2626_v41  ;;  %1376 = vmatprep.subr.mxu0 %v2627_v43  ;;  %v2658_v39 = vld [vmem:[%s6440_s2 + $0x850] sm:$0xff]  ;;  %v2659_v41 = vld [vmem:[%s6440_s2 + $0x748] sm:$0xff] }
 0x174   :  { %1415 = vmatprep.subr.mxu1 %v2628_v45  ;;  %1377 = vmatpush2.msra.mxu0 %v2629_v47  ;;  %v2660_v43 = vld [vmem:[%s6440_s2 + $0x848] sm:$0xff]  ;;  %v2661_v45 = vld [vmem:[%s6440_s2 + $0x740] sm:$0xff] }
 0x175   :  { %1416 = vmatpush1.msra.mxu1 %v2630_v49  ;;  %1378 = vmatprep.subr.mxu0 %v2631_v51  ;;  %v2662_v47 = vld [vmem:[%s6440_s2 + $0x840] sm:$0xff]  ;;  %v2663_v49 = vld [vmem:[%s6440_s2 + $0x738] sm:$0xff] }
 0x176   :  { %1417 = vmatprep.subr.mxu1 %v2632_v53  ;;  %1379 = vmatpush2.msra.mxu0 %v2633_v55  ;;  %v2664_v51 = vld [vmem:[%s6440_s2 + $0x838] sm:$0xff]  ;;  %v2665_v53 = vld [vmem:[%s6440_s2 + $0x730] sm:$0xff] }
 0x177   :  { %1418 = vmatpush1.msra.mxu1 %v2634_v57  ;;  %1380 = vmatprep.subr.mxu0 %v2635_v59  ;;  %v2666_v55 = vld [vmem:[%s6440_s2 + $0x830] sm:$0xff]  ;;  %v2667_v57 = vld [vmem:[%s6440_s2 + $0x728] sm:$0xff] }
 0x178   :  { %1419 = vmatprep.subr.mxu1 %v2636_v61  ;;  %1381 = vmatpush2.msra.mxu0 %v2637_v63  ;;  %v2668_v59 = vld [vmem:[%s6440_s2 + $0x828] sm:$0xff]  ;;  %v2669_v61 = vld [vmem:[%s6440_s2 + $0x720] sm:$0xff] }
 0x179   :  { %1420 = vmatpush1.msra.mxu1 %v2638_v1  ;;  %1382 = vmatprep.subr.mxu0 %v2639_v3  ;;  %v2670_v63 = vld [vmem:[%s6440_s2 + $0x820] sm:$0xff]  ;;  %v2671_v1 = vld [vmem:[%s6440_s2 + $0x718] sm:$0xff] }
 0x17a   :  { %1421 = vmatprep.subr.mxu1 %v2640_v5  ;;  %1383 = vmatpush2.msra.mxu0 %v2641_v7  ;;  %v2672_v3 = vld [vmem:[%s6440_s2 + $0x818] sm:$0xff]  ;;  %v2673_v7 = vld [vmem:[%s6440_s2 + $0x710] sm:$0xff] }
 0x17b   :  { %1422 = vmatpush1.msra.mxu1 %v2642_v9  ;;  %1384 = vmatprep.subr.mxu0 %v2643_v11  ;;  %v1117_v5 = vld [vmem:[%s6442_s1 + $0x38] sm:$0xff]  ;;  %v2674_v9 = vld [vmem:[%s6440_s2 + $0x810] sm:$0xff] }
 0x17c   :  { %1423 = vmatprep.subr.mxu1 %v2644_v12  ;;  %1385 = vmatpush2.msra.mxu0 %v2645_v13  ;;  %v1116_v11 = vld [vmem:[%s6442_s1 + $0x30] sm:$0xff]  ;;  %v2675_v12 = vld [vmem:[%s6440_s2 + $0x708] sm:$0xff] }
 0x17d   :  { %1424 = vmatpush1.msra.mxu1 %v2646_v14  ;;  %1386 = vmatprep.subr.mxu0 %v2647_v17  ;;  %v2676_v13 = vld [vmem:[%s6440_s2 + $0x808] sm:$0xff]  ;;  %v2677_v14 = vld [vmem:[%s6440_s2 + $0x700] sm:$0xff] }
 0x17e   :  { %1425 = vmatprep.subr.mxu1 %v2648_v19  ;;  %1387 = vmatpush2.msra.mxu0 %v2649_v21  ;;  %v2678_v17 = vld [vmem:[%s6440_s2 + $0x800] sm:$0xff]  ;;  %v2679_v19 = vld [vmem:[%s6440_s2 + $0x9f8] sm:$0xff] }
 0x17f   :  { %1426 = vmatpush1.msra.mxu1 %v2650_v23  ;;  %1388 = vmatprep.subr.mxu0 %v2651_v25  ;;  %v2680_v21 = vld [vmem:[%s6440_s2 + $0xaf8] sm:$0xff]  ;;  %v2681_v23 = vld [vmem:[%s6440_s2 + $0x9f0] sm:$0xff] }
 0x180   :  { %1427 = vmatprep.subr.mxu1 %v2652_v27  ;;  %1389 = vmatpush2.msra.mxu0 %v2653_v29  ;;  %v2682_v25 = vld [vmem:[%s6440_s2 + $0xaf0] sm:$0xff]  ;;  %v2683_v27 = vld [vmem:[%s6440_s2 + $0x9e8] sm:$0xff] }
 0x181   :  { %1428 = vmatpush1.msra.mxu1 %v2654_v31  ;;  %1390 = vmatprep.subr.mxu0 %v2655_v33  ;;  %v2684_v29 = vld [vmem:[%s6440_s2 + $0xae8] sm:$0xff]  ;;  %v2685_v31 = vld [vmem:[%s6440_s2 + $0x9e0] sm:$0xff] }
 0x182   :  { %1429 = vmatprep.subr.mxu1 %v2656_v35  ;;  %1391 = vmatpush2.msra.mxu0 %v2657_v37  ;;  %v2686_v33 = vld [vmem:[%s6440_s2 + $0xae0] sm:$0xff]  ;;  %v2687_v35 = vld [vmem:[%s6440_s2 + $0x9d8] sm:$0xff] }
 0x183   :  { %1430 = vmatpush1.msra.mxu1 %v2658_v39  ;;  %1392 = vmatprep.subr.mxu0 %v2659_v41  ;;  %v2688_v37 = vld [vmem:[%s6440_s2 + $0xad8] sm:$0xff]  ;;  %v2689_v39 = vld [vmem:[%s6440_s2 + $0x9d0] sm:$0xff] }
 0x184   :  { %1431 = vmatprep.subr.mxu1 %v2660_v43  ;;  %1393 = vmatpush2.msra.mxu0 %v2661_v45  ;;  %v2690_v41 = vld [vmem:[%s6440_s2 + $0xad0] sm:$0xff]  ;;  %v2691_v43 = vld [vmem:[%s6440_s2 + $0x9c8] sm:$0xff] }
 0x185   :  { %1432 = vmatpush1.msra.mxu1 %v2662_v47  ;;  %1394 = vmatprep.subr.mxu0 %v2663_v49  ;;  %v2692_v45 = vld [vmem:[%s6440_s2 + $0xac8] sm:$0xff]  ;;  %v2693_v47 = vld [vmem:[%s6440_s2 + $0x9c0] sm:$0xff] }
 0x186   :  { %1433 = vmatprep.subr.mxu1 %v2664_v51  ;;  %1395 = vmatpush2.msra.mxu0 %v2665_v53  ;;  %v2694_v49 = vld [vmem:[%s6440_s2 + $0xac0] sm:$0xff]  ;;  %v2695_v51 = vld [vmem:[%s6440_s2 + $0x9b8] sm:$0xff] }
 0x187   :  { %1434 = vmatpush1.msra.mxu1 %v2666_v55  ;;  %1396 = vmatprep.subr.mxu0 %v2667_v57  ;;  %v2696_v53 = vld [vmem:[%s6440_s2 + $0xab8] sm:$0xff]  ;;  %v2697_v55 = vld [vmem:[%s6440_s2 + $0x9b0] sm:$0xff] }
 0x188   :  { %1435 = vmatprep.subr.mxu1 %v2668_v59  ;;  %1397 = vmatpush2.msra.mxu0 %v2669_v61  ;;  %v2698_v57 = vld [vmem:[%s6440_s2 + $0xab0] sm:$0xff]  ;;  %v2699_v59 = vld [vmem:[%s6440_s2 + $0x9a8] sm:$0xff] }
 0x189   :  { %1436 = vmatpush1.msra.mxu1 %v2670_v63  ;;  %1398 = vmatprep.subr.mxu0 %v2671_v1  ;;  %v2700_v61 = vld [vmem:[%s6440_s2 + $0xaa8] sm:$0xff]  ;;  %v2701_v63 = vld [vmem:[%s6440_s2 + $0x9a0] sm:$0xff] }
 0x18a   :  { %1437 = vmatprep.subr.mxu1 %v2672_v3  ;;  %1399 = vmatpush2.msra.mxu0 %v2673_v7  ;;  %v2702_v1 = vld [vmem:[%s6440_s2 + $0xaa0] sm:$0xff]  ;;  %v2703_v3 = vld [vmem:[%s6440_s2 + $0x998] sm:$0xff]  ;;  %v2705_v7 = vld [vmem:[%s6440_s2 + $0x990] sm:$0xff] }
 0x18b   :  { %1438 = vmatpush1.msra.mxu1 %v2674_v9  ;;  %1400 = vmatprep.subr.mxu0 %v2675_v12  ;;  %v2706_v9 = vld [vmem:[%s6440_s2 + $0xa90] sm:$0xff]  ;;  %v2708_v12 = vld [vmem:[%s6440_s2 + $0xa88] sm:$0xff] }
 0x18c   :  { %1439 = vmatprep.subr.mxu1 %v2676_v13  ;;  %1401 = vmatpush2.msra.mxu0 %v2677_v14  ;;  %v2709_v13 = vld [vmem:[%s6440_s2 + $0x980] sm:$0xff] }
 0x18d   :  { %1402 = vmatprep.mubr.f32.mxu0 %v1117_v5  ;;  %1440 = vmatpush1.msra.mxu1 %v2678_v17  ;;  %v2704_v5 = vld [vmem:[%s6440_s2 + $0xa98] sm:$0xff]  ;;  %v2710_v14 = vld [vmem:[%s6440_s2 + $0xa80] sm:$0xff] }
 0x18e   :  { %1403 = vmatmul.mubr.f32.vlgmr.msra.gmra.mxu0 %v1116_v11  ;;  %1441 = vmatprep.subr.mxu1 %v2679_v19  ;;  %v2707_v11 = vld [vmem:[%s6440_s2 + $0x988] sm:$0xff]  ;;  %v2711_v17 = vld [vmem:[%s6440_s2 + $0x978] sm:$0xff] }
 0x18f   :  { %1480 = vmatprep.subr.mxu0 %v2680_v21  ;;  %1442 = vmatpush2.msra.mxu1 %v2681_v23  ;;  %v2712_v19 = vld [vmem:[%s6440_s2 + $0xa78] sm:$0xff]  ;;  %v2713_v21 = vld [vmem:[%s6440_s2 + $0x970] sm:$0xff] }
 0x190   :  { %1481 = vmatpush1.msra.mxu0 %v2682_v25  ;;  %1443 = vmatprep.subr.mxu1 %v2683_v27  ;;  %v2714_v23 = vld [vmem:[%s6440_s2 + $0xa70] sm:$0xff]  ;;  %v2715_v25 = vld [vmem:[%s6440_s2 + $0x968] sm:$0xff] }
 0x191   :  { %1482 = vmatprep.subr.mxu0 %v2684_v29  ;;  %1444 = vmatpush2.msra.mxu1 %v2685_v31  ;;  %v2716_v27 = vld [vmem:[%s6440_s2 + $0xa68] sm:$0xff]  ;;  %v2717_v29 = vld [vmem:[%s6440_s2 + $0x960] sm:$0xff] }
 0x192   :  { %1483 = vmatpush1.msra.mxu0 %v2686_v33  ;;  %1445 = vmatprep.subr.mxu1 %v2687_v35  ;;  %v2718_v31 = vld [vmem:[%s6440_s2 + $0xa60] sm:$0xff]  ;;  %v2719_v33 = vld [vmem:[%s6440_s2 + $0x958] sm:$0xff] }
 0x193   :  { %1484 = vmatprep.subr.mxu0 %v2688_v37  ;;  %1446 = vmatpush2.msra.mxu1 %v2689_v39  ;;  %v2720_v35 = vld [vmem:[%s6440_s2 + $0xa58] sm:$0xff]  ;;  %v2721_v37 = vld [vmem:[%s6440_s2 + $0x950] sm:$0xff] }
 0x194   :  { %1485 = vmatpush1.msra.mxu0 %v2690_v41  ;;  %1447 = vmatprep.subr.mxu1 %v2691_v43  ;;  %v2722_v39 = vld [vmem:[%s6440_s2 + $0xa50] sm:$0xff]  ;;  %v2723_v41 = vld [vmem:[%s6440_s2 + $0x948] sm:$0xff] }
 0x195   :  { %1486 = vmatprep.subr.mxu0 %v2692_v45  ;;  %1448 = vmatpush2.msra.mxu1 %v2693_v47  ;;  %v2724_v43 = vld [vmem:[%s6440_s2 + $0xa48] sm:$0xff]  ;;  %v2725_v45 = vld [vmem:[%s6440_s2 + $0x940] sm:$0xff] }
 0x196   :  { %1487 = vmatpush1.msra.mxu0 %v2694_v49  ;;  %1449 = vmatprep.subr.mxu1 %v2695_v51  ;;  %v2726_v47 = vld [vmem:[%s6440_s2 + $0xa40] sm:$0xff]  ;;  %v2727_v49 = vld [vmem:[%s6440_s2 + $0x938] sm:$0xff] }
 0x197   :  { %1488 = vmatprep.subr.mxu0 %v2696_v53  ;;  %1450 = vmatpush2.msra.mxu1 %v2697_v55  ;;  %v2728_v51 = vld [vmem:[%s6440_s2 + $0xa38] sm:$0xff]  ;;  %v2729_v53 = vld [vmem:[%s6440_s2 + $0x930] sm:$0xff] }
 0x198   :  { %1489 = vmatpush1.msra.mxu0 %v2698_v57  ;;  %1451 = vmatprep.subr.mxu1 %v2699_v59  ;;  %v2730_v55 = vld [vmem:[%s6440_s2 + $0xa30] sm:$0xff]  ;;  %v2731_v57 = vld [vmem:[%s6440_s2 + $0x928] sm:$0xff] }
 0x199   :  { %1490 = vmatprep.subr.mxu0 %v2700_v61  ;;  %1452 = vmatpush2.msra.mxu1 %v2701_v63  ;;  %v2732_v59 = vld [vmem:[%s6440_s2 + $0xa28] sm:$0xff]  ;;  %v2733_v61 = vld [vmem:[%s6440_s2 + $0x920] sm:$0xff] }
 0x19a   :  { %1491 = vmatpush1.msra.mxu0 %v2702_v1  ;;  %1453 = vmatprep.subr.mxu1 %v2703_v3  ;;  %v2734_v63 = vld [vmem:[%s6440_s2 + $0xa20] sm:$0xff]  ;;  %v2735_v1 = vld [vmem:[%s6440_s2 + $0x918] sm:$0xff] }
 0x19b   :  { %1492 = vmatprep.subr.mxu0 %v2704_v5  ;;  %1454 = vmatpush2.msra.mxu1 %v2705_v7  ;;  %v2736_v3 = vld [vmem:[%s6440_s2 + $0xa18] sm:$0xff]  ;;  %v1119_v5 = vld [vmem:[%s6442_s1 + $0x48] sm:$0xff]  ;;  %v2737_v7 = vld [vmem:[%s6440_s2 + $0x910] sm:$0xff] }
 0x19c   :  { %1493 = vmatpush1.msra.mxu0 %v2706_v9  ;;  %1455 = vmatprep.subr.mxu1 %v2707_v11  ;;  %v2738_v9 = vld [vmem:[%s6440_s2 + $0xa10] sm:$0xff]  ;;  %v1118_v11 = vld [vmem:[%s6442_s1 + $0x40] sm:$0xff] }
 0x19d   :  { %1494 = vmatprep.subr.mxu0 %v2708_v12  ;;  %1456 = vmatpush2.msra.mxu1 %v2709_v13  ;;  %v2739_v12 = vld [vmem:[%s6440_s2 + $0x908] sm:$0xff] }
 0x19e   :  { %1495 = vmatpush1.msra.mxu0 %v2710_v14  ;;  %1457 = vmatprep.subr.mxu1 %v2711_v17  ;;  %v2740_v13 = vld [vmem:[%s6440_s2 + $0xa08] sm:$0xff]  ;;  %v2741_v14 = vld [vmem:[%s6440_s2 + $0x900] sm:$0xff] }
 0x19f   :  { %1496 = vmatprep.subr.mxu0 %v2712_v19  ;;  %1458 = vmatpush2.msra.mxu1 %v2713_v21  ;;  %v2742_v17 = vld [vmem:[%s6440_s2 + $0xa00] sm:$0xff]  ;;  %v2743_v19 = vld [vmem:[%s6440_s2 + $0xbf8] sm:$0xff] }
 0x1a0   :  { %1497 = vmatpush1.msra.mxu0 %v2714_v23  ;;  %1459 = vmatprep.subr.mxu1 %v2715_v25  ;;  %v2744_v21 = vld [vmem:[%s6440_s2 + $0xcf8] sm:$0xff]  ;;  %v2745_v23 = vld [vmem:[%s6440_s2 + $0xbf0] sm:$0xff] }
 0x1a1   :  { %1498 = vmatprep.subr.mxu0 %v2716_v27  ;;  %1460 = vmatpush2.msra.mxu1 %v2717_v29  ;;  %v2746_v25 = vld [vmem:[%s6440_s2 + $0xcf0] sm:$0xff]  ;;  %v2747_v27 = vld [vmem:[%s6440_s2 + $0xbe8] sm:$0xff] }
 0x1a2   :  { %1499 = vmatpush1.msra.mxu0 %v2718_v31  ;;  %1461 = vmatprep.subr.mxu1 %v2719_v33  ;;  %v2748_v29 = vld [vmem:[%s6440_s2 + $0xce8] sm:$0xff]  ;;  %v2749_v31 = vld [vmem:[%s6440_s2 + $0xbe0] sm:$0xff] }
 0x1a3   :  { %1500 = vmatprep.subr.mxu0 %v2720_v35  ;;  %1462 = vmatpush2.msra.mxu1 %v2721_v37  ;;  %v2750_v33 = vld [vmem:[%s6440_s2 + $0xce0] sm:$0xff]  ;;  %v2751_v35 = vld [vmem:[%s6440_s2 + $0xbd8] sm:$0xff] }
 0x1a4   :  { %1501 = vmatpush1.msra.mxu0 %v2722_v39  ;;  %1463 = vmatprep.subr.mxu1 %v2723_v41  ;;  %v2752_v37 = vld [vmem:[%s6440_s2 + $0xcd8] sm:$0xff]  ;;  %v2753_v39 = vld [vmem:[%s6440_s2 + $0xbd0] sm:$0xff] }
 0x1a5   :  { %1502 = vmatprep.subr.mxu0 %v2724_v43  ;;  %1464 = vmatpush2.msra.mxu1 %v2725_v45  ;;  %v2754_v41 = vld [vmem:[%s6440_s2 + $0xcd0] sm:$0xff]  ;;  %v2755_v43 = vld [vmem:[%s6440_s2 + $0xbc8] sm:$0xff] }
 0x1a6   :  { %1503 = vmatpush1.msra.mxu0 %v2726_v47  ;;  %1465 = vmatprep.subr.mxu1 %v2727_v49  ;;  %v2756_v45 = vld [vmem:[%s6440_s2 + $0xcc8] sm:$0xff]  ;;  %v2757_v47 = vld [vmem:[%s6440_s2 + $0xbc0] sm:$0xff] }
 0x1a7   :  { %1504 = vmatprep.subr.mxu0 %v2728_v51  ;;  %1466 = vmatpush2.msra.mxu1 %v2729_v53  ;;  %v2758_v49 = vld [vmem:[%s6440_s2 + $0xcc0] sm:$0xff]  ;;  %v2759_v51 = vld [vmem:[%s6440_s2 + $0xbb8] sm:$0xff] }
 0x1a8   :  { %1505 = vmatpush1.msra.mxu0 %v2730_v55  ;;  %1467 = vmatprep.subr.mxu1 %v2731_v57  ;;  %v2760_v53 = vld [vmem:[%s6440_s2 + $0xcb8] sm:$0xff]  ;;  %v2761_v55 = vld [vmem:[%s6440_s2 + $0xbb0] sm:$0xff] }
 0x1a9   :  { %1506 = vmatprep.subr.mxu0 %v2732_v59  ;;  %1468 = vmatpush2.msra.mxu1 %v2733_v61  ;;  %v2762_v57 = vld [vmem:[%s6440_s2 + $0xcb0] sm:$0xff]  ;;  %v2763_v59 = vld [vmem:[%s6440_s2 + $0xba8] sm:$0xff] }
 0x1aa   :  { %1507 = vmatpush1.msra.mxu0 %v2734_v63  ;;  %1469 = vmatprep.subr.mxu1 %v2735_v1  ;;  %v2764_v61 = vld [vmem:[%s6440_s2 + $0xca8] sm:$0xff]  ;;  %v2765_v63 = vld [vmem:[%s6440_s2 + $0xba0] sm:$0xff] }
 0x1ab   :  { %1508 = vmatprep.subr.mxu0 %v2736_v3  ;;  %1470 = vmatpush2.msra.mxu1 %v2737_v7  ;;  %v2766_v1 = vld [vmem:[%s6440_s2 + $0xca0] sm:$0xff]  ;;  %v2767_v3 = vld [vmem:[%s6440_s2 + $0xb98] sm:$0xff]  ;;  %v2769_v7 = vld [vmem:[%s6440_s2 + $0xb90] sm:$0xff] }
 0x1ac   :  { %1509 = vmatpush1.msra.mxu0 %v2738_v9  ;;  %1471 = vmatprep.subr.mxu1 %v2739_v12  ;;  %v2770_v9 = vld [vmem:[%s6440_s2 + $0xc90] sm:$0xff]  ;;  %v2772_v12 = vld [vmem:[%s6440_s2 + $0xc88] sm:$0xff] }
 0x1ad   :  { %1510 = vmatprep.subr.mxu0 %v2740_v13  ;;  %1472 = vmatpush2.msra.mxu1 %v2741_v14  ;;  %v2773_v13 = vld [vmem:[%s6440_s2 + $0xb80] sm:$0xff] }
 0x1ae   :  { %1473 = vmatprep.mubr.f32.mxu1 %v1119_v5  ;;  %1511 = vmatpush1.msra.mxu0 %v2742_v17  ;;  %v2768_v5 = vld [vmem:[%s6440_s2 + $0xc98] sm:$0xff]  ;;  %v2774_v14 = vld [vmem:[%s6440_s2 + $0xc80] sm:$0xff] }
 0x1af   :  { %1474 = vmatmul.mubr.f32.vlgmr.msra.gmra.mxu1 %v1118_v11  ;;  %1512 = vmatprep.subr.mxu0 %v2743_v19  ;;  %v2771_v11 = vld [vmem:[%s6440_s2 + $0xb88] sm:$0xff]  ;;  %v2775_v17 = vld [vmem:[%s6440_s2 + $0xb78] sm:$0xff] }
 0x1b0   :  { %1551 = vmatprep.subr.mxu1 %v2744_v21  ;;  %1513 = vmatpush2.msra.mxu0 %v2745_v23  ;;  %v2776_v19 = vld [vmem:[%s6440_s2 + $0xc78] sm:$0xff]  ;;  %v2777_v21 = vld [vmem:[%s6440_s2 + $0xb70] sm:$0xff] }
 0x1b1   :  { %1552 = vmatpush1.msra.mxu1 %v2746_v25  ;;  %1514 = vmatprep.subr.mxu0 %v2747_v27  ;;  %v2778_v23 = vld [vmem:[%s6440_s2 + $0xc70] sm:$0xff]  ;;  %v2779_v25 = vld [vmem:[%s6440_s2 + $0xb68] sm:$0xff] }
 0x1b2   :  { %1553 = vmatprep.subr.mxu1 %v2748_v29  ;;  %1515 = vmatpush2.msra.mxu0 %v2749_v31  ;;  %v2780_v27 = vld [vmem:[%s6440_s2 + $0xc68] sm:$0xff]  ;;  %v2781_v29 = vld [vmem:[%s6440_s2 + $0xb60] sm:$0xff] }
 0x1b3   :  { %1554 = vmatpush1.msra.mxu1 %v2750_v33  ;;  %1516 = vmatprep.subr.mxu0 %v2751_v35  ;;  %v2782_v31 = vld [vmem:[%s6440_s2 + $0xc60] sm:$0xff]  ;;  %v2783_v33 = vld [vmem:[%s6440_s2 + $0xb58] sm:$0xff] }
 0x1b4   :  { %1555 = vmatprep.subr.mxu1 %v2752_v37  ;;  %1517 = vmatpush2.msra.mxu0 %v2753_v39  ;;  %v2784_v35 = vld [vmem:[%s6440_s2 + $0xc58] sm:$0xff]  ;;  %v2785_v37 = vld [vmem:[%s6440_s2 + $0xb50] sm:$0xff] }
 0x1b5   :  { %1556 = vmatpush1.msra.mxu1 %v2754_v41  ;;  %1518 = vmatprep.subr.mxu0 %v2755_v43  ;;  %v2786_v39 = vld [vmem:[%s6440_s2 + $0xc50] sm:$0xff]  ;;  %v2787_v41 = vld [vmem:[%s6440_s2 + $0xb48] sm:$0xff] }
 0x1b6   :  { %1557 = vmatprep.subr.mxu1 %v2756_v45  ;;  %1519 = vmatpush2.msra.mxu0 %v2757_v47  ;;  %v2788_v43 = vld [vmem:[%s6440_s2 + $0xc48] sm:$0xff]  ;;  %v2789_v45 = vld [vmem:[%s6440_s2 + $0xb40] sm:$0xff] }
 0x1b7   :  { %1558 = vmatpush1.msra.mxu1 %v2758_v49  ;;  %1520 = vmatprep.subr.mxu0 %v2759_v51  ;;  %v2790_v47 = vld [vmem:[%s6440_s2 + $0xc40] sm:$0xff]  ;;  %v2791_v49 = vld [vmem:[%s6440_s2 + $0xb38] sm:$0xff] }
 0x1b8   :  { %1559 = vmatprep.subr.mxu1 %v2760_v53  ;;  %1521 = vmatpush2.msra.mxu0 %v2761_v55  ;;  %v2792_v51 = vld [vmem:[%s6440_s2 + $0xc38] sm:$0xff]  ;;  %v2793_v53 = vld [vmem:[%s6440_s2 + $0xb30] sm:$0xff] }
 0x1b9   :  { %1560 = vmatpush1.msra.mxu1 %v2762_v57  ;;  %1522 = vmatprep.subr.mxu0 %v2763_v59  ;;  %v2794_v55 = vld [vmem:[%s6440_s2 + $0xc30] sm:$0xff]  ;;  %v2795_v57 = vld [vmem:[%s6440_s2 + $0xb28] sm:$0xff] }
 0x1ba   :  { %1561 = vmatprep.subr.mxu1 %v2764_v61  ;;  %1523 = vmatpush2.msra.mxu0 %v2765_v63  ;;  %v2796_v59 = vld [vmem:[%s6440_s2 + $0xc28] sm:$0xff]  ;;  %v2797_v61 = vld [vmem:[%s6440_s2 + $0xb20] sm:$0xff] }
 0x1bb   :  { %1562 = vmatpush1.msra.mxu1 %v2766_v1  ;;  %1524 = vmatprep.subr.mxu0 %v2767_v3  ;;  %v2798_v63 = vld [vmem:[%s6440_s2 + $0xc20] sm:$0xff]  ;;  %v2799_v1 = vld [vmem:[%s6440_s2 + $0xb18] sm:$0xff] }
 0x1bc   :  { %1563 = vmatprep.subr.mxu1 %v2768_v5  ;;  %1525 = vmatpush2.msra.mxu0 %v2769_v7  ;;  %v2800_v3 = vld [vmem:[%s6440_s2 + $0xc18] sm:$0xff]  ;;  %v2801_v7 = vld [vmem:[%s6440_s2 + $0xb10] sm:$0xff] }
 0x1bd   :  { %1564 = vmatpush1.msra.mxu1 %v2770_v9  ;;  %1526 = vmatprep.subr.mxu0 %v2771_v11  ;;  %v1121_v5 = vld [vmem:[%s6442_s1 + $0x58] sm:$0xff]  ;;  %v2802_v9 = vld [vmem:[%s6440_s2 + $0xc10] sm:$0xff] }
 0x1be   :  { %1565 = vmatprep.subr.mxu1 %v2772_v12  ;;  %1527 = vmatpush2.msra.mxu0 %v2773_v13  ;;  %v1120_v11 = vld [vmem:[%s6442_s1 + $0x50] sm:$0xff]  ;;  %v2803_v12 = vld [vmem:[%s6440_s2 + $0xb08] sm:$0xff] }
 0x1bf   :  { %1566 = vmatpush1.msra.mxu1 %v2774_v14  ;;  %1528 = vmatprep.subr.mxu0 %v2775_v17  ;;  %v2804_v13 = vld [vmem:[%s6440_s2 + $0xc08] sm:$0xff]  ;;  %v2805_v14 = vld [vmem:[%s6440_s2 + $0xb00] sm:$0xff] }
 0x1c0   :  { %1567 = vmatprep.subr.mxu1 %v2776_v19  ;;  %1529 = vmatpush2.msra.mxu0 %v2777_v21  ;;  %v2806_v17 = vld [vmem:[%s6440_s2 + $0xc00] sm:$0xff]  ;;  %v2807_v19 = vld [vmem:[%s6440_s2 + $0xdf8] sm:$0xff] }
 0x1c1   :  { %1568 = vmatpush1.msra.mxu1 %v2778_v23  ;;  %1530 = vmatprep.subr.mxu0 %v2779_v25  ;;  %v2808_v21 = vld [vmem:[%s6440_s2 + $0xef8] sm:$0xff]  ;;  %v2809_v23 = vld [vmem:[%s6440_s2 + $0xdf0] sm:$0xff] }
 0x1c2   :  { %1569 = vmatprep.subr.mxu1 %v2780_v27  ;;  %1531 = vmatpush2.msra.mxu0 %v2781_v29  ;;  %v2810_v25 = vld [vmem:[%s6440_s2 + $0xef0] sm:$0xff]  ;;  %v2811_v27 = vld [vmem:[%s6440_s2 + $0xee8] sm:$0xff]  ;;  %v2812_v29 = vld [vmem:[%s6440_s2 + $0xee0] sm:$0xff] }
 0x1c3   :  { %1570 = vmatpush1.msra.mxu1 %v2782_v31  ;;  %1532 = vmatprep.subr.mxu0 %v2783_v33  ;;  %v2813_v31 = vld [vmem:[%s6440_s2 + $0xed8] sm:$0xff]  ;;  %v1122_v33 = vld [vmem:[%s6442_s1 + $0x60] sm:$0xff] }
 0x1c4   :  { %1571 = vmatprep.subr.mxu1 %v2784_v35  ;;  %1533 = vmatpush2.msra.mxu0 %v2785_v37  ;;  %v1743_v35 = vld [vmem:[%s6443_s4 + $0x170] sm:$0xff]  ;;  %v1744_v37 = vld [vmem:[%s6443_s4 + $0x178] sm:$0xff] }
 0x1c5   :  { %1572 = vmatpush1.msra.mxu1 %v2786_v39  ;;  %1534 = vmatprep.subr.mxu0 %v2787_v41  ;;  %v1740_v39 = vld [vmem:[%s6443_s4 + $0x158] sm:$0xff]  ;;  %v1739_v41 = vld [vmem:[%s6443_s4 + $0x150] sm:$0xff] }
 0x1c6   :  { %1573 = vmatprep.subr.mxu1 %v2788_v43  ;;  %1535 = vmatpush2.msra.mxu0 %v2789_v45  ;;  %v1741_v43 = vld [vmem:[%s6443_s4 + $0x160] sm:$0xff] }
 0x1c7   :  { %1574 = vmatpush1.msra.mxu1 %v2790_v47  ;;  %1536 = vmatprep.subr.mxu0 %v2791_v49  ;;  %v1737_v45 = vld [vmem:[%s6443_s4 + $0x140] sm:$0xff]  ;;  %v1738_v47 = vld [vmem:[%s6443_s4 + $0x148] sm:$0xff]  ;;  %v1736_v49 = vld [vmem:[%s6443_s4 + $0x138] sm:$0xff] }
 0x1c8   :  { %1575 = vmatprep.subr.mxu1 %v2792_v51  ;;  %1537 = vmatpush2.msra.mxu0 %v2793_v53  ;;  %v1734_v51 = vld [vmem:[%s6443_s4 + $0x128] sm:$0xff]  ;;  %v1735_v53 = vld [vmem:[%s6443_s4 + $0x130] sm:$0xff] }
 0x1c9   :  { %1576 = vmatpush1.msra.mxu1 %v2794_v55  ;;  %1538 = vmatprep.subr.mxu0 %v2795_v57  ;;  %v1733_v55 = vld [vmem:[%s6443_s4 + $0x120] sm:$0xff]  ;;  %v1731_v57 = vld [vmem:[%s6443_s4 + $0x110] sm:$0xff] }
 0x1ca   :  { %1577 = vmatprep.subr.mxu1 %v2796_v59  ;;  %1539 = vmatpush2.msra.mxu0 %v2797_v61  ;;  %v1732_v59 = vld [vmem:[%s6443_s4 + $0x118] sm:$0xff]  ;;  %v1730_v61 = vld [vmem:[%s6443_s4 + $0x108] sm:$0xff] }
 0x1cb   :  { %1578 = vmatpush1.msra.mxu1 %v2798_v63  ;;  %1540 = vmatprep.subr.mxu0 %v2799_v1  ;;  %v1728_v63 = vld [vmem:[%s6443_s4 + $0xf8] sm:$0xff]  ;;  %v1729_v1 = vld [vmem:[%s6443_s4 + $0x100] sm:$0xff] }
 0x1cc   :  { %1579 = vmatprep.subr.mxu1 %v2800_v3  ;;  %1541 = vmatpush2.msra.mxu0 %v2801_v7  ;;  %v1727_v3 = vld [vmem:[%s6443_s4 + $0xf0] sm:$0xff]  ;;  %v1726_v7 = vld [vmem:[%s6443_s4 + $0xe8] sm:$0xff] }
 0x1cd   :  { %1580 = vmatpush1.msra.mxu1 %v2802_v9  ;;  %1542 = vmatprep.subr.mxu0 %v2803_v12  ;;  %v1724_v9 = vld [vmem:[%s6443_s4 + $0xd8] sm:$0xff]  ;;  %v1723_v12 = vld [vmem:[%s6443_s4 + $0xd0] sm:$0xff] }
 0x1ce   :  { %1581 = vmatprep.subr.mxu1 %v2804_v13  ;;  %1543 = vmatpush2.msra.mxu0 %v2805_v14  ;;  %v1721_v13 = vld [vmem:[%s6443_s4 + $0xc0] sm:$0xff]  ;;  %v1719_v14 = vld [vmem:[%s6443_s4 + $0xb0] sm:$0xff] }
 0x1cf   :  { %1544 = vmatprep.mubr.f32.mxu0 %v1121_v5  ;;  %1582 = vmatpush1.msra.mxu1 %v2806_v17  ;;  %v1725_v5 = vld [vmem:[%s6443_s4 + $0xe0] sm:$0xff]  ;;  %v1718_v17 = vld [vmem:[%s6443_s4 + $0xa8] sm:$0xff] }
 0x1d0   :  { %1545 = vmatmul.mubr.f32.vlgmr.msra.gmra.mxu0 %v1120_v11  ;;  %1583 = vmatprep.subr.mxu1 %v2807_v19  ;;  %v1722_v11 = vld [vmem:[%s6443_s4 + $0xc8] sm:$0xff]  ;;  %v1720_v19 = vld [vmem:[%s6443_s4 + $0xb8] sm:$0xff] }
 0x1d1   :  { %1622 = vmatprep.subr.mxu0 %v2808_v21  ;;  %1584 = vmatpush2.msra.mxu1 %v2809_v23  ;;  %v1716_v21 = vld [vmem:[%s6443_s4 + $0x98] sm:$0xff]  ;;  %v1715_v23 = vld [vmem:[%s6443_s4 + $0x90] sm:$0xff] }
 0x1d2   :  { %1623 = vmatpush1.msra.mxu0 %v2810_v25  ;;  %1585 = vmatprep.subr.mxu1 %v4291_v16  ;;  %v2814_v16 = vld [vmem:[%s6440_s2 + $0xed0] sm:$0xff]  ;;  %v1717_v25 = vld [vmem:[%s6443_s4 + $0xa0] sm:$0xff] }
 0x1d3   :  { %1624 = vmatprep.subr.mxu0 %v2811_v27  ;;  %1586 = vmatpush2.msra.mxu1 %v4299_v18  ;;  %v2815_v18 = vld [vmem:[%s6440_s2 + $0xec8] sm:$0xff]  ;;  %v1713_v27 = vld [vmem:[%s6443_s4 + $0x80] sm:$0xff] }
 0x1d4   :  { %1625 = vmatpush1.msra.mxu0 %v2812_v29  ;;  %1587 = vmatprep.subr.mxu1 %v4307_v20  ;;  %v2816_v20 = vld [vmem:[%s6440_s2 + $0xec0] sm:$0xff]  ;;  %v1712_v29 = vld [vmem:[%s6443_s4 + $0x78] sm:$0xff] }
 0x1d5   :  { %1626 = vmatprep.subr.mxu0 %v2813_v31  ;;  %1588 = vmatpush2.msra.mxu1 %v4316_v22  ;;  %v2817_v22 = vld [vmem:[%s6440_s2 + $0xeb8] sm:$0xff]  ;;  %v1714_v31 = vld [vmem:[%s6443_s4 + $0x88] sm:$0xff] }
 0x1d6   :  { %1627 = vmatpush1.msra.mxu0 %v2814_v16  ;;  %1589 = vmatprep.subr.mxu1 %v4325_v24  ;;  %v2818_v24 = vld [vmem:[%s6440_s2 + $0xeb0] sm:$0xff]  ;;  %v1710_v16 = vld [vmem:[%s6443_s4 + $0x68] sm:$0xff] }
 0x1d7   :  { %1628 = vmatprep.subr.mxu0 %v2815_v18  ;;  %1590 = vmatpush2.msra.mxu1 %v4334_v26  ;;  %v2819_v26 = vld [vmem:[%s6440_s2 + $0xea8] sm:$0xff]  ;;  %v1711_v18 = vld [vmem:[%s6443_s4 + $0x70] sm:$0xff] }
 0x1d8   :  { %1629 = vmatpush1.msra.mxu0 %v2816_v20  ;;  %1591 = vmatprep.subr.mxu1 %v4343_v28  ;;  %v2820_v28 = vld [vmem:[%s6440_s2 + $0xea0] sm:$0xff] }
 0x1d9   :  { %1630 = vmatprep.subr.mxu0 %v2817_v22  ;;  %1592 = vmatpush2.msra.mxu1 %v4352_v30  ;;  %v2821_v30 = vld [vmem:[%s6440_s2 + $0xe98] sm:$0xff]  ;;  %v1709_v20 = vld [vmem:[%s6443_s4 + $0x60] sm:$0xff]  ;;  %v1707_v22 = vld [vmem:[%s6443_s4 + $0x50] sm:$0xff] }
 0x1da   :  { %1631 = vmatpush1.msra.mxu0 %v2818_v24  ;;  %1593 = vmatprep.subr.mxu1 %v4361_v32  ;;  %v2822_v32 = vld [vmem:[%s6440_s2 + $0xe90] sm:$0xff]  ;;  %v1708_v24 = vld [vmem:[%s6443_s4 + $0x58] sm:$0xff] }
 0x1db   :  { %1632 = vmatprep.subr.mxu0 %v2819_v26  ;;  %1594 = vmatpush2.msra.mxu1 %v4370_v34  ;;  %v2823_v34 = vld [vmem:[%s6440_s2 + $0xe88] sm:$0xff] }
 0x1dc   :  { %1633 = vmatpush1.msra.mxu0 %v2820_v28  ;;  %1595 = vmatprep.subr.mxu1 %v4379_v36  ;;  %v2824_v36 = vld [vmem:[%s6440_s2 + $0xe80] sm:$0xff]  ;;  %v1706_v26 = vld [vmem:[%s6443_s4 + $0x48] sm:$0xff]  ;;  %v1704_v28 = vld [vmem:[%s6443_s4 + $0x38] sm:$0xff] }
 0x1dd   :  { %1634 = vmatprep.subr.mxu0 %v2821_v30  ;;  %1596 = vmatpush2.msra.mxu1 %v4388_v38  ;;  %v2825_v38 = vld [vmem:[%s6440_s2 + $0xe78] sm:$0xff]  ;;  %v1705_v30 = vld [vmem:[%s6443_s4 + $0x40] sm:$0xff] }
 0x1de   :  { %1635 = vmatpush1.msra.mxu0 %v2822_v32  ;;  %1597 = vmatprep.subr.mxu1 %v4397_v40  ;;  %v2826_v40 = vld [vmem:[%s6440_s2 + $0xe70] sm:$0xff] }
 0x1df   :  { %1636 = vmatprep.subr.mxu0 %v2823_v34  ;;  %1598 = vmatpush2.msra.mxu1 %v4406_v42  ;;  %v2827_v42 = vld [vmem:[%s6440_s2 + $0xe68] sm:$0xff]  ;;  %v1703_v32 = vld [vmem:[%s6443_s4 + $0x30] sm:$0xff]  ;;  %v1701_v34 = vld [vmem:[%s6443_s4 + $0x20] sm:$0xff] }
 0x1e0   :  { %1637 = vmatpush1.msra.mxu0 %v2824_v36  ;;  %1599 = vmatprep.subr.mxu1 %v4415_v44  ;;  %v2828_v44 = vld [vmem:[%s6440_s2 + $0xe60] sm:$0xff]  ;;  %v1702_v36 = vld [vmem:[%s6443_s4 + $0x28] sm:$0xff] }
 0x1e1   :  { %1638 = vmatprep.subr.mxu0 %v2825_v38  ;;  %1600 = vmatpush2.msra.mxu1 %v4424_v46  ;;  %v2829_v46 = vld [vmem:[%s6440_s2 + $0xe58] sm:$0xff] }
 0x1e2   :  { %1639 = vmatpush1.msra.mxu0 %v2826_v40  ;;  %1601 = vmatprep.subr.mxu1 %v4433_v48  ;;  %v2830_v48 = vld [vmem:[%s6440_s2 + $0xe50] sm:$0xff]  ;;  %v1700_v38 = vld [vmem:[%s6443_s4 + $0x18] sm:$0xff]  ;;  %v1698_v40 = vld [vmem:[%s6443_s4 + $0x8] sm:$0xff] }
 0x1e3   :  { %1640 = vmatprep.subr.mxu0 %v2827_v42  ;;  %1602 = vmatpush2.msra.mxu1 %v4442_v50  ;;  %v2831_v50 = vld [vmem:[%s6440_s2 + $0xe48] sm:$0xff]  ;;  %v1699_v42 = vld [vmem:[%s6443_s4 + $0x10] sm:$0xff] }
 0x1e4   :  { %1641 = vmatpush1.msra.mxu0 %v2828_v44  ;;  %1603 = vmatprep.subr.mxu1 %v4451_v52  ;;  %v2832_v52 = vld [vmem:[%s6440_s2 + $0xe40] sm:$0xff] }
 0x1e5   :  { %1642 = vmatprep.subr.mxu0 %v2829_v46  ;;  %1604 = vmatpush2.msra.mxu1 %v4460_v54  ;;  %v2833_v54 = vld [vmem:[%s6440_s2 + $0xe38] sm:$0xff]  ;;  %v1697_v44 = vld [vmem:[%s6443_s4] sm:$0xff] }
 0x1e6   :  { %1643 = vmatpush1.msra.mxu0 %v2830_v48  ;;  %1605 = vmatprep.subr.mxu1 %v4469_v56  ;;  %v2834_v56 = vld [vmem:[%s6440_s2 + $0xe30] sm:$0xff]  ;;  %v1785_v46 = vld [vmem:[%s6443_s4 + $0x2c0] sm:$0xff]  ;;  %v1786_v48 = vld [vmem:[%s6443_s4 + $0x2c8] sm:$0xff] }
 0x1e7   :  { %1644 = vmatprep.subr.mxu0 %v2831_v50  ;;  %1606 = vmatpush2.msra.mxu1 %v4478_v58  ;;  %v2835_v58 = vld [vmem:[%s6440_s2 + $0xe28] sm:$0xff]  ;;  %v1784_v50 = vld [vmem:[%s6443_s4 + $0x2b8] sm:$0xff] }
 0x1e8   :  { %1645 = vmatpush1.msra.mxu0 %v2832_v52  ;;  %1607 = vmatprep.subr.mxu1 %v4487_v60  ;;  %v2836_v60 = vld [vmem:[%s6440_s2 + $0xe20] sm:$0xff]  ;;  %v1782_v52 = vld [vmem:[%s6443_s4 + $0x2a8] sm:$0xff] }
 0x1e9   :  { %1646 = vmatprep.subr.mxu0 %v2833_v54  ;;  %1608 = vmatpush2.msra.mxu1 %v4496_v62  ;;  %v2837_v62 = vld [vmem:[%s6440_s2 + $0xe18] sm:$0xff]  ;;  %v1783_v54 = vld [vmem:[%s6443_s4 + $0x2b0] sm:$0xff] }
 0x1ea   :  { %1647 = vmatpush1.msra.mxu0 %v2834_v56  ;;  %1609 = vmatprep.subr.mxu1 %v4505_v0  ;;  %v1123_v0 = vld [vmem:[%s6442_s1 + $0x68] sm:$0xff]  ;;  %v1781_v56 = vld [vmem:[%s6443_s4 + $0x2a0] sm:$0xff] }
 0x1eb   :  { %1648 = vmatprep.subr.mxu0 %v2835_v58  ;;  %1610 = vmatpush2.msra.mxu1 %v4514_v2  ;;  %v2838_v2 = vld [vmem:[%s6440_s2 + $0xe10] sm:$0xff] }
 0x1ec   :  { %1649 = vmatpush1.msra.mxu0 %v2836_v60  ;;  %1611 = vmatprep.subr.mxu1 %v4523_v4  ;;  %v2839_v4 = vld [vmem:[%s6440_s2 + $0xe08] sm:$0xff]  ;;  %v1779_v58 = vld [vmem:[%s6443_s4 + $0x290] sm:$0xff]  ;;  %v1780_v60 = vld [vmem:[%s6443_s4 + $0x298] sm:$0xff] }
 0x1ed   :  { %1650 = vmatprep.subr.mxu0 %v2837_v62  ;;  %1612 = vmatpush2.msra.mxu1 %v4532_v6  ;;  %v1124_v6 = vld [vmem:[%s6442_s1 + $0x70] sm:$0xff]  ;;  %v1778_v62 = vld [vmem:[%s6443_s4 + $0x288] sm:$0xff] }
 0x1ee   :  { %1651 = vmatpush1.msra.mxu0 %v2838_v2  ;;  %1613 = vmatprep.subr.mxu1 %v4541_v8  ;;  %v2840_v8 = vld [vmem:[%s6440_s2 + $0xe00] sm:$0xff] }
 0x1ef   :  { %1652 = vmatprep.subr.mxu0 %v2839_v4  ;;  %1614 = vmatpush2.msra.mxu1 %v4550_v10  ;;  %v1742_v10 = vld [vmem:[%s6443_s4 + $0x168] sm:$0xff]  ;;  %v1777_v2 = vld [vmem:[%s6443_s4 + $0x280] sm:$0xff]  ;;  %v1775_v4 = vld [vmem:[%s6443_s4 + $0x270] sm:$0xff] }
 0x1f0   :  { %1615 = vmatprep.mubr.f32.mxu1 %v1123_v0  ;;  %1653 = vmatpush1.msra.mxu0 %v2840_v8  ;;  %v1776_v0 = vld [vmem:[%s6443_s4 + $0x278] sm:$0xff] }
 0x1f1   :  { %1686 = vmatprep.mubr.f32.mxu0 %v2841_v15  ;;  %1616 = vmatmul.mubr.f32.vlgmr.msra.gmra.mxu1 %v1122_v33  ;;  %v1773_v33 = vld [vmem:[%s6443_s4 + $0x260] sm:$0xff]  ;;  %v1772_v8 = vld [vmem:[%s6443_s4 + $0x258] sm:$0xff] }
 0x1f2   :  { %1687 = vmatmul.mubr.f32.vlgmr.msra.gmra.mxu0 %v1124_v6  ;;  %1879 = vmatprep.subr.mxu1 %v2841_v15  ;;  %v1774_v6 = vld [vmem:[%s6443_s4 + $0x268] sm:$0xff] }
 0x1f3   :  { %1808 = vmatprep.subr.mxu0 %v1743_v35  ;;  %1880 = vmatpush1.msra.mxu1 %v1744_v37  ;;  %v1770_v35 = vld [vmem:[%s6443_s4 + $0x248] sm:$0xff]  ;;  %v1769_v37 = vld [vmem:[%s6443_s4 + $0x240] sm:$0xff] }
 0x1f4   :  { %1809 = vmatpush1.msra.mxu0 %v1742_v10  ;;  %1881 = vmatprep.subr.mxu1 %v2841_v15  ;;  %v1771_v10 = vld [vmem:[%s6443_s4 + $0x250] sm:$0xff] }
 0x1f5   :  { %1810 = vmatprep.subr.mxu0 %v1740_v39  ;;  %1882 = vmatpush1.msra.mxu1 %v1741_v43  ;;  %v1767_v39 = vld [vmem:[%s6443_s4 + $0x230] sm:$0xff]  ;;  %v1766_v43 = vld [vmem:[%s6443_s4 + $0x228] sm:$0xff] }
 0x1f6   :  { %1811 = vmatpush1.msra.mxu0 %v1739_v41  ;;  %1883 = vmatprep.subr.mxu1 %v2841_v15  ;;  %v1768_v41 = vld [vmem:[%s6443_s4 + $0x238] sm:$0xff] }
 0x1f7   :  { %1812 = vmatprep.subr.mxu0 %v1737_v45  ;;  %1884 = vmatpush1.msra.mxu1 %v1738_v47  ;;  %v1764_v45 = vld [vmem:[%s6443_s4 + $0x218] sm:$0xff]  ;;  %v1765_v47 = vld [vmem:[%s6443_s4 + $0x220] sm:$0xff] }
 0x1f8   :  { %1813 = vmatpush1.msra.mxu0 %v1736_v49  ;;  %1885 = vmatprep.subr.mxu1 %v2841_v15  ;;  %v1763_v49 = vld [vmem:[%s6443_s4 + $0x210] sm:$0xff] }
 0x1f9   :  { %1814 = vmatprep.subr.mxu0 %v1734_v51  ;;  %1886 = vmatpush1.msra.mxu1 %v1735_v53  ;;  %v1761_v51 = vld [vmem:[%s6443_s4 + $0x200] sm:$0xff]  ;;  %v1760_v53 = vld [vmem:[%s6443_s4 + $0x1f8] sm:$0xff] }
 0x1fa   :  { %1815 = vmatpush1.msra.mxu0 %v1733_v55  ;;  %1887 = vmatprep.subr.mxu1 %v2841_v15  ;;  %v1762_v55 = vld [vmem:[%s6443_s4 + $0x208] sm:$0xff] }
 0x1fb   :  { %1816 = vmatprep.subr.mxu0 %v1731_v57  ;;  %1888 = vmatpush1.msra.mxu1 %v1732_v59  ;;  %v1758_v57 = vld [vmem:[%s6443_s4 + $0x1e8] sm:$0xff]  ;;  %v1757_v59 = vld [vmem:[%s6443_s4 + $0x1e0] sm:$0xff] }
 0x1fc   :  { %1817 = vmatpush1.msra.mxu0 %v1730_v61  ;;  %1889 = vmatprep.subr.mxu1 %v2841_v15  ;;  %v1759_v61 = vld [vmem:[%s6443_s4 + $0x1f0] sm:$0xff] }
 0x1fd   :  { %1818 = vmatprep.subr.mxu0 %v1728_v63  ;;  %1890 = vmatpush1.msra.mxu1 %v1729_v1  ;;  %v1755_v63 = vld [vmem:[%s6443_s4 + $0x1d0] sm:$0xff]  ;;  %v1754_v1 = vld [vmem:[%s6443_s4 + $0x1c8] sm:$0xff] }
 0x1fe   :  { %1819 = vmatpush1.msra.mxu0 %v1727_v3  ;;  %1891 = vmatprep.subr.mxu1 %v2841_v15  ;;  %v1756_v3 = vld [vmem:[%s6443_s4 + $0x1d8] sm:$0xff] }
 0x1ff   :  { %1820 = vmatprep.subr.mxu0 %v1725_v5  ;;  %1892 = vmatpush1.msra.mxu1 %v1726_v7  ;;  %v1752_v5 = vld [vmem:[%s6443_s4 + $0x1b8] sm:$0xff]  ;;  %v1751_v7 = vld [vmem:[%s6443_s4 + $0x1b0] sm:$0xff] }
 0x200   :  { %1821 = vmatpush1.msra.mxu0 %v1724_v9  ;;  %1893 = vmatprep.subr.mxu1 %v2841_v15  ;;  %v1753_v9 = vld [vmem:[%s6443_s4 + $0x1c0] sm:$0xff] }
 0x201   :  { %1822 = vmatprep.subr.mxu0 %v1722_v11  ;;  %1894 = vmatpush1.msra.mxu1 %v1723_v12  ;;  %v1749_v11 = vld [vmem:[%s6443_s4 + $0x1a0] sm:$0xff]  ;;  %v1748_v12 = vld [vmem:[%s6443_s4 + $0x198] sm:$0xff] }
 0x202   :  { %1823 = vmatpush1.msra.mxu0 %v1721_v13  ;;  %1895 = vmatprep.subr.mxu1 %v2841_v15  ;;  %v1750_v13 = vld [vmem:[%s6443_s4 + $0x1a8] sm:$0xff] }
 0x203   :  { %1824 = vmatprep.subr.mxu0 %v1719_v14  ;;  %1896 = vmatpush1.msra.mxu1 %v1720_v19  ;;  %v1746_v14 = vld [vmem:[%s6443_s4 + $0x188] sm:$0xff]  ;;  %v1747_v19 = vld [vmem:[%s6443_s4 + $0x190] sm:$0xff] }
 0x204   :  { %1825 = vmatpush1.msra.mxu0 %v1718_v17  ;;  %1897 = vmatprep.subr.mxu1 %v2841_v15  ;;  %v1745_v17 = vld [vmem:[%s6443_s4 + $0x180] sm:$0xff] }
 0x205   :  { %1826 = vmatprep.subr.mxu0 %v1716_v21  ;;  %1898 = vmatpush1.msra.mxu1 %v1717_v25  ;;  %v1983_v21 = vld [vmem:[%s6444_s6 + $0xf8] sm:$0xff]  ;;  %v608_v25 = vpop.f32.mrf.mxu0 }
 0x206   :  { %1827 = vmatpush1.msra.mxu0 %v1715_v23  ;;  %1899 = vmatprep.subr.mxu1 %v2841_v15  ;;  %v679_v23 = vpop.f32.mrf.mxu1 }
 0x207   :  { %1828 = vmatprep.subr.mxu0 %v1713_v27  ;;  %1900 = vmatpush1.msra.mxu1 %v1714_v31 }
 0x208   :  { %1829 = vmatpush1.msra.mxu0 %v1712_v29  ;;  %1901 = vmatprep.subr.mxu1 %v2841_v15  ;;  %v681_v27 = vpop.f32.mrf.mxu1  ;;  %v610_v29 = vpop.f32.mrf.mxu0 }
 0x209   :  { %1830 = vmatprep.subr.mxu0 %v1710_v16  ;;  %1902 = vmatpush1.msra.mxu1 %v1711_v18  ;;  %v532_v18 = vlaneseq }
 0x20a   :  { %1831 = vmatpush1.msra.mxu0 %v1709_v20  ;;  %1903 = vmatprep.subr.mxu1 %v2841_v15  ;;  %v821_v31 = vpop.f32.mrf.mxu1  ;;  %v750_v16 = vpop.f32.mrf.mxu0 }
 0x20b   :  { %1832 = vmatprep.subr.mxu0 %v1707_v22  ;;  %1904 = vmatpush1.msra.mxu1 %v1708_v24 }
 0x20c   :  { %1833 = vmatpush1.msra.mxu0 %v1706_v26  ;;  %1905 = vmatprep.subr.mxu1 %v2841_v15  ;;  %v823_v20 = vpop.f32.mrf.mxu1  ;;  %v752_v22 = vpop.f32.mrf.mxu0  ;;  %v6204_v26 = vshrl.u32 %v532_v18, 7 }
 0x20d   :  { %1834 = vmatprep.subr.mxu0 %v1704_v28  ;;  %1906 = vmatpush1.msra.mxu1 %v1705_v30 }
 0x20e   :  { %1835 = vmatpush1.msra.mxu0 %v1703_v32  ;;  %1907 = vmatprep.subr.mxu1 %v2841_v15  ;;  %v963_v24 = vpop.f32.mrf.mxu1  ;;  %v892_v28 = vpop.f32.mrf.mxu0  ;;  %v534_v32 = vsub.s32 0, %v6204_v26 }
 0x20f   :  { %1836 = vmatprep.subr.mxu0 %v1701_v34  ;;  %1908 = vmatpush1.msra.mxu1 %v1702_v36 }
 0x210   :  { %1837 = vmatpush1.msra.mxu0 %v1700_v38  ;;  %1909 = vmatprep.subr.mxu1 %v2841_v15  ;;  %v965_v30 = vpop.f32.mrf.mxu1  ;;  %v894_v34 = vpop.f32.mrf.mxu0  ;;  %v515_v38 = vld [vmem:[%s6445_s3] sm:$0x3] }
 0x211   :  { %1838 = vmatprep.subr.mxu0 %v1698_v40  ;;  %1910 = vmatpush1.msra.mxu1 %v1699_v42  ;;  %v538_v40 = vsub.s32 1, %v6204_v26 }
 0x212   :  { %1839 = vmatpush1.msra.mxu0 %v1697_v44  ;;  %1915 = vmatprep.subr.mxu1 %v2841_v15  ;;  %v1105_v36 = vpop.f32.mrf.mxu1  ;;  %v1034_v42 = vpop.f32.mrf.mxu0  ;;  %v535_v44 = vrot.slane %v515_v38, %v534_v32 }
 0x213   :  { %1844 = vmatprep.subr.mxu0 %v1785_v46  ;;  %1916 = vmatpush2.msra.mxu1 %v1786_v48  ;;  %v539_v48 = vrot.slane %v515_v38, %v538_v40  ;;  %v1995_v38 = vld [vmem:[%s6444_s6 + $0x158] sm:$0xff] }
 0x214   :  { %1845 = vmatpush2.msra.mxu0 %v1784_v50  ;;  %1917 = vmatprep.subr.mxu1 %v2841_v15  ;;  %v1107_v46 = vpop.f32.mrf.mxu1  ;;  %v1036_v50 = vpop.f32.mrf.mxu0 }
 0x215   :  { %1846 = vmatprep.subr.mxu0 %v1782_v52  ;;  %1918 = vmatpush2.msra.mxu1 %v1783_v54  ;;  %v609_v54 = vadd.f32 %v608_v25, %v535_v44 }
 0x216   :  { %1847 = vmatpush2.msra.mxu0 %v1781_v56  ;;  %1919 = vmatprep.subr.mxu1 %v2841_v15  ;;  %v1191_v52 = vpop.f32.mrf.mxu1  ;;  %v1262_v56 = vpop.f32.mrf.mxu0 }
 0x217   :  { %1848 = vmatprep.subr.mxu0 %v1779_v58  ;;  %1920 = vmatpush2.msra.mxu1 %v1780_v60  ;;  %v611_v58 = vadd.f32 %v610_v29, %v539_v48 }
 0x218   :  { %1849 = vmatpush2.msra.mxu0 %v1778_v62  ;;  %1921 = vmatprep.subr.mxu1 %v2841_v15  ;;  %v1193_v60 = vpop.f32.mrf.mxu1  ;;  %v680_v62 = vadd.f32 %v679_v23, %v609_v54  ;;  %v1964_v54 = vld [vmem:[%s6444_s6 + $0x60] sm:$0xff] }
 0x219   :  { %1850 = vmatprep.subr.mxu0 %v1776_v0  ;;  %1922 = vmatpush2.msra.mxu1 %v1777_v2  ;;  %v1264_v0 = vpop.f32.mrf.mxu0 }
 0x21a   :  { %1851 = vmatpush2.msra.mxu0 %v1775_v4  ;;  %1923 = vmatprep.subr.mxu1 %v2841_v15  ;;  %v682_v4 = vadd.f32 %v681_v27, %v611_v58  ;;  %v1979_v58 = vld [vmem:[%s6444_s6 + $0xd8] sm:$0xff] }
 0x21b   :  { %1852 = vmatprep.subr.mxu0 %v1773_v33  ;;  %1924 = vmatpush2.msra.mxu1 %v1774_v6  ;;  %v751_v33 = vadd.f32 %v750_v16, %v680_v62  ;;  %v1991_v62 = vld [vmem:[%s6444_s6 + $0x138] sm:$0xff] }
 0x21c   :  { %1853 = vmatpush2.msra.mxu0 %v1772_v8  ;;  %1925 = vmatprep.subr.mxu1 %v2841_v15  ;;  %v753_v8 = vadd.f32 %v752_v22, %v682_v4  ;;  %v1990_v4 = vld [vmem:[%s6444_s6 + $0x130] sm:$0xff] }
 0x21d   :  { %1854 = vmatprep.subr.mxu0 %v1770_v35  ;;  %1926 = vmatpush2.msra.mxu1 %v1771_v10  ;;  %v1192_v35 = vadd.f32 %v1191_v52, %v535_v44  ;;  %v1994_v44 = vld [vmem:[%s6444_s6 + $0x150] sm:$0xff]  ;;  %v1980_v52 = vld [vmem:[%s6444_s6 + $0xe0] sm:$0xff] }
 0x21e   :  { %1855 = vmatpush2.msra.mxu0 %v1769_v37  ;;  %1927 = vmatprep.subr.mxu1 %v2841_v15  ;;  %v1194_v37 = vadd.f32 %v1193_v60, %v539_v48  ;;  %v1965_v48 = vld [vmem:[%s6444_s6 + $0x68] sm:$0xff]  ;;  %v1963_v60 = vld [vmem:[%s6444_s6 + $0x58] sm:$0xff] }
 0x21f   :  { %1856 = vmatprep.subr.mxu0 %v1767_v39  ;;  %1928 = vmatpush2.msra.mxu1 %v1768_v41  ;;  %v1263_v39 = vadd.f32 %v1262_v56, %v1192_v35  ;;  %v822_v41 = vadd.f32 %v821_v31, %v751_v33  ;;  %v1992_v56 = vld [vmem:[%s6444_s6 + $0x140] sm:$0xff]  ;;  %v1977_v33 = vld [vmem:[%s6444_s6 + $0xc8] sm:$0xff] }
 0x220   :  { %1857 = vmatpush2.msra.mxu0 %v1766_v43  ;;  %1929 = vmatprep.subr.mxu1 %v2841_v15  ;;  %v1976_v35 = vld [vmem:[%s6444_s6 + $0xc0] sm:$0xff] }
 0x221   :  { %1858 = vmatprep.subr.mxu0 %v1764_v45  ;;  %1930 = vmatpush2.msra.mxu1 %v1765_v47  ;;  %v824_v47 = vadd.f32 %v823_v20, %v753_v8  ;;  %v1989_v8 = vld [vmem:[%s6444_s6 + $0x128] sm:$0xff] }
 0x222   :  { %1859 = vmatpush2.msra.mxu0 %v1763_v49  ;;  %1931 = vmatprep.subr.mxu1 %v2841_v15  ;;  %v1265_v49 = vadd.f32 %v1264_v0, %v1194_v37  ;;  %v1978_v0 = vld [vmem:[%s6444_s6 + $0xd0] sm:$0xff]  ;;  %v1988_v37 = vld [vmem:[%s6444_s6 + $0x120] sm:$0xff] }
 0x223   :  { %1860 = vmatprep.subr.mxu0 %v1761_v51  ;;  %1932 = vmatpush2.msra.mxu1 %v1762_v55 }
 0x224   :  { %1861 = vmatpush2.msra.mxu0 %v1760_v53  ;;  %1933 = vmatprep.subr.mxu1 %v2841_v15  ;;  %v893_v53 = vadd.f32 %v892_v28, %v822_v41  ;;  %v1959_v41 = vld [vmem:[%s6444_s6 + $0x38] sm:$0xff] }
 0x225   :  { %1862 = vmatprep.subr.mxu0 %v1758_v57  ;;  %1934 = vmatpush2.msra.mxu1 %v1759_v61  ;;  %v895_v57 = vadd.f32 %v894_v34, %v824_v47  ;;  %v1967_v34 = vld [vmem:[%s6444_s6 + $0x78] sm:$0xff]  ;;  %v1958_v47 = vld [vmem:[%s6444_s6 + $0x30] sm:$0xff] }
 0x226   :  { %1863 = vmatpush2.msra.mxu0 %v1757_v59  ;;  %1935 = vmatprep.subr.mxu1 %v2841_v15 }
 0x227   :  { %1864 = vmatprep.subr.mxu0 %v1755_v63  ;;  %1936 = vmatpush2.msra.mxu1 %v1756_v3 }
 0x228   :  { %1865 = vmatpush2.msra.mxu0 %v1754_v1  ;;  %1937 = vmatprep.subr.mxu1 %v2841_v15 }
 0x229   :  { %1866 = vmatprep.subr.mxu0 %v1752_v5  ;;  %1938 = vmatpush2.msra.mxu1 %v1753_v9  ;;  %v964_v5 = vadd.f32 %v963_v24, %v893_v53  ;;  %v966_v9 = vadd.f32 %v965_v30, %v895_v57  ;;  %v1972_v53 = vld [vmem:[%s6444_s6 + $0xa0] sm:$0xff]  ;;  %v1971_v57 = vld [vmem:[%s6444_s6 + $0x98] sm:$0xff] }
 0x22a   :  { %1867 = vmatpush2.msra.mxu0 %v1751_v7  ;;  %1939 = vmatprep.subr.mxu1 %v2841_v15 }
 0x22b   :  { %1868 = vmatprep.subr.mxu0 %v1749_v11  ;;  %1940 = vmatpush2.msra.mxu1 %v1750_v13  ;;  %v1035_v13 = vadd.f32 %v1034_v42, %v964_v5  ;;  %v1966_v42 = vld [vmem:[%s6444_s6 + $0x70] sm:$0xff]  ;;  %v1969_v5 = vld [vmem:[%s6444_s6 + $0x88] sm:$0xff] }
 0x22c   :  { %1869 = vmatpush2.msra.mxu0 %v1748_v12  ;;  %1941 = vmatprep.subr.mxu1 %v2841_v15 }
 0x22d   :  { %1870 = vmatprep.subr.mxu0 %v1746_v14  ;;  %1942 = vmatpush2.msra.mxu1 %v1747_v19  ;;  %v1333_v2 = vpop.f32.mrf.mxu1  ;;  %v1037_v19 = vadd.f32 %v1036_v50, %v966_v9  ;;  %v1106_v31 = vadd.f32 %v1105_v36, %v1035_v13  ;;  %v1982_v36 = vld [vmem:[%s6444_s6 + $0xf0] sm:$0xff]  ;;  %v1993_v50 = vld [vmem:[%s6444_s6 + $0x148] sm:$0xff]  ;;  %v1799_v13 = vsub.s32 2, %v6204_v26 }
 0x22e   :  { %1871 = vmatpush2.msra.mxu0 %v1745_v17  ;;  %2323 = vmatprep.subr.mxu1 %v2841_v15  ;;  %v1334_v51 = vadd.f32 %v1333_v2, %v1263_v39  ;;  %v1962_v2 = vld [vmem:[%s6444_s6 + $0x50] sm:$0xff]  ;;  %v1975_v39 = vld [vmem:[%s6444_s6 + $0xb8] sm:$0xff]  ;;  %v1953_v9 = vld [vmem:[%s6444_s6 + $0x8] sm:$0xff] }
 0x22f   :  { %2258 = vmatprep.subr.mxu0 %v1983_v21  ;;  %v1335_v10 = vpop.f32.mrf.mxu1  ;;  %v1108_v18 = vadd.f32 %v1107_v46, %v1037_v19  ;;  %v1981_v46 = vld [vmem:[%s6444_s6 + $0xe8] sm:$0xff]  ;;  %v2162_v26 = vld [vmem:[%s6447_s8 + $0x70] sm:$0xff] }
 0x230   :  { %v1336_v59 = vadd.f32 %v1335_v10, %v1265_v49  ;;  %v1960_v10 = vld [vmem:[%s6444_s6 + $0x40] sm:$0xff]  ;;  %v1973_v49 = vld [vmem:[%s6444_s6 + $0xa8] sm:$0xff] }
 0x24e   :  { %v1404_v6 = vpop.f32.mrf.mxu0 }
 0x24f   :  { %v1405_v61 = vadd.f32 %v1404_v6, %v1334_v51  ;;  %v1961_v6 = vld [vmem:[%s6444_s6 + $0x48] sm:$0xff] }
 0x250   :  { %v1406_v43 = vpop.f32.mrf.mxu0  ;;  %v1957_v51 = vld [vmem:[%s6444_s6 + $0x28] sm:$0xff] }
 0x251   :  { %v1407_v1 = vadd.f32 %v1406_v43, %v1336_v59  ;;  %v1987_v43 = vld [vmem:[%s6444_s6 + $0x118] sm:$0xff]  ;;  %v1986_v59 = vld [vmem:[%s6444_s6 + $0x110] sm:$0xff] }
 0x26f   :  { %v1475_v45 = vpop.f32.mrf.mxu1 }
 0x270   :  { %v1476_v3 = vadd.f32 %v1475_v45, %v1405_v61  ;;  %v1974_v45 = vld [vmem:[%s6444_s6 + $0xb0] sm:$0xff]  ;;  %v1955_v61 = vld [vmem:[%s6444_s6 + $0x18] sm:$0xff] }
 0x271   :  { %v1477_v63 = vpop.f32.mrf.mxu1 }
 0x272   :  { %v1478_v11 = vadd.f32 %v1477_v63, %v1407_v1  ;;  %v1970_v63 = vld [vmem:[%s6444_s6 + $0x90] sm:$0xff]  ;;  %v1985_v1 = vld [vmem:[%s6444_s6 + $0x108] sm:$0xff] }
 0x290   :  { %v1546_v55 = vpop.f32.mrf.mxu0 }
 0x291   :  { %v1547_v12 = vadd.f32 %v1546_v55, %v1476_v3  ;;  %v1956_v55 = vld [vmem:[%s6444_s6 + $0x20] sm:$0xff]  ;;  %v1954_v3 = vld [vmem:[%s6444_s6 + $0x10] sm:$0xff] }
 0x292   :  { %v1548_v7 = vpop.f32.mrf.mxu0 }
 0x293   :  { %v1549_v21 = vadd.f32 %v1548_v7, %v1478_v11  ;;  %v1984_v7 = vld [vmem:[%s6444_s6 + $0x100] sm:$0xff] }
 0x294   :  { %v1968_v11 = vld [vmem:[%s6444_s6 + $0x80] sm:$0xff] }
 0x2b1   :  { %v1617_v14 = vpop.f32.mrf.mxu1 }
 0x2b2   :  { %v1688_v17 = vpop.f32.mrf.mxu0  ;;  %v1618_v23 = vadd.f32 %v1617_v14, %v1547_v12  ;;  %v1952_v12 = vld [vmem:[%s6444_s6] sm:$0xff] }
 0x2b3   :  { %v1619_v25 = vpop.f32.mrf.mxu1  ;;  %v1787_v14 = vld [vmem:[%s6446_s5] sm:$0x7] }
 0x2b4   :  { %v1689_v27 = vadd.f32 %v1688_v17, %v1618_v23  ;;  %v1620_v29 = vadd.f32 %v1619_v25, %v1549_v21  ;;  %v1690_v16 = vpop.f32.mrf.mxu0  ;;  %v1800_v17 = vrot.slane %v1787_v14, %v1799_v13  ;;  %v1792_v19 = vrot.slane %v1787_v14, %v534_v32 }
 0x2b5   :  { %v1796_v21 = vrot.slane %v1787_v14, %v538_v40  ;;  %v2161_v40 = vld [vmem:[%s6447_s8 + $0x68] sm:$0xff] }
 0x2b6   :  { %v1691_v20 = vadd.f32 %v1690_v16, %v1620_v29  ;;  %v1693_v22 = vmax.f32 %v1106_v31, %v1689_v27 }
 0x2b8   :  { %v1694_v28 = vmax.f32 %v1108_v18, %v1691_v20  ;;  %v1695_v30 = vmax.f32 %v1693_v22, 0.0  ;;  %v2163_v22 = vld [vmem:[%s6447_s8 + $0x78] sm:$0xff] }
 0x2ba   :  { %v1696_v24 = vmax.f32 %v1694_v28, 0.0 }
 0x2bc   :  { %2252 = vmatprep.mubr.msk.f32.mxu0 %vm1804_vm0, %v1696_v24  ;;  %2253 = vmatprep.mubr.msk.f32.mxu1 %vm1804_vm0, %v1696_v24  ;;  %v2160_v24 = vld [vmem:[%s6447_s8 + $0x60] sm:$0xff] }
 0x2bd   :  { %1873 = vmatmul.mubr.f32.vlgmr.msra.gmra.mxu0 %v1695_v30  ;;  %1944 = vmatmul.mubr.f32.vlgmr.msra.gmra.mxu1 %v1695_v30  ;;  %v2159_v30 = vld [vmem:[%s6447_s8 + $0x58] sm:$0xff] }
 0x2be   :  { %2259 = vmatpush3.msra.mxu0 %v1967_v34  ;;  %2324 = vmatpush3.msra.mxu1 %v1995_v38  ;;  %v2158_v34 = vld [vmem:[%s6447_s8 + $0x50] sm:$0xff]  ;;  %v2157_v38 = vld [vmem:[%s6447_s8 + $0x48] sm:$0xff] }
 0x2bf   :  { %2260 = vmatprep.subr.mxu0 %v1982_v36  ;;  %2325 = vmatprep.subr.mxu1 %v2841_v15  ;;  %v2156_v36 = vld [vmem:[%s6447_s8 + $0x40] sm:$0xff] }
 0x2c0   :  { %2261 = vmatpush3.msra.mxu0 %v1966_v42  ;;  %2326 = vmatpush3.msra.mxu1 %v1994_v44  ;;  %v2155_v42 = vld [vmem:[%s6447_s8 + $0x38] sm:$0xff]  ;;  %v2154_v44 = vld [vmem:[%s6447_s8 + $0x30] sm:$0xff] }
 0x2c1   :  { %2262 = vmatprep.subr.mxu0 %v1981_v46  ;;  %2327 = vmatprep.subr.mxu1 %v2841_v15  ;;  %v2153_v46 = vld [vmem:[%s6447_s8 + $0x28] sm:$0xff] }
 0x2c2   :  { %2263 = vmatpush3.msra.mxu0 %v1965_v48  ;;  %2328 = vmatpush3.msra.mxu1 %v1993_v50  ;;  %v2152_v48 = vld [vmem:[%s6447_s8 + $0x20] sm:$0xff]  ;;  %v2151_v50 = vld [vmem:[%s6447_s8 + $0x18] sm:$0xff] }
 0x2c3   :  { %2264 = vmatprep.subr.mxu0 %v1980_v52  ;;  %2329 = vmatprep.subr.mxu1 %v2841_v15  ;;  %v2150_v52 = vld [vmem:[%s6447_s8 + $0x10] sm:$0xff] }
 0x2c4   :  { %2265 = vmatpush3.msra.mxu0 %v1964_v54  ;;  %2330 = vmatpush3.msra.mxu1 %v1992_v56  ;;  %v2149_v54 = vld [vmem:[%s6447_s8 + $0x8] sm:$0xff]  ;;  %v2148_v56 = vld [vmem:[%s6447_s8] sm:$0xff] }
 0x2c5   :  { %2266 = vmatprep.subr.mxu0 %v1979_v58  ;;  %2331 = vmatprep.subr.mxu1 %v2841_v15 }
 0x2c6   :  { %2267 = vmatpush3.msra.mxu0 %v1963_v60  ;;  %2332 = vmatpush3.msra.mxu1 %v1991_v62 }
 0x2c7   :  { %2268 = vmatprep.subr.mxu0 %v1978_v0  ;;  %2333 = vmatprep.subr.mxu1 %v2841_v15  ;;  %v2254_v0 = vld [vmem:[%s6448_s7] ss:$0 sm:$0xff] }
 0x2c8   :  { %2269 = vmatpush3.msra.mxu0 %v1962_v2  ;;  %2334 = vmatpush3.msra.mxu1 %v1990_v4 }
 0x2c9   :  { %2270 = vmatprep.subr.mxu0 %v1977_v33  ;;  %2335 = vmatprep.subr.mxu1 %v2841_v15 }
 0x2ca   :  { %2271 = vmatpush3.msra.mxu0 %v1961_v6  ;;  %2336 = vmatpush3.msra.mxu1 %v1989_v8 }
 0x2cb   :  { %2272 = vmatprep.subr.mxu0 %v1976_v35  ;;  %2337 = vmatprep.subr.mxu1 %v2841_v15 }
 0x2cc   :  { %2273 = vmatpush3.msra.mxu0 %v1960_v10  ;;  %2338 = vmatpush3.msra.mxu1 %v1988_v37 }
 0x2cd   :  { %2274 = vmatprep.subr.mxu0 %v1975_v39  ;;  %2339 = vmatprep.subr.mxu1 %v2841_v15 }
 0x2ce   :  { %2275 = vmatpush3.msra.mxu0 %v1959_v41  ;;  %2340 = vmatpush3.msra.mxu1 %v1987_v43 }
 0x2cf   :  { %2276 = vmatprep.subr.mxu0 %v1974_v45  ;;  %2341 = vmatprep.subr.mxu1 %v2841_v15 }
 0x2d0   :  { %2277 = vmatpush3.msra.mxu0 %v1958_v47  ;;  %2342 = vmatpush3.msra.mxu1 %v1986_v59 }
 0x2d1   :  { %2278 = vmatprep.subr.mxu0 %v1973_v49  ;;  %2343 = vmatprep.subr.mxu1 %v2841_v15 }
 0x2d2   :  { %2279 = vmatpush3.msra.mxu0 %v1957_v51  ;;  %2344 = vmatpush3.msra.mxu1 %v1985_v1 }
 0x2d3   :  { %2280 = vmatprep.subr.mxu0 %v1972_v53  ;;  %2345 = vmatprep.subr.mxu1 %v2841_v15 }
 0x2d4   :  { %2281 = vmatpush3.msra.mxu0 %v1956_v55  ;;  %2346 = vmatpush3.msra.mxu1 %v1984_v7 }
 0x2d5   :  { %2282 = vmatprep.subr.mxu0 %v1971_v57  ;;  %2347 = vmatprep.mubr.msk.f32.mxu1 %vm2842_vm1, %v2841_v15 }
 0x2d6   :  { %2283 = vmatpush3.msra.mxu0 %v1955_v61  ;;  %2350 = vmatprep.subr.mxu1 %v2841_v15 }
 0x2d7   :  { %2284 = vmatprep.subr.mxu0 %v1970_v63 }
 0x2d8   :  { %2285 = vmatpush3.msra.mxu0 %v1954_v3 }
 0x2d9   :  { %2286 = vmatprep.subr.mxu0 %v1969_v5 }
 0x2da   :  { %2287 = vmatpush3.msra.mxu0 %v1953_v9 }
 0x2db   :  { %2288 = vmatprep.subr.mxu0 %v1968_v11 }
 0x2dc   :  { %2289 = vmatpush3.msra.mxu0 %v1952_v12 }
 0x37d   :  { %v1874_v23 = vpop.f32.mrf.mxu0  ;;  %v1945_v25 = vpop.f32.mrf.mxu1 }
 0x37e   :  { %v1946_v27 = vadd.f32 %v1945_v25, %v1800_v17  ;;  %v1875_v29 = vadd.f32 %v1874_v23, %v1792_v19 }
 0x37f   :  { %v1876_v31 = vpop.f32.mrf.mxu0  ;;  %v1947_v16 = vpop.f32.mrf.mxu1 }
 0x380   :  { %v1951_v18 = vmax.f32 %v1946_v27, 0.0  ;;  %v1877_v20 = vadd.f32 %v1876_v31, %v1796_v21  ;;  %v1949_v32 = vmax.f32 %v1875_v29, 0.0 }
 0x382   :  { %v1950_v28 = vmax.f32 %v1877_v20, 0.0  ;;  %2348 = vmatmul.mubr.msk.f32.vlgmr.msra.gmra.mxu1 %vm2003_vm2, %v1951_v18 }
 0x383   :  { %2351 = vmatpush3.msra.mxu1 %v2163_v22  ;;  %2382 = vmatprep.mubr.msk.f32.mxu1 %vm2842_vm1, %v2841_v15 }
 0x384   :  { %2071 = vmatprep.mubr.f32.mxu0 %v1950_v28  ;;  %2352 = vmatprep.subr.mxu1 %v2841_v15 }
 0x385   :  { %2072 = vmatmul.mubr.f32.vlgmr.msra.gmra.mxu0 %v1949_v32  ;;  %2353 = vmatpush3.msra.mxu1 %v2162_v26 }
 0x386   :  { %2354 = vmatprep.subr.mxu1 %v2841_v15 }
 0x387   :  { %2355 = vmatpush3.msra.mxu1 %v2161_v40 }
 0x388   :  { %2356 = vmatprep.subr.mxu1 %v2841_v15 }
 0x389   :  { %2357 = vmatpush3.msra.mxu1 %v2160_v24 }
 0x38a   :  { %2358 = vmatprep.subr.mxu1 %v2841_v15 }
 0x38b   :  { %2359 = vmatpush3.msra.mxu1 %v2159_v30 }
 0x38c   :  { %2360 = vmatprep.subr.mxu1 %v2841_v15 }
 0x38d   :  { %2361 = vmatpush3.msra.mxu1 %v2158_v34 }
 0x38e   :  { %2362 = vmatprep.subr.mxu1 %v2841_v15 }
 0x38f   :  { %2363 = vmatpush3.msra.mxu1 %v2157_v38 }
 0x390   :  { %2364 = vmatprep.subr.mxu1 %v2841_v15 }
 0x391   :  { %2365 = vmatpush3.msra.mxu1 %v2156_v36 }
 0x392   :  { %2366 = vmatprep.subr.mxu1 %v2841_v15 }
 0x393   :  { %2367 = vmatpush3.msra.mxu1 %v2155_v42 }
 0x394   :  { %2368 = vmatprep.subr.mxu1 %v2841_v15 }
 0x395   :  { %2369 = vmatpush3.msra.mxu1 %v2154_v44 }
 0x396   :  { %2370 = vmatprep.subr.mxu1 %v2841_v15 }
 0x397   :  { %2371 = vmatpush3.msra.mxu1 %v2153_v46 }
 0x398   :  { %2372 = vmatprep.subr.mxu1 %v2841_v15 }
 0x399   :  { %2373 = vmatpush3.msra.mxu1 %v2152_v48 }
 0x39a   :  { %2374 = vmatprep.subr.mxu1 %v2841_v15 }
 0x39b   :  { %2375 = vmatpush3.msra.mxu1 %v2151_v50 }
 0x39c   :  { %2376 = vmatprep.subr.mxu1 %v2841_v15 }
 0x39d   :  { %2377 = vmatpush3.msra.mxu1 %v2150_v52 }
 0x39e   :  { %2378 = vmatprep.subr.mxu1 %v2841_v15 }
 0x39f   :  { %2379 = vmatpush3.msra.mxu1 %v2149_v54 }
 0x3a0   :  { %2380 = vmatprep.subr.mxu1 %v2841_v15  ;;  %v2256_v15 = vld [vmem:[%s6449_s9] ss:$0 sm:$0xff] }
 0x3a1   :  { %2381 = vmatpush3.msra.mxu1 %v2148_v56 }
 0x442   :  { %v2143_v58 = vpop.f32.mrf.mxu1 }
 0x444   :  { %v2349_v60 = vpop.f32.mrf.mxu1 }
 0x445   :  { %v2290_v62 = vpop.f32.mrf.mxu0 }
 0x447   :  { %v2291_v2 = vpop.f32.mrf.mxu0 }
 0x448   :  { %v2292_v4 = vadd.f32 %v2291_v2, %v2290_v62 }
 0x44a   :  { %v2074_v33 = vadd.f32 %v2292_v4, %v2254_v0 }
 0x44c   :  { %v2144_v6 = vadd.f32 %v2143_v58, %v2074_v33 }
 0x44e   :  { %v2147_v8 = vmax.f32 %v2144_v6, 0.0 }
 0x450   :  { %2383 = vmatmul.mubr.f32.vlgmr.msra.gmra.mxu1 %v2147_v8 }
 0x510   :  { %v2237_v35 = vpop.f32.mrf.mxu1 }
 0x511   :  { %v2238_v10 = vadd.f32 %v2256_v15, %v2237_v35 }
 0x512   :  { %v2384_v37 = vpop.f32.mrf.mxu1 }
 0x513   :  { %v2257_v39 = vmul.f32 -1.442695, %v2238_v10 }
 0x515   :  { %2387 = vpow2.f32 %v2257_v39 }
 0x522   :  { %v2388_v41 = vpop.eup %2387 }
 0x523   :  { %v2244_v43 = vadd.f32 1.0, %v2388_v41 }
 0x525   :  { %2389 = vrcp.f32 %v2244_v43 }
 0x532   :  { %v2390_v45 = vpop.eup %2389 }
 0x533   :  { %2247 = vst [vmem:[%s6450_s10] sm:$0xff] %v2390_v45 }

</bundles_post_ra>
